<compile_context>
chip_gen: v7x
topology: tpu7x:2x2x1
jax: 0.10.0
libtpu: 0.0.40
codegen_flags: <defaults>
</compile_context>

<pallas_src>
import functools

import jax
import jax.numpy as jnp
from jax.experimental import pallas as pl
from jax.experimental.pallas import tpu as pltpu


# ----------------------------- helpers ---------------------------------------

def _round_up(x, m):
    return ((x + m - 1) // m) * m


def _choose_tk(k, cap=1024):
    """Largest multiple of 128 <= cap that divides K (full K if K <= cap)."""
    if k <= cap:
        return k
    if k % 128 != 0:
        return k
    best = 128
    t = 128
    while t <= cap:
        if k % t == 0:
            best = t
        t += 128
    return best


def _choose_m_tiling(m, tm_cap=1024, force_split=False):
    """Return (m_pad, tm).  force_split => at least 2 M-tiles (v7x megacore)."""
    m_pad = _round_up(m, 16)
    if m_pad <= 16:
        return m_pad, m_pad
    n_tiles = -(-m_pad // tm_cap)              # ceil
    if force_split:
        n_tiles = max(n_tiles, 2)
    tm = _round_up(-(-m // n_tiles), 16)
    return tm * n_tiles, tm


def _apply_act(z, act):
    if act == "leaky_relu":
        return jnp.where(z >= 0, z, 0.2 * z)
    if act == "sigmoid":
        e = jnp.exp(-jnp.abs(z))               # numerically-stable sigmoid
        return jnp.where(z >= 0, 1.0 / (1.0 + e), e / (1.0 + e))
    return z


# ----------------------------- Pallas kernels --------------------------------

def _matmul_bias_act_kernel(p_ref, w_ref, b_ref, o_ref, acc_ref, *, act):
    # p_ref: (TM, TK) bf16, w_ref: (TK, TN) bf16, b_ref: (1, TN) f32.
    # K-tiled: f32 accumulator scratch, epilogue on the last K step.
    k = pl.program_id(2)

    @pl.when(k == 0)
    def _init():
        acc_ref[...] = jnp.zeros_like(acc_ref)

    acc_ref[...] += jnp.dot(p_ref[...], w_ref[...],
                            preferred_element_type=jnp.float32)

    @pl.when(k == pl.num_programs(2) - 1)
    def _finish():
        z = acc_ref[...] + b_ref[...]
        o_ref[...] = _apply_act(z, act).astype(o_ref.dtype)


def _gemv_bias_act_kernel(p_ref, w_ref, b_ref, o_ref, acc_ref, *, act):
    # Cout == 1 layer: VPU multiply + lane-reduce, K-tiled, no Cout padding.
    # p_ref: (M_PAD, TK) bf16, w_ref: (1, TK) bf16, b_ref/o_ref/acc_ref: (M_PAD|1, 1).
    k = pl.program_id(0)

    @pl.when(k == 0)
    def _init():
        acc_ref[...] = jnp.zeros_like(acc_ref)

    prod = p_ref[...].astype(jnp.float32) * w_ref[...].astype(jnp.float32)
    acc_ref[...] += jnp.sum(prod, axis=-1, keepdims=True)

    @pl.when(k == pl.num_programs(0) - 1)
    def _finish():
        z = acc_ref[...] + b_ref[...]
        o_ref[...] = _apply_act(z, act).astype(o_ref.dtype)


# ----------------------------- Pallas wrappers --------------------------------

def matmul_bias_act(patches, w_prep, bias_prep, act, out_dtype, cout):
    """(M,K) bf16 @ (K,Cout_pad) bf16 + bias + activation, K-tiled f32 accum."""
    m, k = patches.shape
    kw_, cout_pad = w_prep.shape
    assert k == kw_
    tn = 128
    n_grid = cout_pad // tn
    # Force an M split when Cout only has one 128-lane block (v7x: 2 TCs).
    m_pad, tm = _choose_m_tiling(m, force_split=(n_grid == 1))
    tk = _choose_tk(k)
    k_grid = k // tk

    if m_pad != m:
        patches = jnp.pad(patches, ((0, m_pad - m), (0, 0)))

    out_bytes = m_pad * cout_pad * jnp.dtype(out_dtype).itemsize
    cost = pl.CostEstimate(
        flops=2 * m_pad * k * cout_pad,
        transcendentals=m_pad * cout_pad if act == "sigmoid" else 0,
        bytes_accessed=m_pad * k * 2 + k * cout_pad * 2 + cout_pad * 4 + out_bytes)

    out = pl.pallas_call(
        functools.partial(_matmul_bias_act_kernel, act=act),
        out_shape=jax.ShapeDtypeStruct((m_pad, cout_pad), out_dtype),
        grid_spec=pltpu.PrefetchScalarGridSpec(
            num_scalar_prefetch=0,
            grid=(m_pad // tm, n_grid, k_grid),
            in_specs=[
                pl.BlockSpec((tm, tk), lambda i, j, kk: (i, kk)),   # patches
                pl.BlockSpec((tk, tn), lambda i, j, kk: (kk, j)),   # weights
                pl.BlockSpec((1, tn), lambda i, j, kk: (0, j)),     # bias
            ],
            out_specs=pl.BlockSpec((tm, tn), lambda i, j, kk: (i, j)),
            scratch_shapes=[pltpu.VMEM((tm, tn), jnp.float32)],
        ),
        compiler_params=pltpu.CompilerParams(
            dimension_semantics=("parallel", "parallel", "arbitrary")),
        cost_estimate=cost,
    )(patches, w_prep, bias_prep)

    return out[:m, :cout]


def gemv_bias_act(patches, w_row, bias_prep, act, out_dtype):
    """Cout==1 layer: no lane padding of Cout, K-tiled VPU reduce."""
    m, k = patches.shape
    assert w_row.shape == (1, k)
    m_pad = _round_up(m, 16)
    if m_pad != m:
        patches = jnp.pad(patches, ((0, m_pad - m), (0, 0)))
    tk = _choose_tk(k)
    k_grid = k // tk

    cost = pl.CostEstimate(
        flops=2 * m_pad * k,
        transcendentals=m_pad if act == "sigmoid" else 0,
        bytes_accessed=m_pad * k * 2 + k * 2 + 4 + m_pad * 4)

    out = pl.pallas_call(
        functools.partial(_gemv_bias_act_kernel, act=act),
        out_shape=jax.ShapeDtypeStruct((m_pad, 1), out_dtype),
        grid_spec=pltpu.PrefetchScalarGridSpec(
            num_scalar_prefetch=0,
            grid=(k_grid,),
            in_specs=[
                pl.BlockSpec((m_pad, tk), lambda kk: (0, kk)),   # patches
                pl.BlockSpec((1, tk), lambda kk: (0, kk)),       # weight row
                pl.BlockSpec((1, 1), lambda kk: (0, 0)),         # bias scalar
            ],
            out_specs=pl.BlockSpec((m_pad, 1), lambda kk: (0, 0)),
            scratch_shapes=[pltpu.VMEM((m_pad, 1), jnp.float32)],
        ),
        compiler_params=pltpu.CompilerParams(
            dimension_semantics=("arbitrary",)),
        cost_estimate=cost,
    )(patches, w_row, bias_prep)

    return out[:m, :]


# ------------------------------ JAX glue --------------------------------------

def im2col_nhwc(x, kh, kw, stride, pad):
    """x: (N,H,W,C) -> patches (N*OH*OW, kh*kw*C), K ordered (kh, kw, c)."""
    n, h, w, c = x.shape
    if pad:
        x = jnp.pad(x, ((0, 0), (pad, pad), (pad, pad), (0, 0)))
    oh = (h + 2 * pad - kh) // stride + 1
    ow = (w + 2 * pad - kw) // stride + 1
    cols = []
    for i in range(kh):
        for j in range(kw):
            cols.append(x[:, i:i + stride * oh:stride, j:j + stride * ow:stride, :])
    p = jnp.concatenate(cols, axis=-1)                  # (N, OH, OW, kh*kw*C)
    return p.reshape(n * oh * ow, kh * kw * c), oh, ow


def conv_layer(h, cfg, w_prep, b_prep):
    n = h.shape[0]
    patches, oh, ow = im2col_nhwc(h, cfg["kh"], cfg["kw"], cfg["stride"], cfg["pad"])
    if cfg["kind"] == "gemv":
        out = gemv_bias_act(patches, w_prep, b_prep, cfg["act"], cfg["out_dtype"])
    else:
        out = matmul_bias_act(patches, w_prep, b_prep, cfg["act"],
                              cfg["out_dtype"], cfg["cout"])
    return out.reshape(n, oh, ow, cfg["cout"])          # stays NHWC


def spectral_norm_weight(w, u_key, n_power_iterations=1, eps=1e-12):
    """Mirror torch spectral_norm: power iteration on W.reshape(Cout, -1)."""
    cout = w.shape[0]
    w_mat = w.reshape(cout, -1)
    u = jax.random.normal(u_key, (cout,), dtype=w.dtype)
    u = u / (jnp.linalg.norm(u) + eps)
    v = None
    for _ in range(n_power_iterations):
        v = w_mat.T @ u
        v = v / (jnp.linalg.norm(v) + eps)
        u = w_mat @ v
        u = u / (jnp.linalg.norm(u) + eps)
    sigma = u @ (w_mat @ v)
    return w / sigma


def prepare_layer(w, b, stride, pad, act, out_dtype):
    """Hoisted weight prep: reorder K=(kh,kw,cin), bf16 cast, lane pad, bias prep."""
    cout, cin, kh, kw = w.shape
    k = kh * kw * cin
    w_t = jnp.transpose(w, (2, 3, 1, 0)).reshape(k, cout)
    if cout == 1:
        kind = "gemv"
        w_prep = w_t.T.astype(jnp.bfloat16)                       # (1, K), lane-dense
        b_prep = b.astype(jnp.float32).reshape(1, 1)
    else:
        kind = "gemm"
        cout_pad = _round_up(cout, 128)
        if cout_pad != cout:
            w_t = jnp.pad(w_t, ((0, 0), (0, cout_pad - cout)))
            b = jnp.pad(b, ((0, cout_pad - cout),))
        w_prep = w_t.astype(jnp.bfloat16)                         # (K, Cout_pad)
        b_prep = b.astype(jnp.float32).reshape(1, cout_pad)
    cfg = dict(kind=kind, kh=kh, kw=kw, cin=cin, cout=cout,
               stride=stride, pad=pad, act=act, out_dtype=out_dtype)
    return cfg, (w_prep, b_prep)


def init_params(key, channels=64):
    """Conv2d weights/biases (torch default uniform init) + spectral norm, prepped."""
    specs = [
        (channels, 8, 4, 2, 1, "leaky_relu", jnp.bfloat16),        # Conv2d(8,   C, 4, s2, p1)
        (channels * 2, channels, 4, 2, 1, "leaky_relu", jnp.bfloat16),
        (channels * 4, channels * 2, 4, 2, 1, "leaky_relu", jnp.bfloat16),
        (1, channels * 4, 7, 1, 0, "sigmoid", jnp.float32),        # Conv2d(4C,  1, 7, s1, p0)
    ]
    keys = jax.random.split(key, 3 * len(specs))
    cfgs, weights = [], []
    for idx, (cout, cin, ksz, stride, pad, act, odt) in enumerate(specs):
        kw_key, kb_key, ku_key = keys[3 * idx], keys[3 * idx + 1], keys[3 * idx + 2]
        fan_in = cin * ksz * ksz
        bound = 1.0 / jnp.sqrt(jnp.float32(fan_in))
        w = jax.random.uniform(kw_key, (cout, cin, ksz, ksz), jnp.float32, -bound, bound)
        b = jax.random.uniform(kb_key, (cout,), jnp.float32, -bound, bound)
        w = spectral_norm_weight(w, ku_key)
        cfg, wb = prepare_layer(w, b, stride, pad, act, odt)
        cfgs.append(cfg)
        weights.append(wb)
    return tuple(cfgs), tuple(weights)


def make_forward(cfgs):
    def forward(weights, x, condition):
        # PyTorch-facing I/O is NCHW f32; compute internally in NHWC / bf16.
        h = jnp.concatenate([x, condition], axis=1)          # (N, 8, H, W)
        h = h.transpose(0, 2, 3, 1).astype(jnp.bfloat16)     # single NCHW->NHWC
        for cfg, (w_prep, b_prep) in zip(cfgs, weights):
            h = conv_layer(h, cfg, w_prep, b_prep)
        return h.transpose(0, 3, 1, 2)                       # back to NCHW (N,1,OH,OW)
    return jax.jit(forward)


# ------------------------------- driver ---------------------------------------

if __name__ == "__main__":
    key = jax.random.PRNGKey(0)
    kx, kc, kp = jax.random.split(key, 3)

    # 56x56 spatial -> 28 -> 14 -> 7 -> (7x7 valid conv) -> 1x1 patch output.
    batch, spatial = 2, 56
    x = jax.random.normal(kx, (batch, 4, spatial, spatial), dtype=jnp.float32)
    condition = jax.random.normal(kc, (batch, 4, spatial, spatial), dtype=jnp.float32)

    cfgs, weights = init_params(kp, channels=64)
    fwd = make_forward(cfgs)

    out = fwd(weights, x, condition)
    out = jax.block_until_ready(out)

    assert out.shape == (batch, 1, 1, 1), out.shape
    assert bool(jnp.all(jnp.isfinite(out)))
    assert bool(jnp.all((out >= 0.0) & (out <= 1.0)))  # sigmoid output range
    print("KERNEL_OK")
</pallas_src>

<mosaic_0001>
module attributes {stable_mosaic.version = 11 : i64} {
  func.func @_matmul_bias_act_kernel(%arg0: i32, %arg1: i32, %arg2: i32, %arg3: memref<784x128xbf16, #tpu.memory_space<vmem>>, %arg4: memref<128x128xbf16, #tpu.memory_space<vmem>>, %arg5: memref<1x128xf32, #tpu.memory_space<vmem>>, %arg6: memref<784x128xbf16, #tpu.memory_space<vmem>>, %arg7: memref<784x128xf32, #tpu.memory_space<vmem>>) attributes {dimension_semantics = [#tpu.dimension_semantics<parallel>, #tpu.dimension_semantics<parallel>, #tpu.dimension_semantics<arbitrary>], iteration_bounds = array<i64: 2, 1, 1>, scalar_prefetch = 0 : i64, scratch_operands = 1 : i64, tpu.core_type = #tpu.core_type<tc>, window_params = [{transform_indices = @transform_0, window_bounds = array<i64: 784, 128>}, {transform_indices = @transform_1, window_bounds = array<i64: 128, 128>}, {transform_indices = @transform_2, window_bounds = array<i64: 1, 128>}, {transform_indices = @transform_3, window_bounds = array<i64: 784, 128>}]} {
    %c0_i32 = arith.constant 0 : i32
    %0 = arith.cmpi eq, %arg2, %c0_i32 : i32
    %1 = arith.extui %0 : i1 to i32
    %c0_i32_0 = arith.constant 0 : i32
    %2 = arith.cmpi ne, %1, %c0_i32_0 : i32
    scf.if %2 {
      %cst_10 = arith.constant 0.000000e+00 : f32
      %12 = vector.broadcast %cst_10 : f32 to vector<784x128xf32>
      %c0_11 = arith.constant 0 : index
      %c0_12 = arith.constant 0 : index
      %13 = vector.load %arg7[%c0_11, %c0_12] : memref<784x128xf32, #tpu.memory_space<vmem>>, vector<784x128xf32>
      tpu.vector_store %arg7[%c0_11, %c0_12], %12 {strides = array<i32>} : memref<784x128xf32, #tpu.memory_space<vmem>>, vector<784x128xf32>,
    } else {
    }
    %c0 = arith.constant 0 : index
    %c0_1 = arith.constant 0 : index
    %3 = vector.load %arg7[%c0, %c0_1] : memref<784x128xf32, #tpu.memory_space<vmem>>, vector<784x128xf32>
    %c0_2 = arith.constant 0 : index
    %c0_3 = arith.constant 0 : index
    %4 = vector.load %arg3[%c0_2, %c0_3] : memref<784x128xbf16, #tpu.memory_space<vmem>>, vector<784x128xbf16>
    %c0_4 = arith.constant 0 : index
    %c0_5 = arith.constant 0 : index
    %5 = vector.load %arg4[%c0_4, %c0_5] : memref<128x128xbf16, #tpu.memory_space<vmem>>, vector<128x128xbf16>
    %cst = arith.constant dense<0.000000e+00> : vector<784x128xf32>
    %6 = tpu.matmul %4, %5, %cst {dimension_numbers = #tpu.dot_dimension_numbers<[1], [0], [0], [1], [0, 0, 1, 1], [], []>} : vector<784x128xbf16>, vector<128x128xbf16>, vector<784x128xf32> -> vector<784x128xf32>
    %7 = arith.addf %3, %6 : vector<784x128xf32>
    %c0_6 = arith.constant 0 : index
    %c0_7 = arith.constant 0 : index
    %8 = vector.load %arg7[%c0_6, %c0_7] : memref<784x128xf32, #tpu.memory_space<vmem>>, vector<784x128xf32>
    tpu.vector_store %arg7[%c0_6, %c0_7], %7 {strides = array<i32>} : memref<784x128xf32, #tpu.memory_space<vmem>>, vector<784x128xf32>,
    %c0_i32_8 = arith.constant 0 : i32
    %9 = arith.cmpi eq, %arg2, %c0_i32_8 : i32
    %10 = arith.extui %9 : i1 to i32
    %c0_i32_9 = arith.constant 0 : i32
    %11 = arith.cmpi ne, %10, %c0_i32_9 : i32
    scf.if %11 {
      %c0_10 = arith.constant 0 : index
      %c0_11 = arith.constant 0 : index
      %12 = vector.load %arg7[%c0_10, %c0_11] : memref<784x128xf32, #tpu.memory_space<vmem>>, vector<784x128xf32>
      %c0_12 = arith.constant 0 : index
      %c0_13 = arith.constant 0 : index
      %13 = vector.load %arg5[%c0_12, %c0_13] : memref<1x128xf32, #tpu.memory_space<vmem>>, vector<1x128xf32>
      %14 = vector.broadcast %13 : vector<1x128xf32> to vector<784x128xf32>
      %15 = arith.addf %12, %14 : vector<784x128xf32>
      %cst_14 = arith.constant 0.000000e+00 : f32
      %16 = vector.broadcast %cst_14 : f32 to vector<784x128xf32>
      %17 = arith.cmpf oge, %15, %16 : vector<784x128xf32>
      %cst_15 = arith.constant 2.000000e-01 : f32
      %18 = vector.broadcast %cst_15 : f32 to vector<784x128xf32>
      %19 = arith.mulf %18, %15 : vector<784x128xf32>
      %20 = arith.select %17, %15, %19 : vector<784x128xi1>, vector<784x128xf32>
      %21 = arith.truncf %20 : vector<784x128xf32> to vector<784x128xbf16>
      %c0_16 = arith.constant 0 : index
      %c0_17 = arith.constant 0 : index
      %22 = vector.load %arg6[%c0_16, %c0_17] : memref<784x128xbf16, #tpu.memory_space<vmem>>, vector<784x128xbf16>
      tpu.vector_store %arg6[%c0_16, %c0_17], %21 {strides = array<i32>} : memref<784x128xbf16, #tpu.memory_space<vmem>>, vector<784x128xbf16>,
    } else {
    }
    return
  }
  func.func @transform_0(%arg0: i32, %arg1: i32, %arg2: i32) -> (i32, i32) {
    %c0_i32 = arith.constant 0 : i32
    return %arg0, %arg2 : i32, i32
  }
  func.func @transform_1(%arg0: i32, %arg1: i32, %arg2: i32) -> (i32, i32) {
    %c0_i32 = arith.constant 0 : i32
    return %arg2, %arg1 : i32, i32
  }
  func.func @transform_2(%arg0: i32, %arg1: i32, %arg2: i32) -> (i32, i32) {
    %c0_i32 = arith.constant 0 : i32
    %c0_i32_0 = arith.constant 0 : i32
    return %c0_i32, %arg1 : i32, i32
  }
  func.func @transform_3(%arg0: i32, %arg1: i32, %arg2: i32) -> (i32, i32) {
    %c0_i32 = arith.constant 0 : i32
    return %arg0, %arg1 : i32, i32
  }
}

module attributes {stable_mosaic.version = 11 : i64} {
  func.func @_matmul_bias_act_kernel(%arg0: i32, %arg1: i32, %arg2: i32, %arg3: memref<208x1024xbf16, #tpu.memory_space<vmem>>, %arg4: memref<1024x128xbf16, #tpu.memory_space<vmem>>, %arg5: memref<1x128xf32, #tpu.memory_space<vmem>>, %arg6: memref<208x128xbf16, #tpu.memory_space<vmem>>, %arg7: memref<208x128xf32, #tpu.memory_space<vmem>>) attributes {dimension_semantics = [#tpu.dimension_semantics<parallel>, #tpu.dimension_semantics<parallel>, #tpu.dimension_semantics<arbitrary>], iteration_bounds = array<i64: 2, 1, 1>, scalar_prefetch = 0 : i64, scratch_operands = 1 : i64, tpu.core_type = #tpu.core_type<tc>, window_params = [{transform_indices = @transform_0, window_bounds = array<i64: 208, 1024>}, {transform_indices = @transform_1, window_bounds = array<i64: 1024, 128>}, {transform_indices = @transform_2, window_bounds = array<i64: 1, 128>}, {transform_indices = @transform_3, window_bounds = array<i64: 208, 128>}]} {
    %c0_i32 = arith.constant 0 : i32
    %0 = arith.cmpi eq, %arg2, %c0_i32 : i32
    %1 = arith.extui %0 : i1 to i32
    %c0_i32_0 = arith.constant 0 : i32
    %2 = arith.cmpi ne, %1, %c0_i32_0 : i32
    scf.if %2 {
      %cst_10 = arith.constant 0.000000e+00 : f32
      %12 = vector.broadcast %cst_10 : f32 to vector<208x128xf32>
      %c0_11 = arith.constant 0 : index
      %c0_12 = arith.constant 0 : index
      %13 = vector.load %arg7[%c0_11, %c0_12] : memref<208x128xf32, #tpu.memory_space<vmem>>, vector<208x128xf32>
      tpu.vector_store %arg7[%c0_11, %c0_12], %12 {strides = array<i32>} : memref<208x128xf32, #tpu.memory_space<vmem>>, vector<208x128xf32>,
    } else {
    }
    %c0 = arith.constant 0 : index
    %c0_1 = arith.constant 0 : index
    %3 = vector.load %arg7[%c0, %c0_1] : memref<208x128xf32, #tpu.memory_space<vmem>>, vector<208x128xf32>
    %c0_2 = arith.constant 0 : index
    %c0_3 = arith.constant 0 : index
    %4 = vector.load %arg3[%c0_2, %c0_3] : memref<208x1024xbf16, #tpu.memory_space<vmem>>, vector<208x1024xbf16>
    %c0_4 = arith.constant 0 : index
    %c0_5 = arith.constant 0 : index
    %5 = vector.load %arg4[%c0_4, %c0_5] : memref<1024x128xbf16, #tpu.memory_space<vmem>>, vector<1024x128xbf16>
    %cst = arith.constant dense<0.000000e+00> : vector<208x128xf32>
    %6 = tpu.matmul %4, %5, %cst {dimension_numbers = #tpu.dot_dimension_numbers<[1], [0], [0], [1], [0, 0, 1, 1], [], []>} : vector<208x1024xbf16>, vector<1024x128xbf16>, vector<208x128xf32> -> vector<208x128xf32>
    %7 = arith.addf %3, %6 : vector<208x128xf32>
    %c0_6 = arith.constant 0 : index
    %c0_7 = arith.constant 0 : index
    %8 = vector.load %arg7[%c0_6, %c0_7] : memref<208x128xf32, #tpu.memory_space<vmem>>, vector<208x128xf32>
    tpu.vector_store %arg7[%c0_6, %c0_7], %7 {strides = array<i32>} : memref<208x128xf32, #tpu.memory_space<vmem>>, vector<208x128xf32>,
    %c0_i32_8 = arith.constant 0 : i32
    %9 = arith.cmpi eq, %arg2, %c0_i32_8 : i32
    %10 = arith.extui %9 : i1 to i32
    %c0_i32_9 = arith.constant 0 : i32
    %11 = arith.cmpi ne, %10, %c0_i32_9 : i32
    scf.if %11 {
      %c0_10 = arith.constant 0 : index
      %c0_11 = arith.constant 0 : index
      %12 = vector.load %arg7[%c0_10, %c0_11] : memref<208x128xf32, #tpu.memory_space<vmem>>, vector<208x128xf32>
      %c0_12 = arith.constant 0 : index
      %c0_13 = arith.constant 0 : index
      %13 = vector.load %arg5[%c0_12, %c0_13] : memref<1x128xf32, #tpu.memory_space<vmem>>, vector<1x128xf32>
      %14 = vector.broadcast %13 : vector<1x128xf32> to vector<208x128xf32>
      %15 = arith.addf %12, %14 : vector<208x128xf32>
      %cst_14 = arith.constant 0.000000e+00 : f32
      %16 = vector.broadcast %cst_14 : f32 to vector<208x128xf32>
      %17 = arith.cmpf oge, %15, %16 : vector<208x128xf32>
      %cst_15 = arith.constant 2.000000e-01 : f32
      %18 = vector.broadcast %cst_15 : f32 to vector<208x128xf32>
      %19 = arith.mulf %18, %15 : vector<208x128xf32>
      %20 = arith.select %17, %15, %19 : vector<208x128xi1>, vector<208x128xf32>
      %21 = arith.truncf %20 : vector<208x128xf32> to vector<208x128xbf16>
      %c0_16 = arith.constant 0 : index
      %c0_17 = arith.constant 0 : index
      %22 = vector.load %arg6[%c0_16, %c0_17] : memref<208x128xbf16, #tpu.memory_space<vmem>>, vector<208x128xbf16>
      tpu.vector_store %arg6[%c0_16, %c0_17], %21 {strides = array<i32>} : memref<208x128xbf16, #tpu.memory_space<vmem>>, vector<208x128xbf16>,
    } else {
    }
    return
  }
  func.func @transform_0(%arg0: i32, %arg1: i32, %arg2: i32) -> (i32, i32) {
    %c0_i32 = arith.constant 0 : i32
    return %arg0, %arg2 : i32, i32
  }
  func.func @transform_1(%arg0: i32, %arg1: i32, %arg2: i32) -> (i32, i32) {
    %c0_i32 = arith.constant 0 : i32
    return %arg2, %arg1 : i32, i32
  }
  func.func @transform_2(%arg0: i32, %arg1: i32, %arg2: i32) -> (i32, i32) {
    %c0_i32 = arith.constant 0 : i32
    %c0_i32_0 = arith.constant 0 : i32
    return %c0_i32, %arg1 : i32, i32
  }
  func.func @transform_3(%arg0: i32, %arg1: i32, %arg2: i32) -> (i32, i32) {
    %c0_i32 = arith.constant 0 : i32
    return %arg0, %arg1 : i32, i32
  }
}

module attributes {stable_mosaic.version = 11 : i64} {
  func.func @_matmul_bias_act_kernel(%arg0: i32, %arg1: i32, %arg2: i32, %arg3: memref<112x1024xbf16, #tpu.memory_space<vmem>>, %arg4: memref<1024x128xbf16, #tpu.memory_space<vmem>>, %arg5: memref<1x128xf32, #tpu.memory_space<vmem>>, %arg6: memref<112x128xbf16, #tpu.memory_space<vmem>>, %arg7: memref<112x128xf32, #tpu.memory_space<vmem>>) attributes {dimension_semantics = [#tpu.dimension_semantics<parallel>, #tpu.dimension_semantics<parallel>, #tpu.dimension_semantics<arbitrary>], iteration_bounds = array<i64: 1, 2, 2>, scalar_prefetch = 0 : i64, scratch_operands = 1 : i64, tpu.core_type = #tpu.core_type<tc>, window_params = [{transform_indices = @transform_0, window_bounds = array<i64: 112, 1024>}, {transform_indices = @transform_1, window_bounds = array<i64: 1024, 128>}, {transform_indices = @transform_2, window_bounds = array<i64: 1, 128>}, {transform_indices = @transform_3, window_bounds = array<i64: 112, 128>}]} {
    %c0_i32 = arith.constant 0 : i32
    %0 = arith.cmpi eq, %arg2, %c0_i32 : i32
    %1 = arith.extui %0 : i1 to i32
    %c0_i32_0 = arith.constant 0 : i32
    %2 = arith.cmpi ne, %1, %c0_i32_0 : i32
    scf.if %2 {
      %cst_9 = arith.constant 0.000000e+00 : f32
      %12 = vector.broadcast %cst_9 : f32 to vector<112x128xf32>
      %c0_10 = arith.constant 0 : index
      %c0_11 = arith.constant 0 : index
      %13 = vector.load %arg7[%c0_10, %c0_11] : memref<112x128xf32, #tpu.memory_space<vmem>>, vector<112x128xf32>
      tpu.vector_store %arg7[%c0_10, %c0_11], %12 {strides = array<i32>} : memref<112x128xf32, #tpu.memory_space<vmem>>, vector<112x128xf32>,
    } else {
    }
    %c0 = arith.constant 0 : index
    %c0_1 = arith.constant 0 : index
    %3 = vector.load %arg7[%c0, %c0_1] : memref<112x128xf32, #tpu.memory_space<vmem>>, vector<112x128xf32>
    %c0_2 = arith.constant 0 : index
    %c0_3 = arith.constant 0 : index
    %4 = vector.load %arg3[%c0_2, %c0_3] : memref<112x1024xbf16, #tpu.memory_space<vmem>>, vector<112x1024xbf16>
    %c0_4 = arith.constant 0 : index
    %c0_5 = arith.constant 0 : index
    %5 = vector.load %arg4[%c0_4, %c0_5] : memref<1024x128xbf16, #tpu.memory_space<vmem>>, vector<1024x128xbf16>
    %cst = arith.constant dense<0.000000e+00> : vector<112x128xf32>
    %6 = tpu.matmul %4, %5, %cst {dimension_numbers = #tpu.dot_dimension_numbers<[1], [0], [0], [1], [0, 0, 1, 1], [], []>} : vector<112x1024xbf16>, vector<1024x128xbf16>, vector<112x128xf32> -> vector<112x128xf32>
    %7 = arith.addf %3, %6 : vector<112x128xf32>
    %c0_6 = arith.constant 0 : index
    %c0_7 = arith.constant 0 : index
    %8 = vector.load %arg7[%c0_6, %c0_7] : memref<112x128xf32, #tpu.memory_space<vmem>>, vector<112x128xf32>
    tpu.vector_store %arg7[%c0_6, %c0_7], %7 {strides = array<i32>} : memref<112x128xf32, #tpu.memory_space<vmem>>, vector<112x128xf32>,
    %c1_i32 = arith.constant 1 : i32
    %9 = arith.cmpi eq, %arg2, %c1_i32 : i32
    %10 = arith.extui %9 : i1 to i32
    %c0_i32_8 = arith.constant 0 : i32
    %11 = arith.cmpi ne, %10, %c0_i32_8 : i32
    scf.if %11 {
      %c0_9 = arith.constant 0 : index
      %c0_10 = arith.constant 0 : index
      %12 = vector.load %arg7[%c0_9, %c0_10] : memref<112x128xf32, #tpu.memory_space<vmem>>, vector<112x128xf32>
      %c0_11 = arith.constant 0 : index
      %c0_12 = arith.constant 0 : index
      %13 = vector.load %arg5[%c0_11, %c0_12] : memref<1x128xf32, #tpu.memory_space<vmem>>, vector<1x128xf32>
      %14 = vector.broadcast %13 : vector<1x128xf32> to vector<112x128xf32>
      %15 = arith.addf %12, %14 : vector<112x128xf32>
      %cst_13 = arith.constant 0.000000e+00 : f32
      %16 = vector.broadcast %cst_13 : f32 to vector<112x128xf32>
      %17 = arith.cmpf oge, %15, %16 : vector<112x128xf32>
      %cst_14 = arith.constant 2.000000e-01 : f32
      %18 = vector.broadcast %cst_14 : f32 to vector<112x128xf32>
      %19 = arith.mulf %18, %15 : vector<112x128xf32>
      %20 = arith.select %17, %15, %19 : vector<112x128xi1>, vector<112x128xf32>
      %21 = arith.truncf %20 : vector<112x128xf32> to vector<112x128xbf16>
      %c0_15 = arith.constant 0 : index
      %c0_16 = arith.constant 0 : index
      %22 = vector.load %arg6[%c0_15, %c0_16] : memref<112x128xbf16, #tpu.memory_space<vmem>>, vector<112x128xbf16>
      tpu.vector_store %arg6[%c0_15, %c0_16], %21 {strides = array<i32>} : memref<112x128xbf16, #tpu.memory_space<vmem>>, vector<112x128xbf16>,
    } else {
    }
    return
  }
  func.func @transform_0(%arg0: i32, %arg1: i32, %arg2: i32) -> (i32, i32) {
    %c0_i32 = arith.constant 0 : i32
    return %arg0, %arg2 : i32, i32
  }
  func.func @transform_1(%arg0: i32, %arg1: i32, %arg2: i32) -> (i32, i32) {
    %c0_i32 = arith.constant 0 : i32
    return %arg2, %arg1 : i32, i32
  }
  func.func @transform_2(%arg0: i32, %arg1: i32, %arg2: i32) -> (i32, i32) {
    %c0_i32 = arith.constant 0 : i32
    %c0_i32_0 = arith.constant 0 : i32
    return %c0_i32, %arg1 : i32, i32
  }
  func.func @transform_3(%arg0: i32, %arg1: i32, %arg2: i32) -> (i32, i32) {
    %c0_i32 = arith.constant 0 : i32
    return %arg0, %arg1 : i32, i32
  }
}

module attributes {stable_mosaic.version = 11 : i64} {
  func.func @_gemv_bias_act_kernel(%arg0: i32, %arg1: memref<16x896xbf16, #tpu.memory_space<vmem>>, %arg2: memref<1x896xbf16, #tpu.memory_space<vmem>>, %arg3: memref<1x1xf32, #tpu.memory_space<vmem>>, %arg4: memref<16x1xf32, #tpu.memory_space<vmem>>, %arg5: memref<16x1xf32, #tpu.memory_space<vmem>>) attributes {dimension_semantics = [#tpu.dimension_semantics<arbitrary>], iteration_bounds = array<i64: 14>, scalar_prefetch = 0 : i64, scratch_operands = 1 : i64, tpu.core_type = #tpu.core_type<tc>, window_params = [{transform_indices = @transform_0, window_bounds = array<i64: 16, 896>}, {transform_indices = @transform_1, window_bounds = array<i64: 1, 896>}, {pipeline_mode = #tpu.pipeline_mode<synchronous>, transform_indices = @transform_2, window_bounds = array<i64: 1, 1>}, {pipeline_mode = #tpu.pipeline_mode<synchronous>, transform_indices = @transform_3, window_bounds = array<i64: 16, 1>}]} {
    %c0_i32 = arith.constant 0 : i32
    %0 = arith.cmpi eq, %arg0, %c0_i32 : i32
    %1 = arith.extui %0 : i1 to i32
    %c0_i32_0 = arith.constant 0 : i32
    %2 = arith.cmpi ne, %1, %c0_i32_0 : i32
    scf.if %2 {
      %cst_9 = arith.constant 0.000000e+00 : f32
      %17 = vector.broadcast %cst_9 : f32 to vector<16x1xf32>
      %c0_10 = arith.constant 0 : index
      %c0_11 = arith.constant 0 : index
      %18 = vector.load %arg5[%c0_10, %c0_11] : memref<16x1xf32, #tpu.memory_space<vmem>>, vector<16x1xf32>
      tpu.vector_store %arg5[%c0_10, %c0_11], %17 {strides = array<i32>} : memref<16x1xf32, #tpu.memory_space<vmem>>, vector<16x1xf32>,
    } else {
    }
    %c0 = arith.constant 0 : index
    %c0_1 = arith.constant 0 : index
    %3 = vector.load %arg1[%c0, %c0_1] : memref<16x896xbf16, #tpu.memory_space<vmem>>, vector<16x896xbf16>
    %4 = arith.extf %3 : vector<16x896xbf16> to vector<16x896xf32>
    %c0_2 = arith.constant 0 : index
    %c0_3 = arith.constant 0 : index
    %5 = vector.load %arg2[%c0_2, %c0_3] : memref<1x896xbf16, #tpu.memory_space<vmem>>, vector<1x896xbf16>
    %6 = arith.extf %5 : vector<1x896xbf16> to vector<1x896xf32>
    %7 = vector.broadcast %6 : vector<1x896xf32> to vector<16x896xf32>
    %8 = arith.mulf %4, %7 : vector<16x896xf32>
    %c0_4 = arith.constant 0 : index
    %c0_5 = arith.constant 0 : index
    %9 = vector.load %arg5[%c0_4, %c0_5] : memref<16x1xf32, #tpu.memory_space<vmem>>, vector<16x1xf32>
    %cst = arith.constant dense<0.000000e+00> : vector<16xf32>
    %10 = vector.multi_reduction <add>, %8, %cst [1] : vector<16x896xf32> to vector<16xf32>
    %11 = vector.shape_cast %10 : vector<16xf32> to vector<16x1xf32>
    %12 = arith.addf %9, %11 : vector<16x1xf32>
    %c0_6 = arith.constant 0 : index
    %c0_7 = arith.constant 0 : index
    %13 = vector.load %arg5[%c0_6, %c0_7] : memref<16x1xf32, #tpu.memory_space<vmem>>, vector<16x1xf32>
    tpu.vector_store %arg5[%c0_6, %c0_7], %12 {strides = array<i32>} : memref<16x1xf32, #tpu.memory_space<vmem>>, vector<16x1xf32>,
    %c13_i32 = arith.constant 13 : i32
    %14 = arith.cmpi eq, %arg0, %c13_i32 : i32
    %15 = arith.extui %14 : i1 to i32
    %c0_i32_8 = arith.constant 0 : i32
    %16 = arith.cmpi ne, %15, %c0_i32_8 : i32
    scf.if %16 {
      %c0_9 = arith.constant 0 : index
      %c0_10 = arith.constant 0 : index
      %17 = vector.load %arg5[%c0_9, %c0_10] : memref<16x1xf32, #tpu.memory_space<vmem>>, vector<16x1xf32>
      %c0_11 = arith.constant 0 : index
      %c0_12 = arith.constant 0 : index
      %18 = vector.load %arg3[%c0_11, %c0_12] : memref<1x1xf32, #tpu.memory_space<vmem>>, vector<1x1xf32>
      %19 = vector.broadcast %18 : vector<1x1xf32> to vector<16x1xf32>
      %20 = arith.addf %17, %19 : vector<16x1xf32>
      %21 = math.absf %20 : vector<16x1xf32>
      %cst_13 = arith.constant 0.000000e+00 : f32
      %22 = vector.broadcast %cst_13 : f32 to vector<16x1xf32>
      %23 = arith.subf %22, %21 : vector<16x1xf32>
      %24 = math.exp %23 : vector<16x1xf32>
      %cst_14 = arith.constant 0.000000e+00 : f32
      %25 = vector.broadcast %cst_14 : f32 to vector<16x1xf32>
      %26 = arith.cmpf oge, %20, %25 : vector<16x1xf32>
      %cst_15 = arith.constant 1.000000e+00 : f32
      %27 = vector.broadcast %cst_15 : f32 to vector<16x1xf32>
      %28 = arith.addf %27, %24 : vector<16x1xf32>
      %cst_16 = arith.constant 1.000000e+00 : f32
      %29 = vector.broadcast %cst_16 : f32 to vector<16x1xf32>
      %30 = arith.divf %29, %28 : vector<16x1xf32>
      %cst_17 = arith.constant 1.000000e+00 : f32
      %31 = vector.broadcast %cst_17 : f32 to vector<16x1xf32>
      %32 = arith.addf %31, %24 : vector<16x1xf32>
      %33 = arith.divf %24, %32 : vector<16x1xf32>
      %34 = arith.select %26, %30, %33 : vector<16x1xi1>, vector<16x1xf32>
      %c0_18 = arith.constant 0 : index
      %c0_19 = arith.constant 0 : index
      %35 = vector.load %arg4[%c0_18, %c0_19] : memref<16x1xf32, #tpu.memory_space<vmem>>, vector<16x1xf32>
      tpu.vector_store %arg4[%c0_18, %c0_19], %34 {strides = array<i32>} : memref<16x1xf32, #tpu.memory_space<vmem>>, vector<16x1xf32>,
    } else {
    }
    return
  }
  func.func @transform_0(%arg0: i32) -> (i32, i32) {
    %c0_i32 = arith.constant 0 : i32
    %c0_i32_0 = arith.constant 0 : i32
    return %c0_i32, %arg0 : i32, i32
  }
  func.func @transform_1(%arg0: i32) -> (i32, i32) {
    %c0_i32 = arith.constant 0 : i32
    %c0_i32_0 = arith.constant 0 : i32
    return %c0_i32, %arg0 : i32, i32
  }
  func.func @transform_2(%arg0: i32) -> (i32, i32) {
    %c0_i32 = arith.constant 0 : i32
    %c0_i32_0 = arith.constant 0 : i32
    %c0_i32_1 = arith.constant 0 : i32
    return %c0_i32, %c0_i32_0 : i32, i32
  }
  func.func @transform_3(%arg0: i32) -> (i32, i32) {
    %c0_i32 = arith.constant 0 : i32
    %c0_i32_0 = arith.constant 0 : i32
    %c0_i32_1 = arith.constant 0 : i32
    return %c0_i32, %c0_i32_0 : i32, i32
  }
}

</mosaic_0001>

<bundles_post_ra>
// kernel: forward.4
= control target key start
LH: loop header
LB: loop body
LE: loop exit
PB: predicated region body
PF: predicated region fallthrough
CT: control target
= control target key end

     0   :  { %s3611_s12 = smov 0   ;;  %s3613_s13 = smov 0   ;;  %s3999_s0 = inlined_call_operand.vmem [shape: bf16[1568,128], index: 0, kind: input, shape index: {}]   ;;  %s4000_s1 = inlined_call_operand.vmem [shape: bf16[128,128], index: 1, kind: input, shape index: {}]   ;;  %s4001_s2 = inlined_call_operand.vmem [shape: f32[1,128], index: 2, kind: input, shape index: {}]   ;;  %s4002_s3 = inlined_call_operand.vmem [shape: bf16[1568,128], index: 3, kind: output, shape index: {}]  }
   0x1   :  { %s3615_s14 = smov 0  }
   0x2 LB: > { %s32_s15 = sadd.s32 1, %s3583_s13  ;;  %p2644_p0 = scmp.ge.s32.totalorder %s3587_s14, 1  ;;  %s3587_s14 = sphi %s3615_s14, %s13_s14   ;;  %s3583_s13 = sphi %s3613_s13, %s4004_s13   ;;  %s3579_s12 = sphi %s3611_s12, %s4003_s12  }
   0x3   : > { %p34_p1 = scmp.ge.s32.totalorder %s32_s15, 2  ;;  %p188_p2 = scmp.lt.s32.totalorder %s3587_s14, 3 }
   0x5   : > { %s4006_s15 = smov (%p34_p1, %s32_s15), 0  ;;  %p189_p3 = pnand %p2644_p0, %p188_p2 }
   0x6   : > { %v3507_v0 = vld [vmem:[%s4000_s1] sm:$0xff] (!%p189_p3)   ;;  %v3589_v1 = vmov (!%p189_p3), 0.0   ;;  %v3508_v2 = vld [vmem:[%s4000_s1 + $0x8] sm:$0xff] (!%p189_p3)   ;;  %s229_s20 = smul.u32 (!%p189_p3), 98, %s3579_s12  ;;  %vm3590_vm0 = vmmov (!%p189_p3), 0   ;;  %v3509_v3 = vld [vmem:[%s4000_s1 + $0x10] sm:$0xff] (!%p189_p3)  }
   0x7   : > { %192 = sbr.rel (%p189_p3) target bundleno = 453 (0x1c5), region = 32  ;;  %3253 = vmatprep.subr.bf16.mxu0 (!%p189_p3), %v3589_v1  ;;  %3465 = vmatprep.subr.bf16.mxu1 (!%p189_p3), %v3589_v1  ;;  %v3510_v4 = vld [vmem:[%s4000_s1 + $0x18] sm:$0xff] (!%p189_p3)   ;;  %v3511_v5 = vld [vmem:[%s4000_s1 + $0x20] sm:$0xff] (!%p189_p3)   ;;  %v3512_v6 = vld [vmem:[%s4000_s1 + $0x28] sm:$0xff] (!%p189_p3)  }
   0x8   : > { %3254 = vmatpush3.bf16.msra.mxu0 (!%p189_p3), %v3507_v0  ;;  %3473 = vmatpush3.bf16.msra.mxu1 (!%p189_p3), %v3507_v0  ;;  %p230_p4 = scmp.lt.s32.totalorder (!%p189_p3), %s229_s20, 195  ;;  %v3513_v7 = vld [vmem:[%s4000_s1 + $0x30] sm:$0xff] (!%p189_p3)   ;;  %v3514_v8 = vld [vmem:[%s4000_s1 + $0x38] sm:$0xff] (!%p189_p3)   ;;  %v3829_v58 = vld [vmem:[%s4001_s2] ss:$0 sm:$0xff] (!%p189_p3) }
   0x9   : > { %3255 = vmatprep.subr.bf16.mxu0 (!%p189_p3), %v3589_v1  ;;  %3466 = vmatprep.subr.bf16.mxu1 (!%p189_p3), %v3589_v1 }
   0xa   : > { %3269 = vmatprep.mubr.msk.bf16.mxu0 (!%p189_p3), %vm3590_vm0, %v3589_v1  ;;  %3369 = vmatprep.mubr.msk.bf16.mxu1 (!%p189_p3), %vm3590_vm0, %v3589_v1 }
   0xc   : > { %3256 = vmatpush3.bf16.msra.mxu0 (!%p189_p3), %v3508_v2  ;;  %3474 = vmatpush3.bf16.msra.mxu1 (!%p189_p3), %v3508_v2 }
   0xd   : > { %3257 = vmatprep.subr.bf16.mxu0 (!%p189_p3), %v3589_v1  ;;  %3467 = vmatprep.subr.bf16.mxu1 (!%p189_p3), %v3589_v1 }
   0xe   : > { %s4008_s20 = smov (!%p230_p4, %s229_s20), 195 }
   0xf   : > { %s2645_s23 = sshll.u32 %s4008_s20, 2 }
  0x10   : > { %s3656_s26 = scalar_lea.vmem %s3999_s0, %s2645_s23  ;;  %3258 = vmatpush3.bf16.msra.mxu0 %v3509_v3  ;;  %3475 = vmatpush3.bf16.msra.mxu1 %v3509_v3  ;;  %s3840_s17 = scalar_lea.vmem %s4002_s3, %s2645_s23 }
  0x11   : > { %3259 = vmatprep.subr.bf16.mxu0 %v3589_v1  ;;  %3468 = vmatprep.subr.bf16.mxu1 %v3589_v1  ;;  %v3515_v9 = vld [vmem:[%s3656_s26] sm:$0xff]   ;;  %v3516_v10 = vld [vmem:[%s3656_s26 + $0xc8] sm:$0xff]   ;;  %v3518_v12 = vld [vmem:[%s3656_s26 + $0xd0] sm:$0xff]  }
  0x12   : > { %v3517_v11 = vld [vmem:[%s3656_s26 + $0x8] sm:$0xff]   ;;  %v3519_v13 = vld [vmem:[%s3656_s26 + $0x10] sm:$0xff]   ;;  %v3520_v14 = vld [vmem:[%s3656_s26 + $0xd8] sm:$0xff]  }
  0x13   : > { %v3521_v15 = vld [vmem:[%s3656_s26 + $0x18] sm:$0xff]   ;;  %v3522_v16 = vld [vmem:[%s3656_s26 + $0xe0] sm:$0xff]   ;;  %v3524_v18 = vld [vmem:[%s3656_s26 + $0xe8] sm:$0xff]  }
  0x14   : > { %3260 = vmatpush3.bf16.msra.mxu0 %v3510_v4  ;;  %3476 = vmatpush3.bf16.msra.mxu1 %v3510_v4  ;;  %v3523_v17 = vld [vmem:[%s3656_s26 + $0x20] sm:$0xff]   ;;  %v3525_v19 = vld [vmem:[%s3656_s26 + $0x28] sm:$0xff]   ;;  %v3526_v20 = vld [vmem:[%s3656_s26 + $0xf0] sm:$0xff]  }
  0x15   : > { %3261 = vmatprep.subr.bf16.mxu0 %v3589_v1  ;;  %3469 = vmatprep.subr.bf16.mxu1 %v3589_v1  ;;  %v3527_v21 = vld [vmem:[%s3656_s26 + $0x30] sm:$0xff]   ;;  %v3528_v22 = vld [vmem:[%s3656_s26 + $0xf8] sm:$0xff]   ;;  %v3530_v24 = vld [vmem:[%s3656_s26 + $0x100] sm:$0xff]  }
  0x16   : > { %v3529_v23 = vld [vmem:[%s3656_s26 + $0x38] sm:$0xff]   ;;  %v3531_v25 = vld [vmem:[%s3656_s26 + $0x40] sm:$0xff]   ;;  %v3532_v26 = vld [vmem:[%s3656_s26 + $0x108] sm:$0xff]  }
  0x17   : > { %v3533_v27 = vld [vmem:[%s3656_s26 + $0x48] sm:$0xff]   ;;  %v3534_v28 = vld [vmem:[%s3656_s26 + $0x110] sm:$0xff]   ;;  %v3536_v30 = vld [vmem:[%s3656_s26 + $0x118] sm:$0xff]  }
  0x18   : > { %3262 = vmatpush3.bf16.msra.mxu0 %v3511_v5  ;;  %3477 = vmatpush3.bf16.msra.mxu1 %v3511_v5  ;;  %v3535_v29 = vld [vmem:[%s3656_s26 + $0x50] sm:$0xff]   ;;  %v3537_v31 = vld [vmem:[%s3656_s26 + $0x58] sm:$0xff]   ;;  %v3538_v32 = vld [vmem:[%s3656_s26 + $0x120] sm:$0xff]  }
  0x19   : > { %3263 = vmatprep.subr.bf16.mxu0 %v3589_v1  ;;  %3470 = vmatprep.subr.bf16.mxu1 %v3589_v1  ;;  %v3539_v33 = vld [vmem:[%s3656_s26 + $0x60] sm:$0xff]   ;;  %v3540_v34 = vld [vmem:[%s3656_s26 + $0x128] sm:$0xff]   ;;  %v3542_v36 = vld [vmem:[%s3656_s26 + $0x130] sm:$0xff]  }
  0x1a   : > { %v3541_v35 = vld [vmem:[%s3656_s26 + $0x68] sm:$0xff]   ;;  %v3543_v37 = vld [vmem:[%s3656_s26 + $0x70] sm:$0xff]   ;;  %v3544_v38 = vld [vmem:[%s3656_s26 + $0x138] sm:$0xff]  }
  0x1b   : > { %v3545_v39 = vld [vmem:[%s3656_s26 + $0x78] sm:$0xff]   ;;  %v3546_v40 = vld [vmem:[%s3656_s26 + $0x140] sm:$0xff]   ;;  %v3548_v42 = vld [vmem:[%s3656_s26 + $0x148] sm:$0xff]  }
  0x1c   : > { %3264 = vmatpush3.bf16.msra.mxu0 %v3512_v6  ;;  %3478 = vmatpush3.bf16.msra.mxu1 %v3512_v6  ;;  %v3547_v41 = vld [vmem:[%s3656_s26 + $0x80] sm:$0xff]   ;;  %v3549_v43 = vld [vmem:[%s3656_s26 + $0x88] sm:$0xff]   ;;  %v3550_v44 = vld [vmem:[%s3656_s26 + $0x150] sm:$0xff]  }
  0x1d   : > { %3265 = vmatprep.subr.bf16.mxu0 %v3589_v1  ;;  %3471 = vmatprep.subr.bf16.mxu1 %v3589_v1  ;;  %v3551_v45 = vld [vmem:[%s3656_s26 + $0x90] sm:$0xff]   ;;  %v3552_v46 = vld [vmem:[%s3656_s26 + $0x158] sm:$0xff]   ;;  %v3554_v48 = vld [vmem:[%s3656_s26 + $0x160] sm:$0xff]  }
  0x1e   : > { %v3553_v47 = vld [vmem:[%s3656_s26 + $0x98] sm:$0xff]   ;;  %v3555_v49 = vld [vmem:[%s3656_s26 + $0xa0] sm:$0xff]   ;;  %v3556_v50 = vld [vmem:[%s3656_s26 + $0x168] sm:$0xff]  }
  0x1f   : > { %v3557_v51 = vld [vmem:[%s3656_s26 + $0xa8] sm:$0xff]   ;;  %v3558_v52 = vld [vmem:[%s3656_s26 + $0x170] sm:$0xff]   ;;  %v3560_v54 = vld [vmem:[%s3656_s26 + $0x178] sm:$0xff]  }
  0x20   : > { %3266 = vmatpush3.bf16.msra.mxu0 %v3513_v7  ;;  %3479 = vmatpush3.bf16.msra.mxu1 %v3513_v7  ;;  %v3559_v53 = vld [vmem:[%s3656_s26 + $0xb0] sm:$0xff]   ;;  %v3561_v55 = vld [vmem:[%s3656_s26 + $0xb8] sm:$0xff]   ;;  %v3562_v56 = vld [vmem:[%s3656_s26 + $0x180] sm:$0xff]  }
  0x21   : > { %3267 = vmatprep.subr.bf16.mxu0 %v3589_v1  ;;  %3472 = vmatprep.subr.bf16.mxu1 %v3589_v1  ;;  %v3563_v57 = vld [vmem:[%s3656_s26 + $0xc0] sm:$0xff]  }
  0x24   : > { %3268 = vmatpush3.bf16.msra.mxu0 %v3514_v8  ;;  %3480 = vmatpush3.bf16.msra.mxu1 %v3514_v8 }
  0x27   : > { %3270 = vmatmul.mubr.bf16.vlgmr.msra.gmra.mrb[0].mxu0 %v3515_v9  ;;  %3370 = vmatmul.mubr.bf16.vlgmr.msra.gmra.mrb[0].mxu1 %v3516_v10 }
  0x28   : > { %3273 = vmatprep.mubr.msk.bf16.mxu0 %vm3590_vm0, %v3589_v1  ;;  %3373 = vmatprep.mubr.msk.bf16.mxu1 %vm3590_vm0, %v3589_v1 }
  0x2f   : > { %3274 = vmatmul.mubr.bf16.gmra.mrb[4].mxu0 %v3517_v11  ;;  %3374 = vmatmul.mubr.bf16.gmra.mrb[4].mxu1 %v3518_v12 }
  0x30   : > { %3277 = vmatprep.mubr.msk.bf16.mxu0 %vm3590_vm0, %v3589_v1  ;;  %3377 = vmatprep.mubr.msk.bf16.mxu1 %vm3590_vm0, %v3589_v1 }
  0x37   : > { %3278 = vmatmul.mubr.bf16.gmra.mrb[8].mxu0 %v3519_v13  ;;  %3378 = vmatmul.mubr.bf16.gmra.mrb[8].mxu1 %v3520_v14 }
  0x38   : > { %3281 = vmatprep.mubr.msk.bf16.mxu0 %vm3590_vm0, %v3589_v1  ;;  %3381 = vmatprep.mubr.msk.bf16.mxu1 %vm3590_vm0, %v3589_v1 }
  0x3f   : > { %3282 = vmatmul.mubr.bf16.gmra.mrb[12].mxu0 %v3521_v15  ;;  %3382 = vmatmul.mubr.bf16.gmra.mrb[12].mxu1 %v3522_v16 }
  0x40   : > { %3285 = vmatprep.mubr.msk.bf16.mxu0 %vm3590_vm0, %v3589_v1  ;;  %3385 = vmatprep.mubr.msk.bf16.mxu1 %vm3590_vm0, %v3589_v1 }
  0x47   : > { %3286 = vmatmul.mubr.bf16.gmra.mrb[16].mxu0 %v3523_v17  ;;  %3386 = vmatmul.mubr.bf16.gmra.mrb[16].mxu1 %v3524_v18 }
  0x48   : > { %3289 = vmatprep.mubr.msk.bf16.mxu0 %vm3590_vm0, %v3589_v1  ;;  %3389 = vmatprep.mubr.msk.bf16.mxu1 %vm3590_vm0, %v3589_v1 }
  0x4f   : > { %3290 = vmatmul.mubr.bf16.gmra.mrb[20].mxu0 %v3525_v19  ;;  %3390 = vmatmul.mubr.bf16.gmra.mrb[20].mxu1 %v3526_v20 }
  0x50   : > { %3293 = vmatprep.mubr.msk.bf16.mxu0 %vm3590_vm0, %v3589_v1  ;;  %3393 = vmatprep.mubr.msk.bf16.mxu1 %vm3590_vm0, %v3589_v1 }
  0x57   : > { %3294 = vmatmul.mubr.bf16.gmra.mrb[24].mxu0 %v3527_v21  ;;  %3394 = vmatmul.mubr.bf16.gmra.mrb[24].mxu1 %v3528_v22 }
  0x58   : > { %3297 = vmatprep.mubr.msk.bf16.mxu0 %vm3590_vm0, %v3589_v1  ;;  %3397 = vmatprep.mubr.msk.bf16.mxu1 %vm3590_vm0, %v3589_v1 }
  0x5f   : > { %3298 = vmatmul.mubr.bf16.gmra.mrb[28].mxu0 %v3529_v23  ;;  %3398 = vmatmul.mubr.bf16.gmra.mrb[28].mxu1 %v3530_v24 }
  0x60   : > { %3301 = vmatprep.mubr.msk.bf16.mxu0 %vm3590_vm0, %v3589_v1  ;;  %3401 = vmatprep.mubr.msk.bf16.mxu1 %vm3590_vm0, %v3589_v1 }
  0x67   : > { %3302 = vmatmul.mubr.bf16.gmra.mrb[32].mxu0 %v3531_v25  ;;  %3402 = vmatmul.mubr.bf16.gmra.mrb[32].mxu1 %v3532_v26 }
  0x68   : > { %3305 = vmatprep.mubr.msk.bf16.mxu0 %vm3590_vm0, %v3589_v1  ;;  %3405 = vmatprep.mubr.msk.bf16.mxu1 %vm3590_vm0, %v3589_v1 }
  0x6f   : > { %3306 = vmatmul.mubr.bf16.gmra.mrb[36].mxu0 %v3533_v27  ;;  %3406 = vmatmul.mubr.bf16.gmra.mrb[36].mxu1 %v3534_v28 }
  0x70   : > { %3309 = vmatprep.mubr.msk.bf16.mxu0 %vm3590_vm0, %v3589_v1  ;;  %3409 = vmatprep.mubr.msk.bf16.mxu1 %vm3590_vm0, %v3589_v1 }
  0x77   : > { %3310 = vmatmul.mubr.bf16.gmra.mrb[40].mxu0 %v3535_v29  ;;  %3410 = vmatmul.mubr.bf16.gmra.mrb[40].mxu1 %v3536_v30 }
  0x78   : > { %3313 = vmatprep.mubr.msk.bf16.mxu0 %vm3590_vm0, %v3589_v1  ;;  %3413 = vmatprep.mubr.msk.bf16.mxu1 %vm3590_vm0, %v3589_v1 }
  0x7f   : > { %3314 = vmatmul.mubr.bf16.gmra.mrb[44].mxu0 %v3537_v31  ;;  %3414 = vmatmul.mubr.bf16.gmra.mrb[44].mxu1 %v3538_v32 }
  0x80   : > { %3317 = vmatprep.mubr.msk.bf16.mxu0 %vm3590_vm0, %v3589_v1  ;;  %3417 = vmatprep.mubr.msk.bf16.mxu1 %vm3590_vm0, %v3589_v1 }
  0x87   : > { %3318 = vmatmul.mubr.bf16.gmra.mrb[48].mxu0 %v3539_v33  ;;  %3418 = vmatmul.mubr.bf16.gmra.mrb[48].mxu1 %v3540_v34 }
  0x88   : > { %3321 = vmatprep.mubr.msk.bf16.mxu0 %vm3590_vm0, %v3589_v1  ;;  %3421 = vmatprep.mubr.msk.bf16.mxu1 %vm3590_vm0, %v3589_v1 }
  0x8f   : > { %3322 = vmatmul.mubr.bf16.gmra.mrb[52].mxu0 %v3541_v35  ;;  %3422 = vmatmul.mubr.bf16.gmra.mrb[52].mxu1 %v3542_v36 }
  0x90   : > { %3325 = vmatprep.mubr.msk.bf16.mxu0 %vm3590_vm0, %v3589_v1  ;;  %3425 = vmatprep.mubr.msk.bf16.mxu1 %vm3590_vm0, %v3589_v1 }
  0x97   : > { %3326 = vmatmul.mubr.bf16.gmra.mrb[56].mxu0 %v3543_v37  ;;  %3426 = vmatmul.mubr.bf16.gmra.mrb[56].mxu1 %v3544_v38 }
  0x98   : > { %3329 = vmatprep.mubr.msk.bf16.mxu0 %vm3590_vm0, %v3589_v1  ;;  %3429 = vmatprep.mubr.msk.bf16.mxu1 %vm3590_vm0, %v3589_v1 }
  0x9f   : > { %3330 = vmatmul.mubr.bf16.gmra.mrb[60].mxu0 %v3545_v39  ;;  %3430 = vmatmul.mubr.bf16.gmra.mrb[60].mxu1 %v3546_v40 }
  0xa0   : > { %3333 = vmatprep.mubr.msk.bf16.mxu0 %vm3590_vm0, %v3589_v1  ;;  %3433 = vmatprep.mubr.msk.bf16.mxu1 %vm3590_vm0, %v3589_v1 }
  0xa7   : > { %3334 = vmatmul.mubr.bf16.gmra.mrb[64].mxu0 %v3547_v41  ;;  %3434 = vmatmul.mubr.bf16.gmra.mrb[64].mxu1 %v3548_v42 }
  0xa8   : > { %3337 = vmatprep.mubr.msk.bf16.mxu0 %vm3590_vm0, %v3589_v1  ;;  %3437 = vmatprep.mubr.msk.bf16.mxu1 %vm3590_vm0, %v3589_v1 }
  0xaf   : > { %3338 = vmatmul.mubr.bf16.gmra.mrb[68].mxu0 %v3549_v43  ;;  %3438 = vmatmul.mubr.bf16.gmra.mrb[68].mxu1 %v3550_v44 }
  0xb0   : > { %3341 = vmatprep.mubr.msk.bf16.mxu0 %vm3590_vm0, %v3589_v1  ;;  %3441 = vmatprep.mubr.msk.bf16.mxu1 %vm3590_vm0, %v3589_v1 }
  0xb7   : > { %3342 = vmatmul.mubr.bf16.gmra.mrb[72].mxu0 %v3551_v45  ;;  %3442 = vmatmul.mubr.bf16.gmra.mrb[72].mxu1 %v3552_v46 }
  0xb8   : > { %3345 = vmatprep.mubr.msk.bf16.mxu0 %vm3590_vm0, %v3589_v1  ;;  %3445 = vmatprep.mubr.msk.bf16.mxu1 %vm3590_vm0, %v3589_v1 }
  0xbf   : > { %3346 = vmatmul.mubr.bf16.gmra.mrb[76].mxu0 %v3553_v47  ;;  %3446 = vmatmul.mubr.bf16.gmra.mrb[76].mxu1 %v3554_v48 }
  0xc0   : > { %3349 = vmatprep.mubr.msk.bf16.mxu0 %vm3590_vm0, %v3589_v1  ;;  %3449 = vmatprep.mubr.msk.bf16.mxu1 %vm3590_vm0, %v3589_v1 }
  0xc7   : > { %3350 = vmatmul.mubr.bf16.gmra.mrb[80].mxu0 %v3555_v49  ;;  %3450 = vmatmul.mubr.bf16.gmra.mrb[80].mxu1 %v3556_v50 }
  0xc8   : > { %3353 = vmatprep.mubr.msk.bf16.mxu0 %vm3590_vm0, %v3589_v1  ;;  %3453 = vmatprep.mubr.msk.bf16.mxu1 %vm3590_vm0, %v3589_v1 }
  0xcf   : > { %3354 = vmatmul.mubr.bf16.gmra.mrb[84].mxu0 %v3557_v51  ;;  %3454 = vmatmul.mubr.bf16.gmra.mrb[84].mxu1 %v3558_v52 }
  0xd0   : > { %3357 = vmatprep.mubr.msk.bf16.mxu0 %vm3590_vm0, %v3589_v1  ;;  %3457 = vmatprep.mubr.msk.bf16.mxu1 %vm3590_vm0, %v3589_v1 }
  0xd7   : > { %3358 = vmatmul.mubr.bf16.gmra.mrb[88].mxu0 %v3559_v53  ;;  %3458 = vmatmul.mubr.bf16.gmra.mrb[88].mxu1 %v3560_v54 }
  0xd8   : > { %3361 = vmatprep.mubr.msk.bf16.mxu0 %vm3590_vm0, %v3589_v1  ;;  %3461 = vmatprep.mubr.msk.bf16.mxu1 %vm3590_vm0, %v3589_v1 }
  0xdf   : > { %3362 = vmatmul.mubr.bf16.gmra.mrb[92].mxu0 %v3561_v55  ;;  %3462 = vmatmul.mubr.bf16.gmra.mrb[92].mxu1 %v3562_v56 }
  0xe0   : > { %3365 = vmatprep.mubr.msk.bf16.mxu0 %vm3590_vm0, %v3589_v1 }
  0xe7   : > { %3366 = vmatmul.mubr.bf16.gmra.mrb[96].mxu0 %v3563_v57 }
  0xfa   : > { %v950_v59 = vpop.f32.mrb[0].mxu0  ;;  %v1150_v60 = vpop.f32.mrb[0].mxu1 }
  0xfb   : > { %v1645_v61 = vadd.f32 %v3829_v58, %v950_v59  ;;  %v3271_v62 = vpop.f32.mrb[1].mxu0  ;;  %v1695_v63 = vadd.f32 %v3829_v58, %v1150_v60  ;;  %v3371_v0 = vpop.f32.mrb[1].mxu1 }
  0xfc   : > { %v953_v2 = vpop.f32.mrb[2].mxu0  ;;  %v1153_v3 = vpop.f32.mrb[2].mxu1 }
  0xfd   : > { %v1841_v4 = vmul.f32 0.2, %v1645_v61  ;;  %v1646_v1 = vadd.f32 %v3829_v58, %v953_v2  ;;  %v3272_v5 = vpop.f32.mrb[3].mxu0  ;;  %vm1793_vm1 = vcmp.ge.f32.partialorder %v1695_v63, 0.0  ;;  %v3372_v6 = vpop.f32.mrb[3].mxu1  ;;  %vm1743_vm2 = vcmp.ge.f32.partialorder %v1645_v61, 0.0 }
  0xfe   : > { %v1891_v7 = vmul.f32 0.2, %v1695_v63  ;;  %v1696_v8 = vadd.f32 %v3829_v58, %v1153_v3 }
  0xff   : > { %vm1744_vm3 = vcmp.ge.f32.partialorder %v1646_v1, 0.0  ;;  %v1842_v9 = vmul.f32 0.2, %v1646_v1  ;;  %v1939_v12 = vsel %vm1743_vm2, %v1645_v61, %v1841_v4 }
 0x100   : > { %v1989_v10 = vsel %vm1793_vm1, %v1695_v63, %v1891_v7  ;;  %vm1794_vm4 = vcmp.ge.f32.partialorder %v1696_v8, 0.0  ;;  %v1892_v11 = vmul.f32 0.2, %v1696_v8 }
 0x101   : > { %v1940_v13 = vsel %vm1744_vm3, %v1646_v1, %v1842_v9 }
 0x102   : > { %v2906_v14 = vpack.c.bf16 %v1940_v13, %v1939_v12  ;;  %v1990_v15 = vsel %vm1794_vm4, %v1696_v8, %v1892_v11  ;;  %v958_v16 = vpop.f32.mrb[4].mxu0  ;;  %v1158_v17 = vpop.f32.mrb[4].mxu1 }
 0x103   : > { %v3031_v18 = vpack.c.bf16 %v1990_v15, %v1989_v10  ;;  %v1647_v19 = vadd.f32 %v3829_v58, %v958_v16  ;;  %v3275_v20 = vpop.f32.mrb[5].mxu0  ;;  %v1697_v21 = vadd.f32 %v3829_v58, %v1158_v17  ;;  %v3375_v22 = vpop.f32.mrb[5].mxu1 }
 0x104   : > { %2907 = vst [vmem:[%s3840_s17] sm:$0xff] %v2906_v14   ;;  %v961_v23 = vpop.f32.mrb[6].mxu0  ;;  %v1161_v24 = vpop.f32.mrb[6].mxu1 }
 0x105   : > { %3172 = vst [vmem:[%s3840_s17 + $0xc8] sm:$0xff] %v3031_v18   ;;  %v1843_v25 = vmul.f32 0.2, %v1647_v19  ;;  %v1648_v26 = vadd.f32 %v3829_v58, %v961_v23  ;;  %v3276_v27 = vpop.f32.mrb[7].mxu0  ;;  %vm1795_vm5 = vcmp.ge.f32.partialorder %v1697_v21, 0.0  ;;  %v3376_v28 = vpop.f32.mrb[7].mxu1  ;;  %v1698_v30 = vadd.f32 %v3829_v58, %v1161_v24 }
 0x106   : > { %vm1745_vm6 = vcmp.ge.f32.partialorder %v1647_v19, 0.0  ;;  %v1893_v29 = vmul.f32 0.2, %v1697_v21 }
 0x107   : > { %vm1746_vm7 = vcmp.ge.f32.partialorder %v1648_v26, 0.0  ;;  %v1844_v31 = vmul.f32 0.2, %v1648_v26  ;;  %vm1796_vm8 = vcmp.ge.f32.partialorder %v1698_v30, 0.0  ;;  %v1894_v33 = vmul.f32 0.2, %v1698_v30 }
 0x108   : > { %v1991_v32 = vsel %vm1795_vm5, %v1697_v21, %v1893_v29  ;;  %v1941_v34 = vsel %vm1745_vm6, %v1647_v19, %v1843_v25 }
 0x109   : > { %v1942_v35 = vsel %vm1746_vm7, %v1648_v26, %v1844_v31  ;;  %v1992_v37 = vsel %vm1796_vm8, %v1698_v30, %v1894_v33 }
 0x10a   : > { %v2911_v36 = vpack.c.bf16 %v1942_v35, %v1941_v34  ;;  %v966_v38 = vpop.f32.mrb[8].mxu0  ;;  %v1166_v39 = vpop.f32.mrb[8].mxu1  ;;  %v3036_v40 = vpack.c.bf16 %v1992_v37, %v1991_v32 }
 0x10b   : > { %v1649_v41 = vadd.f32 %v3829_v58, %v966_v38  ;;  %v3279_v42 = vpop.f32.mrb[9].mxu0  ;;  %v1699_v43 = vadd.f32 %v3829_v58, %v1166_v39  ;;  %v3379_v44 = vpop.f32.mrb[9].mxu1 }
 0x10c   : > { %3148 = vst [vmem:[%s3840_s17 + $0x8] sm:$0xff] %v2911_v36   ;;  %v969_v45 = vpop.f32.mrb[10].mxu0  ;;  %v1169_v46 = vpop.f32.mrb[10].mxu1  ;;  %3173 = vst [vmem:[%s3840_s17 + $0xd0] sm:$0xff] %v3036_v40  }
 0x10d   : > { %v1845_v47 = vmul.f32 0.2, %v1649_v41  ;;  %v1650_v48 = vadd.f32 %v3829_v58, %v969_v45  ;;  %v3280_v49 = vpop.f32.mrb[11].mxu0  ;;  %vm1797_vm9 = vcmp.ge.f32.partialorder %v1699_v43, 0.0  ;;  %v3380_v50 = vpop.f32.mrb[11].mxu1  ;;  %vm1747_vm10 = vcmp.ge.f32.partialorder %v1649_v41, 0.0 }
 0x10e   : > { %v1895_v51 = vmul.f32 0.2, %v1699_v43  ;;  %v1700_v52 = vadd.f32 %v3829_v58, %v1169_v46 }
 0x10f   : > { %vm1748_vm11 = vcmp.ge.f32.partialorder %v1650_v48, 0.0  ;;  %v1846_v53 = vmul.f32 0.2, %v1650_v48  ;;  %v1943_v56 = vsel %vm1747_vm10, %v1649_v41, %v1845_v47 }
 0x110   : > { %v1993_v54 = vsel %vm1797_vm9, %v1699_v43, %v1895_v51  ;;  %vm1798_vm12 = vcmp.ge.f32.partialorder %v1700_v52, 0.0  ;;  %v1896_v55 = vmul.f32 0.2, %v1700_v52 }
 0x111   : > { %v1944_v57 = vsel %vm1748_vm11, %v1650_v48, %v1846_v53 }
 0x112   : > { %v2916_v59 = vpack.c.bf16 %v1944_v57, %v1943_v56  ;;  %v1994_v60 = vsel %vm1798_vm12, %v1700_v52, %v1896_v55  ;;  %v974_v61 = vpop.f32.mrb[12].mxu0  ;;  %v1174_v62 = vpop.f32.mrb[12].mxu1 }
 0x113   : > { %v3041_v63 = vpack.c.bf16 %v1994_v60, %v1993_v54  ;;  %v1651_v0 = vadd.f32 %v3829_v58, %v974_v61  ;;  %v3283_v2 = vpop.f32.mrb[13].mxu0  ;;  %v1701_v3 = vadd.f32 %v3829_v58, %v1174_v62  ;;  %v3383_v4 = vpop.f32.mrb[13].mxu1 }
 0x114   : > { %3149 = vst [vmem:[%s3840_s17 + $0x10] sm:$0xff] %v2916_v59   ;;  %v977_v1 = vpop.f32.mrb[14].mxu0  ;;  %v1177_v5 = vpop.f32.mrb[14].mxu1 }
 0x115   : > { %3174 = vst [vmem:[%s3840_s17 + $0xd8] sm:$0xff] %v3041_v63   ;;  %v1847_v6 = vmul.f32 0.2, %v1651_v0  ;;  %v1652_v7 = vadd.f32 %v3829_v58, %v977_v1  ;;  %v3284_v8 = vpop.f32.mrb[15].mxu0  ;;  %vm1799_vm13 = vcmp.ge.f32.partialorder %v1701_v3, 0.0  ;;  %v3384_v9 = vpop.f32.mrb[15].mxu1  ;;  %v1702_v11 = vadd.f32 %v3829_v58, %v1177_v5 }
 0x116   : > { %vm1749_vm14 = vcmp.ge.f32.partialorder %v1651_v0, 0.0  ;;  %v1897_v10 = vmul.f32 0.2, %v1701_v3 }
 0x117   : > { %vm1750_vm15 = vcmp.ge.f32.partialorder %v1652_v7, 0.0  ;;  %v1848_v12 = vmul.f32 0.2, %v1652_v7  ;;  %vm1800_vm0 = vcmp.ge.f32.partialorder %v1702_v11, 0.0  ;;  %v1898_v14 = vmul.f32 0.2, %v1702_v11 }
 0x118   : > { %v1995_v13 = vsel %vm1799_vm13, %v1701_v3, %v1897_v10  ;;  %v1945_v15 = vsel %vm1749_vm14, %v1651_v0, %v1847_v6 }
 0x119   : > { %v1946_v16 = vsel %vm1750_vm15, %v1652_v7, %v1848_v12  ;;  %v1996_v18 = vsel %vm1800_vm0, %v1702_v11, %v1898_v14 }
 0x11a   : > { %v2921_v17 = vpack.c.bf16 %v1946_v16, %v1945_v15  ;;  %v982_v19 = vpop.f32.mrb[16].mxu0  ;;  %v1182_v20 = vpop.f32.mrb[16].mxu1  ;;  %v3046_v21 = vpack.c.bf16 %v1996_v18, %v1995_v13 }
 0x11b   : > { %v1653_v22 = vadd.f32 %v3829_v58, %v982_v19  ;;  %v3287_v23 = vpop.f32.mrb[17].mxu0  ;;  %v1703_v24 = vadd.f32 %v3829_v58, %v1182_v20  ;;  %v3387_v25 = vpop.f32.mrb[17].mxu1 }
 0x11c   : > { %3150 = vst [vmem:[%s3840_s17 + $0x18] sm:$0xff] %v2921_v17   ;;  %v985_v26 = vpop.f32.mrb[18].mxu0  ;;  %v1185_v27 = vpop.f32.mrb[18].mxu1  ;;  %3175 = vst [vmem:[%s3840_s17 + $0xe0] sm:$0xff] %v3046_v21  }
 0x11d   : > { %v1849_v28 = vmul.f32 0.2, %v1653_v22  ;;  %v1654_v29 = vadd.f32 %v3829_v58, %v985_v26  ;;  %v3288_v30 = vpop.f32.mrb[19].mxu0  ;;  %vm1801_vm1 = vcmp.ge.f32.partialorder %v1703_v24, 0.0  ;;  %v3388_v31 = vpop.f32.mrb[19].mxu1  ;;  %vm1751_vm2 = vcmp.ge.f32.partialorder %v1653_v22, 0.0 }
 0x11e   : > { %v1899_v32 = vmul.f32 0.2, %v1703_v24  ;;  %v1704_v33 = vadd.f32 %v3829_v58, %v1185_v27 }
 0x11f   : > { %vm1752_vm3 = vcmp.ge.f32.partialorder %v1654_v29, 0.0  ;;  %v1850_v34 = vmul.f32 0.2, %v1654_v29  ;;  %v1947_v37 = vsel %vm1751_vm2, %v1653_v22, %v1849_v28 }
 0x120   : > { %v1997_v35 = vsel %vm1801_vm1, %v1703_v24, %v1899_v32  ;;  %vm1802_vm4 = vcmp.ge.f32.partialorder %v1704_v33, 0.0  ;;  %v1900_v36 = vmul.f32 0.2, %v1704_v33 }
 0x121   : > { %v1948_v38 = vsel %vm1752_vm3, %v1654_v29, %v1850_v34 }
 0x122   : > { %v2926_v39 = vpack.c.bf16 %v1948_v38, %v1947_v37  ;;  %v1998_v40 = vsel %vm1802_vm4, %v1704_v33, %v1900_v36  ;;  %v990_v41 = vpop.f32.mrb[20].mxu0  ;;  %v1190_v42 = vpop.f32.mrb[20].mxu1 }
 0x123   : > { %v3051_v43 = vpack.c.bf16 %v1998_v40, %v1997_v35  ;;  %v1655_v44 = vadd.f32 %v3829_v58, %v990_v41  ;;  %v3291_v45 = vpop.f32.mrb[21].mxu0  ;;  %v1705_v46 = vadd.f32 %v3829_v58, %v1190_v42  ;;  %v3391_v47 = vpop.f32.mrb[21].mxu1 }
 0x124   : > { %3151 = vst [vmem:[%s3840_s17 + $0x20] sm:$0xff] %v2926_v39   ;;  %v993_v48 = vpop.f32.mrb[22].mxu0  ;;  %v1193_v49 = vpop.f32.mrb[22].mxu1 }
 0x125   : > { %3176 = vst [vmem:[%s3840_s17 + $0xe8] sm:$0xff] %v3051_v43   ;;  %v1851_v50 = vmul.f32 0.2, %v1655_v44  ;;  %v1656_v51 = vadd.f32 %v3829_v58, %v993_v48  ;;  %v3292_v52 = vpop.f32.mrb[23].mxu0  ;;  %vm1803_vm5 = vcmp.ge.f32.partialorder %v1705_v46, 0.0  ;;  %v3392_v53 = vpop.f32.mrb[23].mxu1  ;;  %v1706_v55 = vadd.f32 %v3829_v58, %v1193_v49 }
 0x126   : > { %vm1753_vm6 = vcmp.ge.f32.partialorder %v1655_v44, 0.0  ;;  %v1901_v54 = vmul.f32 0.2, %v1705_v46 }
 0x127   : > { %vm1754_vm7 = vcmp.ge.f32.partialorder %v1656_v51, 0.0  ;;  %v1852_v56 = vmul.f32 0.2, %v1656_v51  ;;  %vm1804_vm8 = vcmp.ge.f32.partialorder %v1706_v55, 0.0  ;;  %v1902_v59 = vmul.f32 0.2, %v1706_v55 }
 0x128   : > { %v1999_v57 = vsel %vm1803_vm5, %v1705_v46, %v1901_v54  ;;  %v1949_v60 = vsel %vm1753_vm6, %v1655_v44, %v1851_v50 }
 0x129   : > { %v1950_v61 = vsel %vm1754_vm7, %v1656_v51, %v1852_v56  ;;  %v2000_v63 = vsel %vm1804_vm8, %v1706_v55, %v1902_v59 }
 0x12a   : > { %v2931_v62 = vpack.c.bf16 %v1950_v61, %v1949_v60  ;;  %v998_v0 = vpop.f32.mrb[24].mxu0  ;;  %v1198_v2 = vpop.f32.mrb[24].mxu1  ;;  %v3056_v3 = vpack.c.bf16 %v2000_v63, %v1999_v57 }
 0x12b   : > { %v1657_v4 = vadd.f32 %v3829_v58, %v998_v0  ;;  %v3295_v1 = vpop.f32.mrb[25].mxu0  ;;  %v1707_v5 = vadd.f32 %v3829_v58, %v1198_v2  ;;  %v3395_v6 = vpop.f32.mrb[25].mxu1 }
 0x12c   : > { %3152 = vst [vmem:[%s3840_s17 + $0x28] sm:$0xff] %v2931_v62   ;;  %v1001_v7 = vpop.f32.mrb[26].mxu0  ;;  %v1201_v8 = vpop.f32.mrb[26].mxu1  ;;  %3177 = vst [vmem:[%s3840_s17 + $0xf0] sm:$0xff] %v3056_v3  }
 0x12d   : > { %v1853_v9 = vmul.f32 0.2, %v1657_v4  ;;  %v1658_v10 = vadd.f32 %v3829_v58, %v1001_v7  ;;  %v3296_v11 = vpop.f32.mrb[27].mxu0  ;;  %vm1805_vm9 = vcmp.ge.f32.partialorder %v1707_v5, 0.0  ;;  %v3396_v12 = vpop.f32.mrb[27].mxu1  ;;  %vm1755_vm10 = vcmp.ge.f32.partialorder %v1657_v4, 0.0 }
 0x12e   : > { %v1903_v13 = vmul.f32 0.2, %v1707_v5  ;;  %v1708_v14 = vadd.f32 %v3829_v58, %v1201_v8 }
 0x12f   : > { %vm1756_vm11 = vcmp.ge.f32.partialorder %v1658_v10, 0.0  ;;  %v1854_v15 = vmul.f32 0.2, %v1658_v10  ;;  %v1951_v18 = vsel %vm1755_vm10, %v1657_v4, %v1853_v9 }
 0x130   : > { %v2001_v16 = vsel %vm1805_vm9, %v1707_v5, %v1903_v13  ;;  %vm1806_vm12 = vcmp.ge.f32.partialorder %v1708_v14, 0.0  ;;  %v1904_v17 = vmul.f32 0.2, %v1708_v14 }
 0x131   : > { %v1952_v19 = vsel %vm1756_vm11, %v1658_v10, %v1854_v15 }
 0x132   : > { %v2936_v20 = vpack.c.bf16 %v1952_v19, %v1951_v18  ;;  %v2002_v21 = vsel %vm1806_vm12, %v1708_v14, %v1904_v17  ;;  %v1006_v22 = vpop.f32.mrb[28].mxu0  ;;  %v1206_v23 = vpop.f32.mrb[28].mxu1 }
 0x133   : > { %v3061_v24 = vpack.c.bf16 %v2002_v21, %v2001_v16  ;;  %v1659_v25 = vadd.f32 %v3829_v58, %v1006_v22  ;;  %v3299_v26 = vpop.f32.mrb[29].mxu0  ;;  %v1709_v27 = vadd.f32 %v3829_v58, %v1206_v23  ;;  %v3399_v28 = vpop.f32.mrb[29].mxu1 }
 0x134   : > { %3153 = vst [vmem:[%s3840_s17 + $0x30] sm:$0xff] %v2936_v20   ;;  %v1009_v29 = vpop.f32.mrb[30].mxu0  ;;  %v1209_v30 = vpop.f32.mrb[30].mxu1 }
 0x135   : > { %3178 = vst [vmem:[%s3840_s17 + $0xf8] sm:$0xff] %v3061_v24   ;;  %v1855_v31 = vmul.f32 0.2, %v1659_v25  ;;  %v1660_v32 = vadd.f32 %v3829_v58, %v1009_v29  ;;  %v3300_v33 = vpop.f32.mrb[31].mxu0  ;;  %vm1807_vm13 = vcmp.ge.f32.partialorder %v1709_v27, 0.0  ;;  %v3400_v34 = vpop.f32.mrb[31].mxu1  ;;  %v1710_v36 = vadd.f32 %v3829_v58, %v1209_v30 }
 0x136   : > { %vm1757_vm14 = vcmp.ge.f32.partialorder %v1659_v25, 0.0  ;;  %v1905_v35 = vmul.f32 0.2, %v1709_v27 }
 0x137   : > { %vm1758_vm15 = vcmp.ge.f32.partialorder %v1660_v32, 0.0  ;;  %v1856_v37 = vmul.f32 0.2, %v1660_v32  ;;  %vm1808_vm0 = vcmp.ge.f32.partialorder %v1710_v36, 0.0  ;;  %v1906_v39 = vmul.f32 0.2, %v1710_v36 }
 0x138   : > { %v2003_v38 = vsel %vm1807_vm13, %v1709_v27, %v1905_v35  ;;  %v1953_v40 = vsel %vm1757_vm14, %v1659_v25, %v1855_v31 }
 0x139   : > { %v1954_v41 = vsel %vm1758_vm15, %v1660_v32, %v1856_v37  ;;  %v2004_v43 = vsel %vm1808_vm0, %v1710_v36, %v1906_v39 }
 0x13a   : > { %v2941_v42 = vpack.c.bf16 %v1954_v41, %v1953_v40  ;;  %v1014_v44 = vpop.f32.mrb[32].mxu0  ;;  %v1214_v45 = vpop.f32.mrb[32].mxu1  ;;  %v3066_v46 = vpack.c.bf16 %v2004_v43, %v2003_v38 }
 0x13b   : > { %v1661_v47 = vadd.f32 %v3829_v58, %v1014_v44  ;;  %v3303_v48 = vpop.f32.mrb[33].mxu0  ;;  %v1711_v49 = vadd.f32 %v3829_v58, %v1214_v45  ;;  %v3403_v50 = vpop.f32.mrb[33].mxu1 }
 0x13c   : > { %3154 = vst [vmem:[%s3840_s17 + $0x38] sm:$0xff] %v2941_v42   ;;  %v1017_v51 = vpop.f32.mrb[34].mxu0  ;;  %v1217_v52 = vpop.f32.mrb[34].mxu1  ;;  %3179 = vst [vmem:[%s3840_s17 + $0x100] sm:$0xff] %v3066_v46  }
 0x13d   : > { %v1857_v53 = vmul.f32 0.2, %v1661_v47  ;;  %v1662_v54 = vadd.f32 %v3829_v58, %v1017_v51  ;;  %v3304_v55 = vpop.f32.mrb[35].mxu0  ;;  %vm1809_vm1 = vcmp.ge.f32.partialorder %v1711_v49, 0.0  ;;  %v3404_v56 = vpop.f32.mrb[35].mxu1  ;;  %vm1759_vm2 = vcmp.ge.f32.partialorder %v1661_v47, 0.0 }
 0x13e   : > { %v1907_v57 = vmul.f32 0.2, %v1711_v49  ;;  %v1712_v59 = vadd.f32 %v3829_v58, %v1217_v52 }
 0x13f   : > { %vm1760_vm3 = vcmp.ge.f32.partialorder %v1662_v54, 0.0  ;;  %v1858_v60 = vmul.f32 0.2, %v1662_v54  ;;  %v1955_v63 = vsel %vm1759_vm2, %v1661_v47, %v1857_v53 }
 0x140   : > { %v2005_v61 = vsel %vm1809_vm1, %v1711_v49, %v1907_v57  ;;  %vm1810_vm4 = vcmp.ge.f32.partialorder %v1712_v59, 0.0  ;;  %v1908_v62 = vmul.f32 0.2, %v1712_v59 }
 0x141   : > { %v1956_v0 = vsel %vm1760_vm3, %v1662_v54, %v1858_v60 }
 0x142   : > { %v2946_v2 = vpack.c.bf16 %v1956_v0, %v1955_v63  ;;  %v2006_v3 = vsel %vm1810_vm4, %v1712_v59, %v1908_v62  ;;  %v1022_v4 = vpop.f32.mrb[36].mxu0  ;;  %v1222_v1 = vpop.f32.mrb[36].mxu1 }
 0x143   : > { %v3071_v5 = vpack.c.bf16 %v2006_v3, %v2005_v61  ;;  %v1663_v6 = vadd.f32 %v3829_v58, %v1022_v4  ;;  %v3307_v7 = vpop.f32.mrb[37].mxu0  ;;  %v1713_v8 = vadd.f32 %v3829_v58, %v1222_v1  ;;  %v3407_v9 = vpop.f32.mrb[37].mxu1 }
 0x144   : > { %3155 = vst [vmem:[%s3840_s17 + $0x40] sm:$0xff] %v2946_v2   ;;  %v1025_v10 = vpop.f32.mrb[38].mxu0  ;;  %v1225_v11 = vpop.f32.mrb[38].mxu1 }
 0x145   : > { %3180 = vst [vmem:[%s3840_s17 + $0x108] sm:$0xff] %v3071_v5   ;;  %v1859_v12 = vmul.f32 0.2, %v1663_v6  ;;  %v1664_v13 = vadd.f32 %v3829_v58, %v1025_v10  ;;  %v3308_v14 = vpop.f32.mrb[39].mxu0  ;;  %vm1811_vm5 = vcmp.ge.f32.partialorder %v1713_v8, 0.0  ;;  %v3408_v15 = vpop.f32.mrb[39].mxu1  ;;  %v1714_v17 = vadd.f32 %v3829_v58, %v1225_v11 }
 0x146   : > { %vm1761_vm6 = vcmp.ge.f32.partialorder %v1663_v6, 0.0  ;;  %v1909_v16 = vmul.f32 0.2, %v1713_v8 }
 0x147   : > { %vm1762_vm7 = vcmp.ge.f32.partialorder %v1664_v13, 0.0  ;;  %v1860_v18 = vmul.f32 0.2, %v1664_v13  ;;  %vm1812_vm8 = vcmp.ge.f32.partialorder %v1714_v17, 0.0  ;;  %v1910_v20 = vmul.f32 0.2, %v1714_v17 }
 0x148   : > { %v2007_v19 = vsel %vm1811_vm5, %v1713_v8, %v1909_v16  ;;  %v1957_v21 = vsel %vm1761_vm6, %v1663_v6, %v1859_v12 }
 0x149   : > { %v1958_v22 = vsel %vm1762_vm7, %v1664_v13, %v1860_v18  ;;  %v2008_v24 = vsel %vm1812_vm8, %v1714_v17, %v1910_v20 }
 0x14a   : > { %v2951_v23 = vpack.c.bf16 %v1958_v22, %v1957_v21  ;;  %v1030_v25 = vpop.f32.mrb[40].mxu0  ;;  %v1230_v26 = vpop.f32.mrb[40].mxu1  ;;  %v3076_v27 = vpack.c.bf16 %v2008_v24, %v2007_v19 }
 0x14b   : > { %v1665_v28 = vadd.f32 %v3829_v58, %v1030_v25  ;;  %v3311_v29 = vpop.f32.mrb[41].mxu0  ;;  %v1715_v30 = vadd.f32 %v3829_v58, %v1230_v26  ;;  %v3411_v31 = vpop.f32.mrb[41].mxu1 }
 0x14c   : > { %3156 = vst [vmem:[%s3840_s17 + $0x48] sm:$0xff] %v2951_v23   ;;  %v1033_v32 = vpop.f32.mrb[42].mxu0  ;;  %v1233_v33 = vpop.f32.mrb[42].mxu1  ;;  %3181 = vst [vmem:[%s3840_s17 + $0x110] sm:$0xff] %v3076_v27  }
 0x14d   : > { %v1861_v34 = vmul.f32 0.2, %v1665_v28  ;;  %v1666_v35 = vadd.f32 %v3829_v58, %v1033_v32  ;;  %v3312_v36 = vpop.f32.mrb[43].mxu0  ;;  %vm1813_vm9 = vcmp.ge.f32.partialorder %v1715_v30, 0.0  ;;  %v3412_v37 = vpop.f32.mrb[43].mxu1  ;;  %vm1763_vm10 = vcmp.ge.f32.partialorder %v1665_v28, 0.0 }
 0x14e   : > { %v1911_v38 = vmul.f32 0.2, %v1715_v30  ;;  %v1716_v39 = vadd.f32 %v3829_v58, %v1233_v33 }
 0x14f   : > { %vm1764_vm11 = vcmp.ge.f32.partialorder %v1666_v35, 0.0  ;;  %v1862_v40 = vmul.f32 0.2, %v1666_v35  ;;  %v1959_v43 = vsel %vm1763_vm10, %v1665_v28, %v1861_v34 }
 0x150   : > { %v2009_v41 = vsel %vm1813_vm9, %v1715_v30, %v1911_v38  ;;  %vm1814_vm12 = vcmp.ge.f32.partialorder %v1716_v39, 0.0  ;;  %v1912_v42 = vmul.f32 0.2, %v1716_v39 }
 0x151   : > { %v1960_v44 = vsel %vm1764_vm11, %v1666_v35, %v1862_v40 }
 0x152   : > { %v2956_v45 = vpack.c.bf16 %v1960_v44, %v1959_v43  ;;  %v2010_v46 = vsel %vm1814_vm12, %v1716_v39, %v1912_v42  ;;  %v1038_v47 = vpop.f32.mrb[44].mxu0  ;;  %v1238_v48 = vpop.f32.mrb[44].mxu1 }
 0x153   : > { %v3081_v49 = vpack.c.bf16 %v2010_v46, %v2009_v41  ;;  %v1667_v50 = vadd.f32 %v3829_v58, %v1038_v47  ;;  %v3315_v51 = vpop.f32.mrb[45].mxu0  ;;  %v1717_v52 = vadd.f32 %v3829_v58, %v1238_v48  ;;  %v3415_v53 = vpop.f32.mrb[45].mxu1 }
 0x154   : > { %3157 = vst [vmem:[%s3840_s17 + $0x50] sm:$0xff] %v2956_v45   ;;  %v1041_v54 = vpop.f32.mrb[46].mxu0  ;;  %v1241_v55 = vpop.f32.mrb[46].mxu1 }
 0x155   : > { %3182 = vst [vmem:[%s3840_s17 + $0x118] sm:$0xff] %v3081_v49   ;;  %v1863_v56 = vmul.f32 0.2, %v1667_v50  ;;  %v1668_v57 = vadd.f32 %v3829_v58, %v1041_v54  ;;  %v3316_v59 = vpop.f32.mrb[47].mxu0  ;;  %vm1815_vm13 = vcmp.ge.f32.partialorder %v1717_v52, 0.0  ;;  %v3416_v60 = vpop.f32.mrb[47].mxu1  ;;  %v1718_v62 = vadd.f32 %v3829_v58, %v1241_v55 }
 0x156   : > { %vm1765_vm14 = vcmp.ge.f32.partialorder %v1667_v50, 0.0  ;;  %v1913_v61 = vmul.f32 0.2, %v1717_v52 }
 0x157   : > { %vm1766_vm15 = vcmp.ge.f32.partialorder %v1668_v57, 0.0  ;;  %v1864_v63 = vmul.f32 0.2, %v1668_v57  ;;  %vm1816_vm0 = vcmp.ge.f32.partialorder %v1718_v62, 0.0  ;;  %v1914_v2 = vmul.f32 0.2, %v1718_v62 }
 0x158   : > { %v2011_v0 = vsel %vm1815_vm13, %v1717_v52, %v1913_v61  ;;  %v1961_v3 = vsel %vm1765_vm14, %v1667_v50, %v1863_v56 }
 0x159   : > { %v1962_v4 = vsel %vm1766_vm15, %v1668_v57, %v1864_v63  ;;  %v2012_v5 = vsel %vm1816_vm0, %v1718_v62, %v1914_v2 }
 0x15a   : > { %v2961_v1 = vpack.c.bf16 %v1962_v4, %v1961_v3  ;;  %v1046_v6 = vpop.f32.mrb[48].mxu0  ;;  %v1246_v7 = vpop.f32.mrb[48].mxu1  ;;  %v3086_v8 = vpack.c.bf16 %v2012_v5, %v2011_v0 }
 0x15b   : > { %v1669_v9 = vadd.f32 %v3829_v58, %v1046_v6  ;;  %v3319_v10 = vpop.f32.mrb[49].mxu0  ;;  %v1719_v11 = vadd.f32 %v3829_v58, %v1246_v7  ;;  %v3419_v12 = vpop.f32.mrb[49].mxu1 }
 0x15c   : > { %3158 = vst [vmem:[%s3840_s17 + $0x58] sm:$0xff] %v2961_v1   ;;  %v1049_v13 = vpop.f32.mrb[50].mxu0  ;;  %v1249_v14 = vpop.f32.mrb[50].mxu1  ;;  %3183 = vst [vmem:[%s3840_s17 + $0x120] sm:$0xff] %v3086_v8  }
 0x15d   : > { %v1865_v15 = vmul.f32 0.2, %v1669_v9  ;;  %v1670_v16 = vadd.f32 %v3829_v58, %v1049_v13  ;;  %v3320_v17 = vpop.f32.mrb[51].mxu0  ;;  %vm1817_vm1 = vcmp.ge.f32.partialorder %v1719_v11, 0.0  ;;  %v3420_v18 = vpop.f32.mrb[51].mxu1  ;;  %vm1767_vm2 = vcmp.ge.f32.partialorder %v1669_v9, 0.0 }
 0x15e   : > { %v1915_v19 = vmul.f32 0.2, %v1719_v11  ;;  %v1720_v20 = vadd.f32 %v3829_v58, %v1249_v14 }
 0x15f   : > { %vm1768_vm3 = vcmp.ge.f32.partialorder %v1670_v16, 0.0  ;;  %v1866_v21 = vmul.f32 0.2, %v1670_v16  ;;  %v1963_v24 = vsel %vm1767_vm2, %v1669_v9, %v1865_v15 }
 0x160   : > { %v2013_v22 = vsel %vm1817_vm1, %v1719_v11, %v1915_v19  ;;  %vm1818_vm4 = vcmp.ge.f32.partialorder %v1720_v20, 0.0  ;;  %v1916_v23 = vmul.f32 0.2, %v1720_v20 }
 0x161   : > { %v1964_v25 = vsel %vm1768_vm3, %v1670_v16, %v1866_v21 }
 0x162   : > { %v2966_v26 = vpack.c.bf16 %v1964_v25, %v1963_v24  ;;  %v2014_v27 = vsel %vm1818_vm4, %v1720_v20, %v1916_v23  ;;  %v1054_v28 = vpop.f32.mrb[52].mxu0  ;;  %v1254_v29 = vpop.f32.mrb[52].mxu1 }
 0x163   : > { %v3091_v30 = vpack.c.bf16 %v2014_v27, %v2013_v22  ;;  %v1671_v31 = vadd.f32 %v3829_v58, %v1054_v28  ;;  %v3323_v32 = vpop.f32.mrb[53].mxu0  ;;  %v1721_v33 = vadd.f32 %v3829_v58, %v1254_v29  ;;  %v3423_v34 = vpop.f32.mrb[53].mxu1 }
 0x164   : > { %3159 = vst [vmem:[%s3840_s17 + $0x60] sm:$0xff] %v2966_v26   ;;  %v1057_v35 = vpop.f32.mrb[54].mxu0  ;;  %v1257_v36 = vpop.f32.mrb[54].mxu1 }
 0x165   : > { %3184 = vst [vmem:[%s3840_s17 + $0x128] sm:$0xff] %v3091_v30   ;;  %v1867_v37 = vmul.f32 0.2, %v1671_v31  ;;  %v1672_v38 = vadd.f32 %v3829_v58, %v1057_v35  ;;  %v3324_v39 = vpop.f32.mrb[55].mxu0  ;;  %vm1819_vm5 = vcmp.ge.f32.partialorder %v1721_v33, 0.0  ;;  %v3424_v40 = vpop.f32.mrb[55].mxu1  ;;  %v1722_v42 = vadd.f32 %v3829_v58, %v1257_v36 }
 0x166   : > { %vm1769_vm6 = vcmp.ge.f32.partialorder %v1671_v31, 0.0  ;;  %v1917_v41 = vmul.f32 0.2, %v1721_v33 }
 0x167   : > { %vm1770_vm7 = vcmp.ge.f32.partialorder %v1672_v38, 0.0  ;;  %v1868_v43 = vmul.f32 0.2, %v1672_v38  ;;  %vm1820_vm8 = vcmp.ge.f32.partialorder %v1722_v42, 0.0  ;;  %v1918_v45 = vmul.f32 0.2, %v1722_v42 }
 0x168   : > { %v2015_v44 = vsel %vm1819_vm5, %v1721_v33, %v1917_v41  ;;  %v1965_v46 = vsel %vm1769_vm6, %v1671_v31, %v1867_v37 }
 0x169   : > { %v1966_v47 = vsel %vm1770_vm7, %v1672_v38, %v1868_v43  ;;  %v2016_v49 = vsel %vm1820_vm8, %v1722_v42, %v1918_v45 }
 0x16a   : > { %v2971_v48 = vpack.c.bf16 %v1966_v47, %v1965_v46  ;;  %v1062_v50 = vpop.f32.mrb[56].mxu0  ;;  %v1262_v51 = vpop.f32.mrb[56].mxu1  ;;  %v3096_v52 = vpack.c.bf16 %v2016_v49, %v2015_v44 }
 0x16b   : > { %v1673_v53 = vadd.f32 %v3829_v58, %v1062_v50  ;;  %v3327_v54 = vpop.f32.mrb[57].mxu0  ;;  %v1723_v55 = vadd.f32 %v3829_v58, %v1262_v51  ;;  %v3427_v56 = vpop.f32.mrb[57].mxu1 }
 0x16c   : > { %3160 = vst [vmem:[%s3840_s17 + $0x68] sm:$0xff] %v2971_v48   ;;  %v1065_v57 = vpop.f32.mrb[58].mxu0  ;;  %v1265_v59 = vpop.f32.mrb[58].mxu1  ;;  %3185 = vst [vmem:[%s3840_s17 + $0x130] sm:$0xff] %v3096_v52  }
 0x16d   : > { %v1869_v60 = vmul.f32 0.2, %v1673_v53  ;;  %v1674_v61 = vadd.f32 %v3829_v58, %v1065_v57  ;;  %v3328_v62 = vpop.f32.mrb[59].mxu0  ;;  %vm1821_vm9 = vcmp.ge.f32.partialorder %v1723_v55, 0.0  ;;  %v3428_v63 = vpop.f32.mrb[59].mxu1  ;;  %vm1771_vm10 = vcmp.ge.f32.partialorder %v1673_v53, 0.0 }
 0x16e   : > { %v1919_v0 = vmul.f32 0.2, %v1723_v55  ;;  %v1724_v2 = vadd.f32 %v3829_v58, %v1265_v59 }
 0x16f   : > { %vm1772_vm11 = vcmp.ge.f32.partialorder %v1674_v61, 0.0  ;;  %v1870_v3 = vmul.f32 0.2, %v1674_v61  ;;  %v1967_v5 = vsel %vm1771_vm10, %v1673_v53, %v1869_v60 }
 0x170   : > { %v2017_v4 = vsel %vm1821_vm9, %v1723_v55, %v1919_v0  ;;  %vm1822_vm12 = vcmp.ge.f32.partialorder %v1724_v2, 0.0  ;;  %v1920_v1 = vmul.f32 0.2, %v1724_v2 }
 0x171   : > { %v1968_v6 = vsel %vm1772_vm11, %v1674_v61, %v1870_v3 }
 0x172   : > { %v2976_v7 = vpack.c.bf16 %v1968_v6, %v1967_v5  ;;  %v2018_v8 = vsel %vm1822_vm12, %v1724_v2, %v1920_v1  ;;  %v1070_v9 = vpop.f32.mrb[60].mxu0  ;;  %v1270_v10 = vpop.f32.mrb[60].mxu1 }
 0x173   : > { %v3101_v11 = vpack.c.bf16 %v2018_v8, %v2017_v4  ;;  %v1675_v12 = vadd.f32 %v3829_v58, %v1070_v9  ;;  %v3331_v13 = vpop.f32.mrb[61].mxu0  ;;  %v1725_v14 = vadd.f32 %v3829_v58, %v1270_v10  ;;  %v3431_v15 = vpop.f32.mrb[61].mxu1 }
 0x174   : > { %3161 = vst [vmem:[%s3840_s17 + $0x70] sm:$0xff] %v2976_v7   ;;  %v1073_v16 = vpop.f32.mrb[62].mxu0  ;;  %v1273_v17 = vpop.f32.mrb[62].mxu1 }
 0x175   : > { %3186 = vst [vmem:[%s3840_s17 + $0x138] sm:$0xff] %v3101_v11   ;;  %v1871_v18 = vmul.f32 0.2, %v1675_v12  ;;  %v1676_v19 = vadd.f32 %v3829_v58, %v1073_v16  ;;  %v3332_v20 = vpop.f32.mrb[63].mxu0  ;;  %vm1823_vm13 = vcmp.ge.f32.partialorder %v1725_v14, 0.0  ;;  %v3432_v21 = vpop.f32.mrb[63].mxu1  ;;  %v1726_v23 = vadd.f32 %v3829_v58, %v1273_v17 }
 0x176   : > { %vm1773_vm14 = vcmp.ge.f32.partialorder %v1675_v12, 0.0  ;;  %v1921_v22 = vmul.f32 0.2, %v1725_v14 }
 0x177   : > { %vm1774_vm15 = vcmp.ge.f32.partialorder %v1676_v19, 0.0  ;;  %v1872_v24 = vmul.f32 0.2, %v1676_v19  ;;  %vm1824_vm0 = vcmp.ge.f32.partialorder %v1726_v23, 0.0  ;;  %v1922_v26 = vmul.f32 0.2, %v1726_v23 }
 0x178   : > { %v2019_v25 = vsel %vm1823_vm13, %v1725_v14, %v1921_v22  ;;  %v1969_v27 = vsel %vm1773_vm14, %v1675_v12, %v1871_v18  ;;  %v3951_v22 = vld [vmem:[%s4001_s2] ss:$0 sm:$0xff] }
 0x179   : > { %v1970_v28 = vsel %vm1774_vm15, %v1676_v19, %v1872_v24  ;;  %v2020_v30 = vsel %vm1824_vm0, %v1726_v23, %v1922_v26 }
 0x17a   : > { %v2981_v29 = vpack.c.bf16 %v1970_v28, %v1969_v27  ;;  %v1078_v31 = vpop.f32.mrb[64].mxu0  ;;  %v1278_v32 = vpop.f32.mrb[64].mxu1  ;;  %v3106_v33 = vpack.c.bf16 %v2020_v30, %v2019_v25 }
 0x17b   : > { %v1677_v34 = vadd.f32 %v3829_v58, %v1078_v31  ;;  %v3335_v35 = vpop.f32.mrb[65].mxu0  ;;  %v1727_v36 = vadd.f32 %v3829_v58, %v1278_v32  ;;  %v3435_v37 = vpop.f32.mrb[65].mxu1 }
 0x17c   : > { %3162 = vst [vmem:[%s3840_s17 + $0x78] sm:$0xff] %v2981_v29   ;;  %v1081_v38 = vpop.f32.mrb[66].mxu0  ;;  %v1281_v39 = vpop.f32.mrb[66].mxu1  ;;  %3187 = vst [vmem:[%s3840_s17 + $0x140] sm:$0xff] %v3106_v33  }
 0x17d   : > { %v1873_v40 = vmul.f32 0.2, %v1677_v34  ;;  %v1678_v41 = vadd.f32 %v3829_v58, %v1081_v38  ;;  %v3336_v42 = vpop.f32.mrb[67].mxu0  ;;  %vm1825_vm1 = vcmp.ge.f32.partialorder %v1727_v36, 0.0  ;;  %v3436_v43 = vpop.f32.mrb[67].mxu1  ;;  %vm1775_vm2 = vcmp.ge.f32.partialorder %v1677_v34, 0.0 }
 0x17e   : > { %v1923_v44 = vmul.f32 0.2, %v1727_v36  ;;  %v1728_v45 = vadd.f32 %v3829_v58, %v1281_v39 }
 0x17f   : > { %vm1776_vm3 = vcmp.ge.f32.partialorder %v1678_v41, 0.0  ;;  %v1874_v46 = vmul.f32 0.2, %v1678_v41  ;;  %v1971_v49 = vsel %vm1775_vm2, %v1677_v34, %v1873_v40 }
 0x180   : > { %v2021_v47 = vsel %vm1825_vm1, %v1727_v36, %v1923_v44  ;;  %vm1826_vm4 = vcmp.ge.f32.partialorder %v1728_v45, 0.0  ;;  %v1924_v48 = vmul.f32 0.2, %v1728_v45 }
 0x181   : > { %v1972_v50 = vsel %vm1776_vm3, %v1678_v41, %v1874_v46 }
 0x182   : > { %v2986_v51 = vpack.c.bf16 %v1972_v50, %v1971_v49  ;;  %v2022_v52 = vsel %vm1826_vm4, %v1728_v45, %v1924_v48  ;;  %v1086_v53 = vpop.f32.mrb[68].mxu0  ;;  %v1286_v54 = vpop.f32.mrb[68].mxu1 }
 0x183   : > { %v3111_v55 = vpack.c.bf16 %v2022_v52, %v2021_v47  ;;  %v1679_v56 = vadd.f32 %v3829_v58, %v1086_v53  ;;  %v3339_v57 = vpop.f32.mrb[69].mxu0  ;;  %v1729_v59 = vadd.f32 %v3829_v58, %v1286_v54  ;;  %v3439_v60 = vpop.f32.mrb[69].mxu1 }
 0x184   : > { %3163 = vst [vmem:[%s3840_s17 + $0x80] sm:$0xff] %v2986_v51   ;;  %v1089_v61 = vpop.f32.mrb[70].mxu0  ;;  %v1289_v62 = vpop.f32.mrb[70].mxu1 }
 0x185   : > { %3188 = vst [vmem:[%s3840_s17 + $0x148] sm:$0xff] %v3111_v55   ;;  %v1875_v63 = vmul.f32 0.2, %v1679_v56  ;;  %v1680_v0 = vadd.f32 %v3829_v58, %v1089_v61  ;;  %v3340_v2 = vpop.f32.mrb[71].mxu0  ;;  %vm1827_vm5 = vcmp.ge.f32.partialorder %v1729_v59, 0.0  ;;  %v3440_v3 = vpop.f32.mrb[71].mxu1  ;;  %v1730_v1 = vadd.f32 %v3829_v58, %v1289_v62 }
 0x186   : > { %vm1777_vm6 = vcmp.ge.f32.partialorder %v1679_v56, 0.0  ;;  %v1925_v4 = vmul.f32 0.2, %v1729_v59 }
 0x187   : > { %vm1778_vm7 = vcmp.ge.f32.partialorder %v1680_v0, 0.0  ;;  %v1876_v5 = vmul.f32 0.2, %v1680_v0  ;;  %vm1828_vm8 = vcmp.ge.f32.partialorder %v1730_v1, 0.0  ;;  %v1926_v7 = vmul.f32 0.2, %v1730_v1 }
 0x188   : > { %v2023_v6 = vsel %vm1827_vm5, %v1729_v59, %v1925_v4  ;;  %v1973_v8 = vsel %vm1777_vm6, %v1679_v56, %v1875_v63 }
 0x189   : > { %v1974_v9 = vsel %vm1778_vm7, %v1680_v0, %v1876_v5  ;;  %v2024_v11 = vsel %vm1828_vm8, %v1730_v1, %v1926_v7 }
 0x18a   : > { %v2991_v10 = vpack.c.bf16 %v1974_v9, %v1973_v8  ;;  %v1094_v12 = vpop.f32.mrb[72].mxu0  ;;  %v1294_v13 = vpop.f32.mrb[72].mxu1  ;;  %v3116_v14 = vpack.c.bf16 %v2024_v11, %v2023_v6 }
 0x18b   : > { %v1681_v15 = vadd.f32 %v3829_v58, %v1094_v12  ;;  %v3343_v16 = vpop.f32.mrb[73].mxu0  ;;  %v1731_v17 = vadd.f32 %v3829_v58, %v1294_v13  ;;  %v3443_v18 = vpop.f32.mrb[73].mxu1 }
 0x18c   : > { %3164 = vst [vmem:[%s3840_s17 + $0x88] sm:$0xff] %v2991_v10   ;;  %v1097_v19 = vpop.f32.mrb[74].mxu0  ;;  %v1297_v20 = vpop.f32.mrb[74].mxu1  ;;  %3189 = vst [vmem:[%s3840_s17 + $0x150] sm:$0xff] %v3116_v14  }
 0x18d   : > { %v1877_v21 = vmul.f32 0.2, %v1681_v15  ;;  %v1682_v23 = vadd.f32 %v3951_v22, %v1097_v19  ;;  %v3344_v24 = vpop.f32.mrb[75].mxu0  ;;  %vm1829_vm9 = vcmp.ge.f32.partialorder %v1731_v17, 0.0  ;;  %v3444_v25 = vpop.f32.mrb[75].mxu1  ;;  %vm1779_vm10 = vcmp.ge.f32.partialorder %v1681_v15, 0.0 }
 0x18e   : > { %v1927_v26 = vmul.f32 0.2, %v1731_v17  ;;  %v1732_v58 = vadd.f32 %v3951_v22, %v1297_v20 }
 0x18f   : > { %vm1780_vm11 = vcmp.ge.f32.partialorder %v1682_v23, 0.0  ;;  %v1878_v27 = vmul.f32 0.2, %v1682_v23  ;;  %v1975_v30 = vsel %vm1779_vm10, %v1681_v15, %v1877_v21 }
 0x190   : > { %v2025_v28 = vsel %vm1829_vm9, %v1731_v17, %v1927_v26  ;;  %vm1830_vm12 = vcmp.ge.f32.partialorder %v1732_v58, 0.0  ;;  %v1928_v29 = vmul.f32 0.2, %v1732_v58 }
 0x191   : > { %v1976_v31 = vsel %vm1780_vm11, %v1682_v23, %v1878_v27 }
 0x192   : > { %v2996_v32 = vpack.c.bf16 %v1976_v31, %v1975_v30  ;;  %v2026_v33 = vsel %vm1830_vm12, %v1732_v58, %v1928_v29  ;;  %v1102_v34 = vpop.f32.mrb[76].mxu0  ;;  %v1302_v35 = vpop.f32.mrb[76].mxu1 }
 0x193   : > { %v3121_v36 = vpack.c.bf16 %v2026_v33, %v2025_v28  ;;  %v1683_v37 = vadd.f32 %v3951_v22, %v1102_v34  ;;  %v3347_v38 = vpop.f32.mrb[77].mxu0  ;;  %v1733_v39 = vadd.f32 %v3951_v22, %v1302_v35  ;;  %v3447_v40 = vpop.f32.mrb[77].mxu1 }
 0x194   : > { %3165 = vst [vmem:[%s3840_s17 + $0x90] sm:$0xff] %v2996_v32   ;;  %v1105_v41 = vpop.f32.mrb[78].mxu0  ;;  %v1305_v42 = vpop.f32.mrb[78].mxu1 }
 0x195   : > { %3190 = vst [vmem:[%s3840_s17 + $0x158] sm:$0xff] %v3121_v36   ;;  %v1879_v43 = vmul.f32 0.2, %v1683_v37  ;;  %v1684_v44 = vadd.f32 %v3951_v22, %v1105_v41  ;;  %v3348_v45 = vpop.f32.mrb[79].mxu0  ;;  %vm1831_vm13 = vcmp.ge.f32.partialorder %v1733_v39, 0.0  ;;  %v3448_v46 = vpop.f32.mrb[79].mxu1  ;;  %v1734_v48 = vadd.f32 %v3951_v22, %v1305_v42 }
 0x196   : > { %vm1781_vm14 = vcmp.ge.f32.partialorder %v1683_v37, 0.0  ;;  %v1929_v47 = vmul.f32 0.2, %v1733_v39 }
 0x197   : > { %vm1782_vm15 = vcmp.ge.f32.partialorder %v1684_v44, 0.0  ;;  %v1880_v49 = vmul.f32 0.2, %v1684_v44  ;;  %vm1832_vm0 = vcmp.ge.f32.partialorder %v1734_v48, 0.0  ;;  %v1930_v51 = vmul.f32 0.2, %v1734_v48 }
 0x198   : > { %v2027_v50 = vsel %vm1831_vm13, %v1733_v39, %v1929_v47  ;;  %v1977_v52 = vsel %vm1781_vm14, %v1683_v37, %v1879_v43 }
 0x199   : > { %v1978_v53 = vsel %vm1782_vm15, %v1684_v44, %v1880_v49  ;;  %v2028_v55 = vsel %vm1832_vm0, %v1734_v48, %v1930_v51 }
 0x19a   : > { %v3001_v54 = vpack.c.bf16 %v1978_v53, %v1977_v52  ;;  %v1110_v56 = vpop.f32.mrb[80].mxu0  ;;  %v1310_v57 = vpop.f32.mrb[80].mxu1  ;;  %v3126_v59 = vpack.c.bf16 %v2028_v55, %v2027_v50 }
 0x19b   : > { %v1685_v60 = vadd.f32 %v3951_v22, %v1110_v56  ;;  %v3351_v61 = vpop.f32.mrb[81].mxu0  ;;  %v1735_v62 = vadd.f32 %v3951_v22, %v1310_v57  ;;  %v3451_v63 = vpop.f32.mrb[81].mxu1 }
 0x19c   : > { %3166 = vst [vmem:[%s3840_s17 + $0x98] sm:$0xff] %v3001_v54   ;;  %v1113_v0 = vpop.f32.mrb[82].mxu0  ;;  %v1313_v2 = vpop.f32.mrb[82].mxu1  ;;  %3191 = vst [vmem:[%s3840_s17 + $0x160] sm:$0xff] %v3126_v59  }
 0x19d   : > { %v1881_v3 = vmul.f32 0.2, %v1685_v60  ;;  %v1686_v4 = vadd.f32 %v3951_v22, %v1113_v0  ;;  %v3352_v1 = vpop.f32.mrb[83].mxu0  ;;  %vm1833_vm1 = vcmp.ge.f32.partialorder %v1735_v62, 0.0  ;;  %v3452_v5 = vpop.f32.mrb[83].mxu1  ;;  %vm1783_vm2 = vcmp.ge.f32.partialorder %v1685_v60, 0.0 }
 0x19e   : > { %v1931_v6 = vmul.f32 0.2, %v1735_v62  ;;  %v1736_v7 = vadd.f32 %v3951_v22, %v1313_v2 }
 0x19f   : > { %vm1784_vm3 = vcmp.ge.f32.partialorder %v1686_v4, 0.0  ;;  %v1882_v8 = vmul.f32 0.2, %v1686_v4  ;;  %v1979_v11 = vsel %vm1783_vm2, %v1685_v60, %v1881_v3 }
 0x1a0   : > { %v2029_v9 = vsel %vm1833_vm1, %v1735_v62, %v1931_v6  ;;  %vm1834_vm4 = vcmp.ge.f32.partialorder %v1736_v7, 0.0  ;;  %v1932_v10 = vmul.f32 0.2, %v1736_v7 }
 0x1a1   : > { %v1980_v12 = vsel %vm1784_vm3, %v1686_v4, %v1882_v8 }
 0x1a2   : > { %v3006_v13 = vpack.c.bf16 %v1980_v12, %v1979_v11  ;;  %v2030_v14 = vsel %vm1834_vm4, %v1736_v7, %v1932_v10  ;;  %v1118_v15 = vpop.f32.mrb[84].mxu0  ;;  %v1318_v16 = vpop.f32.mrb[84].mxu1 }
 0x1a3   : > { %v3131_v17 = vpack.c.bf16 %v2030_v14, %v2029_v9  ;;  %v1687_v18 = vadd.f32 %v3951_v22, %v1118_v15  ;;  %v3355_v19 = vpop.f32.mrb[85].mxu0  ;;  %v1737_v20 = vadd.f32 %v3951_v22, %v1318_v16  ;;  %v3455_v21 = vpop.f32.mrb[85].mxu1 }
 0x1a4   : > { %3167 = vst [vmem:[%s3840_s17 + $0xa0] sm:$0xff] %v3006_v13   ;;  %v1121_v23 = vpop.f32.mrb[86].mxu0  ;;  %v1321_v24 = vpop.f32.mrb[86].mxu1 }
 0x1a5   : > { %3192 = vst [vmem:[%s3840_s17 + $0x168] sm:$0xff] %v3131_v17   ;;  %v1883_v25 = vmul.f32 0.2, %v1687_v18  ;;  %v1688_v26 = vadd.f32 %v3951_v22, %v1121_v23  ;;  %v3356_v58 = vpop.f32.mrb[87].mxu0  ;;  %vm1835_vm5 = vcmp.ge.f32.partialorder %v1737_v20, 0.0  ;;  %v3456_v27 = vpop.f32.mrb[87].mxu1  ;;  %v1738_v29 = vadd.f32 %v3951_v22, %v1321_v24 }
 0x1a6   : > { %vm1785_vm6 = vcmp.ge.f32.partialorder %v1687_v18, 0.0  ;;  %v1933_v28 = vmul.f32 0.2, %v1737_v20 }
 0x1a7   : > { %vm1786_vm7 = vcmp.ge.f32.partialorder %v1688_v26, 0.0  ;;  %v1884_v30 = vmul.f32 0.2, %v1688_v26  ;;  %vm1836_vm8 = vcmp.ge.f32.partialorder %v1738_v29, 0.0  ;;  %v1934_v32 = vmul.f32 0.2, %v1738_v29 }
 0x1a8   : > { %v2031_v31 = vsel %vm1835_vm5, %v1737_v20, %v1933_v28  ;;  %v1981_v33 = vsel %vm1785_vm6, %v1687_v18, %v1883_v25 }
 0x1a9   : > { %v1982_v34 = vsel %vm1786_vm7, %v1688_v26, %v1884_v30  ;;  %v2032_v36 = vsel %vm1836_vm8, %v1738_v29, %v1934_v32 }
 0x1aa   : > { %v3011_v35 = vpack.c.bf16 %v1982_v34, %v1981_v33  ;;  %v1126_v37 = vpop.f32.mrb[88].mxu0  ;;  %v1326_v38 = vpop.f32.mrb[88].mxu1  ;;  %v3136_v39 = vpack.c.bf16 %v2032_v36, %v2031_v31 }
 0x1ab   : > { %v1689_v40 = vadd.f32 %v3951_v22, %v1126_v37  ;;  %v3359_v41 = vpop.f32.mrb[89].mxu0  ;;  %v1739_v42 = vadd.f32 %v3951_v22, %v1326_v38  ;;  %v3459_v43 = vpop.f32.mrb[89].mxu1 }
 0x1ac   : > { %3168 = vst [vmem:[%s3840_s17 + $0xa8] sm:$0xff] %v3011_v35   ;;  %v1129_v44 = vpop.f32.mrb[90].mxu0  ;;  %v1329_v45 = vpop.f32.mrb[90].mxu1  ;;  %3193 = vst [vmem:[%s3840_s17 + $0x170] sm:$0xff] %v3136_v39  }
 0x1ad   : > { %v1885_v46 = vmul.f32 0.2, %v1689_v40  ;;  %v1690_v47 = vadd.f32 %v3951_v22, %v1129_v44  ;;  %v3360_v48 = vpop.f32.mrb[91].mxu0  ;;  %vm1837_vm9 = vcmp.ge.f32.partialorder %v1739_v42, 0.0  ;;  %v3460_v49 = vpop.f32.mrb[91].mxu1  ;;  %vm1787_vm10 = vcmp.ge.f32.partialorder %v1689_v40, 0.0 }
 0x1ae   : > { %v1935_v50 = vmul.f32 0.2, %v1739_v42  ;;  %v1740_v51 = vadd.f32 %v3951_v22, %v1329_v45 }
 0x1af   : > { %vm1788_vm11 = vcmp.ge.f32.partialorder %v1690_v47, 0.0  ;;  %v1886_v52 = vmul.f32 0.2, %v1690_v47  ;;  %v1983_v55 = vsel %vm1787_vm10, %v1689_v40, %v1885_v46 }
 0x1b0   : > { %v2033_v53 = vsel %vm1837_vm9, %v1739_v42, %v1935_v50  ;;  %vm1838_vm12 = vcmp.ge.f32.partialorder %v1740_v51, 0.0  ;;  %v1936_v54 = vmul.f32 0.2, %v1740_v51 }
 0x1b1   : > { %v1984_v56 = vsel %vm1788_vm11, %v1690_v47, %v1886_v52 }
 0x1b2   : > { %v3016_v57 = vpack.c.bf16 %v1984_v56, %v1983_v55  ;;  %v2034_v59 = vsel %vm1838_vm12, %v1740_v51, %v1936_v54  ;;  %v1134_v60 = vpop.f32.mrb[92].mxu0  ;;  %v1334_v61 = vpop.f32.mrb[92].mxu1 }
 0x1b3   : > { %v3141_v62 = vpack.c.bf16 %v2034_v59, %v2033_v53  ;;  %v1691_v63 = vadd.f32 %v3951_v22, %v1134_v60  ;;  %v3363_v0 = vpop.f32.mrb[93].mxu0  ;;  %v1741_v2 = vadd.f32 %v3951_v22, %v1334_v61  ;;  %v3463_v3 = vpop.f32.mrb[93].mxu1 }
 0x1b4   : > { %3169 = vst [vmem:[%s3840_s17 + $0xb0] sm:$0xff] %v3016_v57   ;;  %v1137_v4 = vpop.f32.mrb[94].mxu0  ;;  %v1337_v1 = vpop.f32.mrb[94].mxu1 }
 0x1b5   : > { %3194 = vst [vmem:[%s3840_s17 + $0x178] sm:$0xff] %v3141_v62   ;;  %v1887_v5 = vmul.f32 0.2, %v1691_v63  ;;  %v1692_v6 = vadd.f32 %v3951_v22, %v1137_v4  ;;  %v3364_v7 = vpop.f32.mrb[95].mxu0  ;;  %vm1839_vm13 = vcmp.ge.f32.partialorder %v1741_v2, 0.0  ;;  %v3464_v8 = vpop.f32.mrb[95].mxu1  ;;  %v1742_v10 = vadd.f32 %v3951_v22, %v1337_v1 }
 0x1b6   : > { %vm1789_vm14 = vcmp.ge.f32.partialorder %v1691_v63, 0.0  ;;  %v1937_v9 = vmul.f32 0.2, %v1741_v2 }
 0x1b7   : > { %vm1790_vm15 = vcmp.ge.f32.partialorder %v1692_v6, 0.0  ;;  %v1888_v11 = vmul.f32 0.2, %v1692_v6  ;;  %vm1840_vm0 = vcmp.ge.f32.partialorder %v1742_v10, 0.0  ;;  %v1938_v13 = vmul.f32 0.2, %v1742_v10 }
 0x1b8   : > { %v2035_v12 = vsel %vm1839_vm13, %v1741_v2, %v1937_v9  ;;  %v1985_v14 = vsel %vm1789_vm14, %v1691_v63, %v1887_v5 }
 0x1b9   : > { %v1986_v15 = vsel %vm1790_vm15, %v1692_v6, %v1888_v11  ;;  %v2036_v17 = vsel %vm1840_vm0, %v1742_v10, %v1938_v13 }
 0x1ba   : > { %v3021_v16 = vpack.c.bf16 %v1986_v15, %v1985_v14  ;;  %v1142_v18 = vpop.f32.mrb[96].mxu0  ;;  %v3146_v19 = vpack.c.bf16 %v2036_v17, %v2035_v12 }
 0x1bb   : > { %v1693_v20 = vadd.f32 %v3951_v22, %v1142_v18  ;;  %v3367_v21 = vpop.f32.mrb[97].mxu0 }
 0x1bc   : > { %3170 = vst [vmem:[%s3840_s17 + $0xb8] sm:$0xff] %v3021_v16   ;;  %v1145_v23 = vpop.f32.mrb[98].mxu0  ;;  %3195 = vst [vmem:[%s3840_s17 + $0x180] sm:$0xff] %v3146_v19  }
 0x1bd   : > { %v1889_v24 = vmul.f32 0.2, %v1693_v20  ;;  %v1694_v25 = vadd.f32 %v3951_v22, %v1145_v23  ;;  %v3368_v26 = vpop.f32.mrb[99].mxu0  ;;  %vm1791_vm1 = vcmp.ge.f32.partialorder %v1693_v20, 0.0 }
 0x1bf   : > { %vm1792_vm2 = vcmp.ge.f32.partialorder %v1694_v25, 0.0  ;;  %v1890_v58 = vmul.f32 0.2, %v1694_v25  ;;  %v1987_v27 = vsel %vm1791_vm1, %v1693_v20, %v1889_v24 }
 0x1c1   : > { %v1988_v28 = vsel %vm1792_vm2, %v1694_v25, %v1890_v58 }
 0x1c2   : > { %v3026_v29 = vpack.c.bf16 %v1988_v28, %v1987_v27 }
 0x1c4   : > { %3171 = vst [vmem:[%s3840_s17 + $0xc0] sm:$0xff] %v3026_v29  }
 0x1c5 PF: > { %s13_s14 = sadd.s32 1, %s3587_s14   ;;  %s4003_s12 = smov %s3583_s13 }
 0x1c6   : > { %p10_p5 = scmp.ge.s32.totalorder %s13_s14, 4   ;;  %s4004_s13 = smov %s4006_s15 }
 0x1c8   :  { %12 = sbr.rel (!%p10_p5) target bundleno = 2 (0x2), region = 76 }

// kernel: forward.5
= control target key start
LH: loop header
LB: loop body
LE: loop exit
PB: predicated region body
PF: predicated region fallthrough
CT: control target
= control target key end

     0   :  { %s3263_s12 = smov 0   ;;  %s3265_s13 = smov 0   ;;  %s3725_s0 = inlined_call_operand.vmem [shape: bf16[416,1024], index: 0, kind: input, shape index: {}]   ;;  %s3726_s1 = inlined_call_operand.vmem [shape: bf16[1024,128], index: 1, kind: input, shape index: {}]   ;;  %s3727_s2 = inlined_call_operand.vmem [shape: f32[1,128], index: 2, kind: input, shape index: {}]   ;;  %s3728_s3 = inlined_call_operand.vmem [shape: bf16[416,128], index: 3, kind: output, shape index: {}]  }
   0x1   :  { %s3267_s14 = smov 0  }
   0x2 LB: > { %s32_s15 = sadd.s32 1, %s3237_s13  ;;  %p2450_p0 = scmp.ge.s32.totalorder %s3241_s14, 1  ;;  %s3241_s14 = sphi %s3267_s14, %s13_s14   ;;  %s3237_s13 = sphi %s3265_s13, %s3730_s13   ;;  %s3233_s12 = sphi %s3263_s12, %s3729_s12  }
   0x3   : > { %p34_p1 = scmp.ge.s32.totalorder %s32_s15, 2  ;;  %p191_p2 = scmp.lt.s32.totalorder %s3241_s14, 3 }
   0x5   : > { %s3732_s15 = smov (%p34_p1, %s32_s15), 0  ;;  %p192_p3 = pnand %p2450_p0, %p191_p2 }
   0x6   : > { %v3155_v0 = vld [vmem:[%s3726_s1 + $0x40] sm:$0xff] (!%p192_p3)   ;;  %v3159_v4 = vld [vmem:[%s3726_s1 + $0x48] sm:$0xff] (!%p192_p3)   ;;  %v3163_v8 = vld [vmem:[%s3726_s1 + $0x50] sm:$0xff] (!%p192_p3)   ;;  %s234_s23 = smul.u32 (!%p192_p3), 26, %s3233_s12 }
   0x7   : > { %195 = sbr.rel (%p192_p3) target bundleno = 469 (0x1d5), region = 32  ;;  %v3156_v1 = vld [vmem:[%s3726_s1 + $0xc0] sm:$0xff] (!%p192_p3)   ;;  %2755 = vmatprep.subr.bf16.mxu0 (!%p192_p3), %v3155_v0  ;;  %v3160_v5 = vld [vmem:[%s3726_s1 + $0xc8] sm:$0xff] (!%p192_p3)   ;;  %v3164_v9 = vld [vmem:[%s3726_s1 + $0xd0] sm:$0xff] (!%p192_p3)  }
   0x8   : > { %v3157_v2 = vld [vmem:[%s3726_s1] sm:$0xff] (!%p192_p3)   ;;  %2849 = vmatprep.subr.bf16.mxu1 (!%p192_p3), %v3156_v1  ;;  %v3161_v6 = vld [vmem:[%s3726_s1 + $0x8] sm:$0xff] (!%p192_p3)   ;;  %v3165_v10 = vld [vmem:[%s3726_s1 + $0x10] sm:$0xff] (!%p192_p3)   ;;  %p236_p4 = scmp.lt.s32.totalorder (!%p192_p3), %s234_s23, 51 }
   0x9   : > { %v3158_v3 = vld [vmem:[%s3726_s1 + $0x80] sm:$0xff] (!%p192_p3)   ;;  %2756 = vmatpush3.bf16.msra.mxu0 (!%p192_p3), %v3157_v2  ;;  %v3162_v7 = vld [vmem:[%s3726_s1 + $0x88] sm:$0xff] (!%p192_p3)   ;;  %v3166_v11 = vld [vmem:[%s3726_s1 + $0x90] sm:$0xff] (!%p192_p3)  }
   0xa   : > { %2850 = vmatpush3.bf16.msra.mxu1 (!%p192_p3), %v3158_v3  ;;  %2757 = vmatprep.subr.bf16.mxu0 (!%p192_p3), %v3159_v4  ;;  %v3167_v12 = vld [vmem:[%s3726_s1 + $0x58] sm:$0xff] (!%p192_p3)   ;;  %v3171_v16 = vld [vmem:[%s3726_s1 + $0x60] sm:$0xff] (!%p192_p3)   ;;  %v3175_v20 = vld [vmem:[%s3726_s1 + $0x68] sm:$0xff] (!%p192_p3)  }
   0xb   : > { %2851 = vmatprep.subr.bf16.mxu1 (!%p192_p3), %v3160_v5  ;;  %v3168_v13 = vld [vmem:[%s3726_s1 + $0xd8] sm:$0xff] (!%p192_p3)   ;;  %v3172_v17 = vld [vmem:[%s3726_s1 + $0xe0] sm:$0xff] (!%p192_p3)   ;;  %v3176_v21 = vld [vmem:[%s3726_s1 + $0xe8] sm:$0xff] (!%p192_p3)  }
   0xc   : > { %v3169_v14 = vld [vmem:[%s3726_s1 + $0x18] sm:$0xff] (!%p192_p3)   ;;  %v3173_v18 = vld [vmem:[%s3726_s1 + $0x20] sm:$0xff] (!%p192_p3)   ;;  %v3177_v22 = vld [vmem:[%s3726_s1 + $0x28] sm:$0xff] (!%p192_p3)  }
   0xd   : > { %2758 = vmatpush3.bf16.msra.mxu0 (!%p192_p3), %v3161_v6  ;;  %v3170_v15 = vld [vmem:[%s3726_s1 + $0x98] sm:$0xff] (!%p192_p3)   ;;  %v3174_v19 = vld [vmem:[%s3726_s1 + $0xa0] sm:$0xff] (!%p192_p3)   ;;  %v3178_v23 = vld [vmem:[%s3726_s1 + $0xa8] sm:$0xff] (!%p192_p3)  }
   0xe   : > { %2852 = vmatpush3.bf16.msra.mxu1 %v3162_v7  ;;  %2759 = vmatprep.subr.bf16.mxu0 %v3163_v8  ;;  %s3734_s23 = smov (!%p236_p4, %s234_s23), 51  ;;  %v3179_v24 = vld [vmem:[%s3726_s1 + $0x70] sm:$0xff]   ;;  %v3183_v28 = vld [vmem:[%s3726_s1 + $0x78] sm:$0xff]   ;;  %v3187_v40 = vld [vmem:[%s3726_s1 + $0x140] sm:$0xff]  }
   0xf   : > { %2853 = vmatprep.subr.bf16.mxu1 %v3164_v9  ;;  %v3180_v25 = vld [vmem:[%s3726_s1 + $0xf0] sm:$0xff]   ;;  %s2651_s25 = sshll.u32 %s3734_s23, 5  ;;  %v3184_v29 = vld [vmem:[%s3726_s1 + $0xf8] sm:$0xff]   ;;  %v3188_v41 = vld [vmem:[%s3726_s1 + $0x100] sm:$0xff]   ;;  %s2453_s10 = sshll.u32 %s3734_s23, 2 }
  0x10   : > { %v3181_v26 = vld [vmem:[%s3726_s1 + $0x30] sm:$0xff]   ;;  %s3380_s6 = scalar_lea.vmem %s3725_s0, %s2651_s25  ;;  %v3185_v30 = vld [vmem:[%s3726_s1 + $0x38] sm:$0xff]   ;;  %v3189_v42 = vld [vmem:[%s3726_s1 + $0x1c0] sm:$0xff]   ;;  %s3654_s17 = scalar_lea.vmem %s3728_s3, %s2453_s10 }
  0x11   : > { %2760 = vmatpush3.bf16.msra.mxu0 %v3165_v10  ;;  %v3182_v27 = vld [vmem:[%s3726_s1 + $0xb0] sm:$0xff]   ;;  %v3186_v31 = vld [vmem:[%s3726_s1 + $0xb8] sm:$0xff]   ;;  %v324_v32 = vld [vmem:[%s3380_s6] sm:$0xff] }
  0x12   : > { %2854 = vmatpush3.bf16.msra.mxu1 %v3166_v11  ;;  %2761 = vmatprep.subr.bf16.mxu0 %v3167_v12  ;;  %v328_v33 = vld [vmem:[%s3380_s6 + $0x20] sm:$0xff]  ;;  %v325_v34 = vld [vmem:[%s3380_s6 + $0x8] sm:$0xff]  ;;  %v3195_v2 = vld [vmem:[%s3726_s1 + $0x150] sm:$0xff]  }
  0x13   : > { %2855 = vmatprep.subr.bf16.mxu1 %v3168_v13  ;;  %v2454_v35 = vcombine.low %v324_v32, %v328_v33  ;;  %v2455_v36 = vcombine.high %v324_v32, %v328_v33  ;;  %v329_v37 = vld [vmem:[%s3380_s6 + $0x28] sm:$0xff]  ;;  %v3190_v43 = vld [vmem:[%s3726_s1 + $0x180] sm:$0xff]   ;;  %v3196_v3 = vld [vmem:[%s3726_s1 + $0x110] sm:$0xff]  }
  0x14   : > { %v2456_v38 = vcombine.low %v325_v34, %v329_v37  ;;  %v2457_v39 = vcombine.high %v325_v34, %v329_v37  ;;  %v332_v44 = vld [vmem:[%s3380_s6 + $0x40] sm:$0xff]  ;;  %v333_v47 = vld [vmem:[%s3380_s6 + $0x48] sm:$0xff]  ;;  %v3197_v5 = vld [vmem:[%s3726_s1 + $0x1d0] sm:$0xff]  }
  0x15   : > { %2762 = vmatpush3.bf16.msra.mxu0 %v3169_v14  ;;  %1492 = vmatprep.mubr.bf16.mxu0 %v2455_v36  ;;  %v336_v45 = vld [vmem:[%s3380_s6 + $0x60] sm:$0xff]  ;;  %v337_v48 = vld [vmem:[%s3380_s6 + $0x68] sm:$0xff]  ;;  %v3198_v8 = vld [vmem:[%s3726_s1 + $0x190] sm:$0xff]  }
  0x16   : > { %2856 = vmatpush3.bf16.msra.mxu1 %v3170_v15  ;;  %2763 = vmatprep.subr.bf16.mxu0 %v3171_v16  ;;  %v2463_v46 = vcombine.high %v332_v44, %v336_v45  ;;  %v2465_v49 = vcombine.high %v333_v47, %v337_v48  ;;  %v3191_v50 = vld [vmem:[%s3726_s1 + $0x148] sm:$0xff]   ;;  %v2462_v51 = vcombine.low %v332_v44, %v336_v45  ;;  %v340_v53 = vld [vmem:[%s3380_s6 + $0x80] sm:$0xff]  ;;  %v3199_v12 = vld [vmem:[%s3726_s1 + $0x158] sm:$0xff]  }
  0x17   : > { %2857 = vmatprep.subr.bf16.mxu1 %v3172_v17  ;;  %1629 = vmatprep.mubr.bf16.mxu1 %v2457_v39  ;;  %v3192_v52 = vld [vmem:[%s3726_s1 + $0x108] sm:$0xff]   ;;  %v2464_v54 = vcombine.low %v333_v47, %v337_v48  ;;  %v344_v55 = vld [vmem:[%s3380_s6 + $0xa0] sm:$0xff]  ;;  %v3200_v15 = vld [vmem:[%s3726_s1 + $0x118] sm:$0xff]  }
  0x18   : > { %v341_v56 = vld [vmem:[%s3380_s6 + $0x88] sm:$0xff]  ;;  %v2471_v58 = vcombine.high %v340_v53, %v344_v55  ;;  %v348_v62 = vld [vmem:[%s3380_s6 + $0xc0] sm:$0xff]  ;;  %v2470_v4 = vcombine.low %v340_v53, %v344_v55  ;;  %v3201_v16 = vld [vmem:[%s3726_s1 + $0x1d8] sm:$0xff]  }
  0x19   : > { %2764 = vmatpush3.bf16.msra.mxu0 %v3173_v18  ;;  %v345_v57 = vld [vmem:[%s3380_s6 + $0xa8] sm:$0xff]  ;;  %v352_v63 = vld [vmem:[%s3380_s6 + $0xe0] sm:$0xff]  ;;  %v3202_v17 = vld [vmem:[%s3726_s1 + $0x198] sm:$0xff]  }
  0x1a   : > { %2858 = vmatpush3.bf16.msra.mxu1 %v3174_v19  ;;  %2765 = vmatprep.subr.bf16.mxu0 %v3175_v20  ;;  %v2473_v59 = vcombine.high %v341_v56, %v345_v57  ;;  %v3193_v60 = vld [vmem:[%s3726_s1 + $0x1c8] sm:$0xff]   ;;  %v2472_v6 = vcombine.low %v341_v56, %v345_v57  ;;  %v2479_v7 = vcombine.high %v348_v62, %v352_v63  ;;  %v356_v10 = vld [vmem:[%s3380_s6 + $0x100] sm:$0xff]  ;;  %v3212_v44 = vld [vmem:[%s3726_s1 + $0x130] sm:$0xff]  }
  0x1b   : > { %2859 = vmatprep.subr.bf16.mxu1 %v3176_v21  ;;  %v3194_v61 = vld [vmem:[%s3726_s1 + $0x188] sm:$0xff]   ;;  %v360_v11 = vld [vmem:[%s3380_s6 + $0x120] sm:$0xff]  ;;  %v2478_v18 = vcombine.low %v348_v62, %v352_v63  ;;  %v3213_v47 = vld [vmem:[%s3726_s1 + $0x1f0] sm:$0xff]  }
  0x1c   : > { %v349_v0 = vld [vmem:[%s3380_s6 + $0xc8] sm:$0xff]  ;;  %v2487_v20 = vcombine.high %v356_v10, %v360_v11  ;;  %v376_v39 = vld [vmem:[%s3380_s6 + $0x1a0] sm:$0xff]  ;;  %v3216_v55 = vld [vmem:[%s3726_s1 + $0x138] sm:$0xff]  }
  0x1d   : > { %2766 = vmatpush3.bf16.msra.mxu0 %v3177_v22  ;;  %v353_v1 = vld [vmem:[%s3380_s6 + $0xe8] sm:$0xff]  ;;  %v3203_v22 = vld [vmem:[%s3726_s1 + $0x160] sm:$0xff]   ;;  %v3217_v56 = vld [vmem:[%s3726_s1 + $0x1f8] sm:$0xff]  }
  0x1e   : > { %2860 = vmatpush3.bf16.msra.mxu1 %v3178_v23  ;;  %2767 = vmatprep.subr.bf16.mxu0 %v3179_v24  ;;  %v2481_v9 = vcombine.high %v349_v0, %v353_v1  ;;  %v357_v13 = vld [vmem:[%s3380_s6 + $0x108] sm:$0xff]  ;;  %v2480_v19 = vcombine.low %v349_v0, %v353_v1  ;;  %v3204_v23 = vld [vmem:[%s3726_s1 + $0x120] sm:$0xff]   ;;  %v3218_v57 = vld [vmem:[%s3726_s1 + $0x1b8] sm:$0xff]  }
  0x1f   : > { %2861 = vmatprep.subr.bf16.mxu1 %v3180_v25  ;;  %v361_v14 = vld [vmem:[%s3380_s6 + $0x128] sm:$0xff]  ;;  %v3205_v24 = vld [vmem:[%s3726_s1 + $0x1e0] sm:$0xff]  }
  0x20   : > { %v2489_v21 = vcombine.high %v357_v13, %v361_v14  ;;  %v364_v25 = vld [vmem:[%s3380_s6 + $0x140] sm:$0xff]  ;;  %v2488_v32 = vcombine.low %v357_v13, %v361_v14  ;;  %v3208_v34 = vld [vmem:[%s3726_s1 + $0x128] sm:$0xff]  }
  0x21   : > { %2768 = vmatpush3.bf16.msra.mxu0 %v3181_v26  ;;  %v368_v26 = vld [vmem:[%s3380_s6 + $0x160] sm:$0xff]  ;;  %v3209_v36 = vld [vmem:[%s3726_s1 + $0x1e8] sm:$0xff]  }
  0x22   : > { %2862 = vmatpush3.bf16.msra.mxu1 %v3182_v27  ;;  %2769 = vmatprep.subr.bf16.mxu0 %v3183_v28  ;;  %v3206_v27 = vld [vmem:[%s3726_s1 + $0x1a0] sm:$0xff]   ;;  %v365_v28 = vld [vmem:[%s3380_s6 + $0x148] sm:$0xff]  ;;  %v2495_v33 = vcombine.high %v364_v25, %v368_v26 }
  0x23   : > { %2863 = vmatprep.subr.bf16.mxu1 %v3184_v29  ;;  %v369_v29 = vld [vmem:[%s3380_s6 + $0x168] sm:$0xff]  ;;  %v388_v62 = vld [vmem:[%s3380_s6 + $0x200] sm:$0xff] }
  0x24   : > { %v3210_v37 = vld [vmem:[%s3726_s1 + $0x1a8] sm:$0xff]   ;;  %v2496_v45 = vcombine.low %v365_v28, %v369_v29  ;;  %v392_v63 = vld [vmem:[%s3380_s6 + $0x220] sm:$0xff] }
  0x25   : > { %2770 = vmatpush3.bf16.msra.mxu0 %v3185_v30  ;;  %v2486_v30 = vcombine.low %v356_v10, %v360_v11  ;;  %v381_v53 = vld [vmem:[%s3380_s6 + $0x1c8] sm:$0xff]  ;;  %v2518_v10 = vcombine.low %v388_v62, %v392_v63  ;;  %v404_v14 = vld [vmem:[%s3380_s6 + $0x280] sm:$0xff] }
  0x26   : > { %2864 = vmatpush3.bf16.msra.mxu1 %v3186_v31  ;;  %2943 = vmatprep.subr.bf16.mxu0 %v3187_v40  ;;  %v3207_v31 = vld [vmem:[%s3726_s1 + $0x168] sm:$0xff]   ;;  %v3211_v40 = vld [vmem:[%s3726_s1 + $0x170] sm:$0xff]  }
  0x27   : > { %3037 = vmatprep.subr.bf16.mxu1 %v3189_v42  ;;  %v377_v42 = vld [vmem:[%s3380_s6 + $0x1a8] sm:$0xff] }
  0x28   : > { %1493 = vmatmul.mubr.bf16.vlgmr.msra.gmra.mrb[0].mxu0 %v2454_v35  ;;  %v2497_v35 = vcombine.high %v365_v28, %v369_v29  ;;  %v389_v0 = vld [vmem:[%s3380_s6 + $0x208] sm:$0xff] }
  0x29   : > { %1630 = vmatmul.mubr.bf16.vlgmr.msra.gmra.mrb[0].mxu1 %v2456_v38  ;;  %2944 = vmatpush3.bf16.msra.mxu0 %v3188_v41  ;;  %v372_v38 = vld [vmem:[%s3380_s6 + $0x180] sm:$0xff]  ;;  %v373_v41 = vld [vmem:[%s3380_s6 + $0x188] sm:$0xff] }
  0x2a   : > { %3038 = vmatpush3.bf16.msra.mxu1 %v3190_v43  ;;  %1500 = vmatprep.mubr.bf16.mxu0 %v2463_v46  ;;  %v2494_v43 = vcombine.low %v364_v25, %v368_v26  ;;  %v2503_v46 = vcombine.high %v372_v38, %v376_v39  ;;  %v2505_v48 = vcombine.high %v373_v41, %v377_v42  ;;  %v393_v1 = vld [vmem:[%s3380_s6 + $0x228] sm:$0xff] }
  0x2b   : > { %1637 = vmatprep.mubr.bf16.mxu1 %v2465_v49  ;;  %2945 = vmatprep.subr.bf16.mxu0 %v3191_v50  ;;  %v3214_v49 = vld [vmem:[%s3726_s1 + $0x1b0] sm:$0xff]   ;;  %v380_v50 = vld [vmem:[%s3380_s6 + $0x1c0] sm:$0xff]  ;;  %v2520_v11 = vcombine.low %v389_v0, %v393_v1  ;;  %v417_v25 = vld [vmem:[%s3380_s6 + $0x2e8] sm:$0xff] }
  0x2c   : > { %3039 = vmatprep.subr.bf16.mxu1 %v3193_v60 }
  0x2d   : > { %2946 = vmatpush3.bf16.msra.mxu0 %v3192_v52  ;;  %v3215_v52 = vld [vmem:[%s3726_s1 + $0x178] sm:$0xff]  }
  0x2e   : > { %3040 = vmatpush3.bf16.msra.mxu1 %v3194_v61  ;;  %2947 = vmatprep.subr.bf16.mxu0 %v3195_v2 }
  0x2f   : > { %3041 = vmatprep.subr.bf16.mxu1 %v3197_v5  ;;  %v2521_v5 = vcombine.high %v389_v0, %v393_v1  ;;  %v351_v0 = vld [vmem:[%s3380_s6 + $0xd8] sm:$0xff] }
  0x30   : > { %1501 = vmatmul.mubr.bf16.gmra.mrb[4].mxu0 %v2462_v51  ;;  %v384_v51 = vld [vmem:[%s3380_s6 + $0x1e0] sm:$0xff]  ;;  %v355_v1 = vld [vmem:[%s3380_s6 + $0xf8] sm:$0xff] }
  0x31   : > { %1638 = vmatmul.mubr.bf16.gmra.mrb[4].mxu1 %v2464_v54  ;;  %1508 = vmatprep.mubr.bf16.mxu0 %v2471_v58  ;;  %v385_v54 = vld [vmem:[%s3380_s6 + $0x1e8] sm:$0xff]  ;;  %v2502_v58 = vcombine.low %v372_v38, %v376_v39  ;;  %v2511_v60 = vcombine.high %v380_v50, %v384_v51  ;;  %v2510_v2 = vcombine.low %v380_v50, %v384_v51  ;;  %v326_v38 = vld [vmem:[%s3380_s6 + $0x10] sm:$0xff] }
  0x32   : > { %1645 = vmatprep.mubr.bf16.mxu1 %v2473_v59  ;;  %2948 = vmatpush3.bf16.msra.mxu0 %v3196_v3  ;;  %v2504_v59 = vcombine.low %v373_v41, %v377_v42  ;;  %v2513_v61 = vcombine.high %v381_v53, %v385_v54  ;;  %v2512_v3 = vcombine.low %v381_v53, %v385_v54  ;;  %v330_v39 = vld [vmem:[%s3380_s6 + $0x30] sm:$0xff]  ;;  %v331_v41 = vld [vmem:[%s3380_s6 + $0x38] sm:$0xff] }
  0x33   : > { %3042 = vmatpush3.bf16.msra.mxu1 %v3198_v8  ;;  %2949 = vmatprep.subr.bf16.mxu0 %v3199_v12  ;;  %v397_v8 = vld [vmem:[%s3380_s6 + $0x248] sm:$0xff]  ;;  %v2458_v50 = vcombine.low %v326_v38, %v330_v39  ;;  %v342_v54 = vld [vmem:[%s3380_s6 + $0x90] sm:$0xff] }
  0x34   : > { %3043 = vmatprep.subr.bf16.mxu1 %v3201_v16  ;;  %v405_v16 = vld [vmem:[%s3380_s6 + $0x288] sm:$0xff] }
  0x36   : > { %2950 = vmatpush3.bf16.msra.mxu0 %v3200_v15  ;;  %v408_v15 = vld [vmem:[%s3380_s6 + $0x2a0] sm:$0xff] }
  0x37   : > { %3044 = vmatpush3.bf16.msra.mxu1 %v3202_v17  ;;  %2951 = vmatprep.subr.bf16.mxu0 %v3203_v22  ;;  %v409_v17 = vld [vmem:[%s3380_s6 + $0x2a8] sm:$0xff]  ;;  %v412_v22 = vld [vmem:[%s3380_s6 + $0x2c0] sm:$0xff]  ;;  %v2534_v26 = vcombine.low %v404_v14, %v408_v15 }
  0x38   : > { %1509 = vmatmul.mubr.bf16.gmra.mrb[8].mxu0 %v2470_v4  ;;  %3045 = vmatprep.subr.bf16.mxu1 %v3205_v24  ;;  %v2519_v4 = vcombine.high %v388_v62, %v392_v63  ;;  %v413_v24 = vld [vmem:[%s3380_s6 + $0x2c8] sm:$0xff]  ;;  %v350_v62 = vld [vmem:[%s3380_s6 + $0xd0] sm:$0xff] }
  0x39   : > { %1646 = vmatmul.mubr.bf16.gmra.mrb[8].mxu1 %v2472_v6  ;;  %1516 = vmatprep.mubr.bf16.mxu0 %v2479_v7  ;;  %v396_v6 = vld [vmem:[%s3380_s6 + $0x240] sm:$0xff]  ;;  %v2545_v29 = vcombine.high %v413_v24, %v417_v25  ;;  %v354_v63 = vld [vmem:[%s3380_s6 + $0xf0] sm:$0xff] }
  0x3a   : > { %1653 = vmatprep.mubr.bf16.mxu1 %v2481_v9  ;;  %2952 = vmatpush3.bf16.msra.mxu0 %v3204_v23  ;;  %v400_v7 = vld [vmem:[%s3380_s6 + $0x260] sm:$0xff]  ;;  %v401_v9 = vld [vmem:[%s3380_s6 + $0x268] sm:$0xff] }
  0x3b   : > { %3046 = vmatpush3.bf16.msra.mxu1 %v3206_v27  ;;  %2953 = vmatprep.subr.bf16.mxu0 %v3207_v31  ;;  %v2527_v12 = vcombine.high %v396_v6, %v400_v7  ;;  %v2529_v13 = vcombine.high %v397_v8, %v401_v9  ;;  %v416_v23 = vld [vmem:[%s3380_s6 + $0x2e0] sm:$0xff]  ;;  %v2536_v27 = vcombine.low %v405_v16, %v409_v17 }
  0x3c   : > { %3047 = vmatprep.subr.bf16.mxu1 %v3209_v36  ;;  %v2543_v28 = vcombine.high %v412_v22, %v416_v23  ;;  %v424_v31 = vld [vmem:[%s3380_s6 + $0x320] sm:$0xff] }
  0x3e   : > { %2954 = vmatpush3.bf16.msra.mxu0 %v3208_v34  ;;  %v2542_v34 = vcombine.low %v412_v22, %v416_v23  ;;  %v374_v22 = vld [vmem:[%s3380_s6 + $0x190] sm:$0xff] }
  0x3f   : > { %3048 = vmatpush3.bf16.msra.mxu1 %v3210_v37  ;;  %2955 = vmatprep.subr.bf16.mxu0 %v3211_v40  ;;  %v327_v40 = vld [vmem:[%s3380_s6 + $0x18] sm:$0xff]  ;;  %v378_v23 = vld [vmem:[%s3380_s6 + $0x1b0] sm:$0xff] }
  0x40   : > { %1517 = vmatmul.mubr.bf16.gmra.mrb[12].mxu0 %v2478_v18  ;;  %3049 = vmatprep.subr.bf16.mxu1 %v3213_v47  ;;  %v2526_v18 = vcombine.low %v396_v6, %v400_v7  ;;  %v338_v47 = vld [vmem:[%s3380_s6 + $0x70] sm:$0xff]  ;;  %v2460_v51 = vcombine.low %v327_v40, %v331_v41 }
  0x41   : > { %1654 = vmatmul.mubr.bf16.gmra.mrb[12].mxu1 %v2480_v19  ;;  %1524 = vmatprep.mubr.bf16.mxu0 %v2487_v20  ;;  %v2528_v19 = vcombine.low %v397_v8, %v401_v9  ;;  %v2535_v20 = vcombine.high %v404_v14, %v408_v15  ;;  %v358_v6 = vld [vmem:[%s3380_s6 + $0x110] sm:$0xff]  ;;  %v359_v8 = vld [vmem:[%s3380_s6 + $0x118] sm:$0xff] }
  0x42   : > { %1661 = vmatprep.mubr.bf16.mxu1 %v2489_v21  ;;  %2956 = vmatpush3.bf16.msra.mxu0 %v3212_v44  ;;  %v2537_v21 = vcombine.high %v405_v16, %v409_v17  ;;  %v2459_v44 = vcombine.high %v326_v38, %v330_v39  ;;  %v362_v7 = vld [vmem:[%s3380_s6 + $0x130] sm:$0xff]  ;;  %v363_v9 = vld [vmem:[%s3380_s6 + $0x138] sm:$0xff] }
  0x43   : > { %3050 = vmatpush3.bf16.msra.mxu1 %v3214_v49  ;;  %2957 = vmatprep.subr.bf16.mxu0 %v3215_v52  ;;  %v339_v49 = vld [vmem:[%s3380_s6 + $0x78] sm:$0xff]  ;;  %v366_v14 = vld [vmem:[%s3380_s6 + $0x150] sm:$0xff] }
  0x44   : > { %3051 = vmatprep.subr.bf16.mxu1 %v3217_v56  ;;  %v343_v56 = vld [vmem:[%s3380_s6 + $0x98] sm:$0xff]  ;;  %v370_v15 = vld [vmem:[%s3380_s6 + $0x170] sm:$0xff] }
  0x45   : > { %v367_v16 = vld [vmem:[%s3380_s6 + $0x158] sm:$0xff]  ;;  %v390_v38 = vld [vmem:[%s3380_s6 + $0x210] sm:$0xff] }
  0x46   : > { %2958 = vmatpush3.bf16.msra.mxu0 %v3216_v55  ;;  %v346_v55 = vld [vmem:[%s3380_s6 + $0xb0] sm:$0xff]  ;;  %v371_v17 = vld [vmem:[%s3380_s6 + $0x178] sm:$0xff] }
  0x47   : > { %3052 = vmatpush3.bf16.msra.mxu1 %v3218_v57  ;;  %v347_v57 = vld [vmem:[%s3380_s6 + $0xb8] sm:$0xff]  ;;  %v394_v39 = vld [vmem:[%s3380_s6 + $0x230] sm:$0xff] }
  0x48   : > { %1525 = vmatmul.mubr.bf16.gmra.mrb[16].mxu0 %v2486_v30  ;;  %v420_v30 = vld [vmem:[%s3380_s6 + $0x300] sm:$0xff] }
  0x49   : > { %1662 = vmatmul.mubr.bf16.gmra.mrb[16].mxu1 %v2488_v32  ;;  %1532 = vmatprep.mubr.bf16.mxu0 %v2495_v33  ;;  %v421_v32 = vld [vmem:[%s3380_s6 + $0x308] sm:$0xff]  ;;  %v2551_v36 = vcombine.high %v420_v30, %v424_v31  ;;  %v2550_v42 = vcombine.low %v420_v30, %v424_v31  ;;  %v382_v30 = vld [vmem:[%s3380_s6 + $0x1d0] sm:$0xff] }
  0x4a   : > { %1669 = vmatprep.mubr.bf16.mxu1 %v2497_v35  ;;  %v425_v33 = vld [vmem:[%s3380_s6 + $0x328] sm:$0xff]  ;;  %v2544_v35 = vcombine.low %v413_v24, %v417_v25  ;;  %v375_v24 = vld [vmem:[%s3380_s6 + $0x198] sm:$0xff]  ;;  %v386_v31 = vld [vmem:[%s3380_s6 + $0x1f0] sm:$0xff] }
  0x4b   : > { %v2553_v37 = vcombine.high %v421_v32, %v425_v33  ;;  %v379_v25 = vld [vmem:[%s3380_s6 + $0x1b8] sm:$0xff] }
  0x50   : > { %1533 = vmatmul.mubr.bf16.gmra.mrb[20].mxu0 %v2494_v43  ;;  %v2552_v43 = vcombine.low %v421_v32, %v425_v33  ;;  %v383_v32 = vld [vmem:[%s3380_s6 + $0x1d8] sm:$0xff] }
  0x51   : > { %1670 = vmatmul.mubr.bf16.gmra.mrb[20].mxu1 %v2496_v45  ;;  %1540 = vmatprep.mubr.bf16.mxu0 %v2503_v46  ;;  %v2461_v45 = vcombine.high %v327_v40, %v331_v41  ;;  %v334_v46 = vld [vmem:[%s3380_s6 + $0x50] sm:$0xff]  ;;  %v387_v33 = vld [vmem:[%s3380_s6 + $0x1f8] sm:$0xff] }
  0x52   : > { %1677 = vmatprep.mubr.bf16.mxu1 %v2505_v48  ;;  %v335_v48 = vld [vmem:[%s3380_s6 + $0x58] sm:$0xff]  ;;  %v2467_v52 = vcombine.high %v334_v46, %v338_v47 }
  0x53   : > { %v2469_v53 = vcombine.high %v335_v48, %v339_v49  ;;  %v391_v40 = vld [vmem:[%s3380_s6 + $0x218] sm:$0xff] }
  0x54   : > { %v395_v41 = vld [vmem:[%s3380_s6 + $0x238] sm:$0xff] }
  0x58   : > { %1541 = vmatmul.mubr.bf16.gmra.mrb[24].mxu0 %v2502_v58  ;;  %v2466_v58 = vcombine.low %v334_v46, %v338_v47  ;;  %v398_v46 = vld [vmem:[%s3380_s6 + $0x250] sm:$0xff] }
  0x59   : > { %1678 = vmatmul.mubr.bf16.gmra.mrb[24].mxu1 %v2504_v59  ;;  %1548 = vmatprep.mubr.bf16.mxu0 %v2511_v60  ;;  %v2468_v59 = vcombine.low %v335_v48, %v339_v49  ;;  %v2475_v60 = vcombine.high %v342_v54, %v346_v55  ;;  %v402_v47 = vld [vmem:[%s3380_s6 + $0x270] sm:$0xff]  ;;  %v399_v48 = vld [vmem:[%s3380_s6 + $0x258] sm:$0xff] }
  0x5a   : > { %1685 = vmatprep.mubr.bf16.mxu1 %v2513_v61  ;;  %v2477_v61 = vcombine.high %v343_v56, %v347_v57  ;;  %v403_v49 = vld [vmem:[%s3380_s6 + $0x278] sm:$0xff] }
  0x60   : > { %1549 = vmatmul.mubr.bf16.gmra.mrb[28].mxu0 %v2510_v2  ;;  %v2474_v2 = vcombine.low %v342_v54, %v346_v55  ;;  %v406_v54 = vld [vmem:[%s3380_s6 + $0x290] sm:$0xff] }
  0x61   : > { %1686 = vmatmul.mubr.bf16.gmra.mrb[28].mxu1 %v2512_v3  ;;  %1556 = vmatprep.mubr.bf16.mxu0 %v2519_v4  ;;  %v2476_v3 = vcombine.low %v343_v56, %v347_v57  ;;  %v2483_v4 = vcombine.high %v350_v62, %v354_v63  ;;  %v410_v55 = vld [vmem:[%s3380_s6 + $0x2b0] sm:$0xff]  ;;  %v407_v56 = vld [vmem:[%s3380_s6 + $0x298] sm:$0xff] }
  0x62   : > { %1693 = vmatprep.mubr.bf16.mxu1 %v2521_v5  ;;  %v2485_v5 = vcombine.high %v351_v0, %v355_v1  ;;  %v411_v57 = vld [vmem:[%s3380_s6 + $0x2b8] sm:$0xff] }
  0x68   : > { %1557 = vmatmul.mubr.bf16.gmra.mrb[32].mxu0 %v2518_v10  ;;  %v2482_v10 = vcombine.low %v350_v62, %v354_v63  ;;  %v414_v62 = vld [vmem:[%s3380_s6 + $0x2d0] sm:$0xff] }
  0x69   : > { %1694 = vmatmul.mubr.bf16.gmra.mrb[32].mxu1 %v2520_v11  ;;  %1564 = vmatprep.mubr.bf16.mxu0 %v2527_v12  ;;  %v2484_v11 = vcombine.low %v351_v0, %v355_v1  ;;  %v2491_v12 = vcombine.high %v358_v6, %v362_v7  ;;  %v418_v63 = vld [vmem:[%s3380_s6 + $0x2f0] sm:$0xff]  ;;  %v415_v0 = vld [vmem:[%s3380_s6 + $0x2d8] sm:$0xff] }
  0x6a   : > { %1701 = vmatprep.mubr.bf16.mxu1 %v2529_v13  ;;  %v2493_v13 = vcombine.high %v359_v8, %v363_v9  ;;  %v419_v1 = vld [vmem:[%s3380_s6 + $0x2f8] sm:$0xff] }
  0x70   : > { %1565 = vmatmul.mubr.bf16.gmra.mrb[36].mxu0 %v2526_v18  ;;  %v2490_v18 = vcombine.low %v358_v6, %v362_v7  ;;  %v422_v6 = vld [vmem:[%s3380_s6 + $0x310] sm:$0xff] }
  0x71   : > { %1702 = vmatmul.mubr.bf16.gmra.mrb[36].mxu1 %v2528_v19  ;;  %1572 = vmatprep.mubr.bf16.mxu0 %v2535_v20  ;;  %v2492_v19 = vcombine.low %v359_v8, %v363_v9  ;;  %v2499_v20 = vcombine.high %v366_v14, %v370_v15  ;;  %v426_v7 = vld [vmem:[%s3380_s6 + $0x330] sm:$0xff]  ;;  %v423_v8 = vld [vmem:[%s3380_s6 + $0x318] sm:$0xff] }
  0x72   : > { %1709 = vmatprep.mubr.bf16.mxu1 %v2537_v21  ;;  %v2501_v21 = vcombine.high %v367_v16, %v371_v17  ;;  %v427_v9 = vld [vmem:[%s3380_s6 + $0x338] sm:$0xff] }
  0x78   : > { %1573 = vmatmul.mubr.bf16.gmra.mrb[40].mxu0 %v2534_v26  ;;  %v2498_v26 = vcombine.low %v366_v14, %v370_v15  ;;  %v2554_v14 = vcombine.low %v422_v6, %v426_v7  ;;  %v2556_v15 = vcombine.low %v423_v8, %v427_v9 }
  0x79   : > { %1710 = vmatmul.mubr.bf16.gmra.mrb[40].mxu1 %v2536_v27  ;;  %1580 = vmatprep.mubr.bf16.mxu0 %v2543_v28  ;;  %v2500_v27 = vcombine.low %v367_v16, %v371_v17  ;;  %v2507_v28 = vcombine.high %v374_v22, %v378_v23 }
  0x7a   : > { %1717 = vmatprep.mubr.bf16.mxu1 %v2545_v29  ;;  %v2509_v29 = vcombine.high %v375_v24, %v379_v25 }
  0x80   : > { %1581 = vmatmul.mubr.bf16.gmra.mrb[44].mxu0 %v2542_v34  ;;  %v2506_v34 = vcombine.low %v374_v22, %v378_v23 }
  0x81   : > { %1718 = vmatmul.mubr.bf16.gmra.mrb[44].mxu1 %v2544_v35  ;;  %1588 = vmatprep.mubr.bf16.mxu0 %v2551_v36  ;;  %v2508_v35 = vcombine.low %v375_v24, %v379_v25  ;;  %v2515_v36 = vcombine.high %v382_v30, %v386_v31 }
  0x82   : > { %1725 = vmatprep.mubr.bf16.mxu1 %v2553_v37  ;;  %v2517_v37 = vcombine.high %v383_v32, %v387_v33 }
  0x88   : > { %1589 = vmatmul.mubr.bf16.gmra.mrb[48].mxu0 %v2550_v42  ;;  %v2514_v42 = vcombine.low %v382_v30, %v386_v31 }
  0x89   : > { %1726 = vmatmul.mubr.bf16.gmra.mrb[48].mxu1 %v2552_v43  ;;  %1766 = vmatprep.mubr.bf16.mxu0 %v2459_v44  ;;  %v2516_v43 = vcombine.low %v383_v32, %v387_v33  ;;  %v2523_v44 = vcombine.high %v390_v38, %v394_v39 }
  0x8a   : > { %1903 = vmatprep.mubr.bf16.mxu1 %v2461_v45  ;;  %v2525_v45 = vcombine.high %v391_v40, %v395_v41 }
  0x90   : > { %1767 = vmatmul.mubr.bf16.vlgmr.msra.gmra.mrb[52].mxu0 %v2458_v50  ;;  %v2522_v50 = vcombine.low %v390_v38, %v394_v39 }
  0x91   : > { %1904 = vmatmul.mubr.bf16.vlgmr.msra.gmra.mrb[52].mxu1 %v2460_v51  ;;  %1774 = vmatprep.mubr.bf16.mxu0 %v2467_v52  ;;  %v2524_v51 = vcombine.low %v391_v40, %v395_v41  ;;  %v2531_v52 = vcombine.high %v398_v46, %v402_v47 }
  0x92   : > { %1911 = vmatprep.mubr.bf16.mxu1 %v2469_v53  ;;  %v2533_v53 = vcombine.high %v399_v48, %v403_v49 }
  0x98   : > { %1775 = vmatmul.mubr.bf16.gmra.mrb[56].mxu0 %v2466_v58  ;;  %v2530_v58 = vcombine.low %v398_v46, %v402_v47 }
  0x99   : > { %1912 = vmatmul.mubr.bf16.gmra.mrb[56].mxu1 %v2468_v59  ;;  %1782 = vmatprep.mubr.bf16.mxu0 %v2475_v60  ;;  %v2532_v59 = vcombine.low %v399_v48, %v403_v49  ;;  %v2539_v60 = vcombine.high %v406_v54, %v410_v55 }
  0x9a   : > { %1919 = vmatprep.mubr.bf16.mxu1 %v2477_v61  ;;  %v2541_v61 = vcombine.high %v407_v56, %v411_v57 }
  0xa0   : > { %1783 = vmatmul.mubr.bf16.gmra.mrb[60].mxu0 %v2474_v2  ;;  %v2538_v2 = vcombine.low %v406_v54, %v410_v55 }
  0xa1   : > { %1920 = vmatmul.mubr.bf16.gmra.mrb[60].mxu1 %v2476_v3  ;;  %1790 = vmatprep.mubr.bf16.mxu0 %v2483_v4  ;;  %v2540_v3 = vcombine.low %v407_v56, %v411_v57  ;;  %v2547_v4 = vcombine.high %v414_v62, %v418_v63 }
  0xa2   : > { %1927 = vmatprep.mubr.bf16.mxu1 %v2485_v5  ;;  %v2549_v5 = vcombine.high %v415_v0, %v419_v1 }
  0xa8   : > { %1791 = vmatmul.mubr.bf16.gmra.mrb[64].mxu0 %v2482_v10  ;;  %v2546_v10 = vcombine.low %v414_v62, %v418_v63 }
  0xa9   : > { %1928 = vmatmul.mubr.bf16.gmra.mrb[64].mxu1 %v2484_v11  ;;  %1798 = vmatprep.mubr.bf16.mxu0 %v2491_v12  ;;  %v2548_v11 = vcombine.low %v415_v0, %v419_v1  ;;  %v2555_v12 = vcombine.high %v422_v6, %v426_v7 }
  0xaa   : > { %1935 = vmatprep.mubr.bf16.mxu1 %v2493_v13  ;;  %v2557_v13 = vcombine.high %v423_v8, %v427_v9 }
  0xb0   : > { %1799 = vmatmul.mubr.bf16.gmra.mrb[68].mxu0 %v2490_v18 }
  0xb1   : > { %1936 = vmatmul.mubr.bf16.gmra.mrb[68].mxu1 %v2492_v19  ;;  %1806 = vmatprep.mubr.bf16.mxu0 %v2499_v20 }
  0xb2   : > { %1943 = vmatprep.mubr.bf16.mxu1 %v2501_v21 }
  0xb8   : > { %1807 = vmatmul.mubr.bf16.gmra.mrb[72].mxu0 %v2498_v26 }
  0xb9   : > { %1944 = vmatmul.mubr.bf16.gmra.mrb[72].mxu1 %v2500_v27  ;;  %1814 = vmatprep.mubr.bf16.mxu0 %v2507_v28 }
  0xba   : > { %1951 = vmatprep.mubr.bf16.mxu1 %v2509_v29 }
  0xc0   : > { %1815 = vmatmul.mubr.bf16.gmra.mrb[76].mxu0 %v2506_v34 }
  0xc1   : > { %1952 = vmatmul.mubr.bf16.gmra.mrb[76].mxu1 %v2508_v35  ;;  %1822 = vmatprep.mubr.bf16.mxu0 %v2515_v36 }
  0xc2   : > { %1959 = vmatprep.mubr.bf16.mxu1 %v2517_v37 }
  0xc8   : > { %1823 = vmatmul.mubr.bf16.gmra.mrb[80].mxu0 %v2514_v42 }
  0xc9   : > { %1960 = vmatmul.mubr.bf16.gmra.mrb[80].mxu1 %v2516_v43  ;;  %1830 = vmatprep.mubr.bf16.mxu0 %v2523_v44 }
  0xca   : > { %1967 = vmatprep.mubr.bf16.mxu1 %v2525_v45 }
  0xd0   : > { %1831 = vmatmul.mubr.bf16.gmra.mrb[84].mxu0 %v2522_v50 }
  0xd1   : > { %1968 = vmatmul.mubr.bf16.gmra.mrb[84].mxu1 %v2524_v51  ;;  %1838 = vmatprep.mubr.bf16.mxu0 %v2531_v52 }
  0xd2   : > { %1975 = vmatprep.mubr.bf16.mxu1 %v2533_v53 }
  0xd8   : > { %1839 = vmatmul.mubr.bf16.gmra.mrb[88].mxu0 %v2530_v58 }
  0xd9   : > { %1976 = vmatmul.mubr.bf16.gmra.mrb[88].mxu1 %v2532_v59  ;;  %1846 = vmatprep.mubr.bf16.mxu0 %v2539_v60 }
  0xda   : > { %1983 = vmatprep.mubr.bf16.mxu1 %v2541_v61 }
  0xe0   : > { %1847 = vmatmul.mubr.bf16.gmra.mrb[92].mxu0 %v2538_v2 }
  0xe1   : > { %1984 = vmatmul.mubr.bf16.gmra.mrb[92].mxu1 %v2540_v3  ;;  %1854 = vmatprep.mubr.bf16.mxu0 %v2547_v4 }
  0xe2   : > { %1991 = vmatprep.mubr.bf16.mxu1 %v2549_v5 }
  0xe8   : > { %1855 = vmatmul.mubr.bf16.gmra.mrb[96].mxu0 %v2546_v10 }
  0xe9   : > { %1992 = vmatmul.mubr.bf16.gmra.mrb[96].mxu1 %v2548_v11  ;;  %1862 = vmatprep.mubr.bf16.mxu0 %v2555_v12 }
  0xea   : > { %1999 = vmatprep.mubr.bf16.mxu1 %v2557_v13 }
  0xf0   : > { %1863 = vmatmul.mubr.bf16.gmra.mrb[100].mxu0 %v2554_v14 }
  0xf1   : > { %2000 = vmatmul.mubr.bf16.gmra.mrb[100].mxu1 %v2556_v15 }
  0xfb   : > { %v2771_v16 = vpop.f32.mrb[0].mxu0 }
  0xfc   : > { %v2865_v17 = vpop.f32.mrb[0].mxu1  ;;  %v2772_v18 = vpop.f32.mrb[1].mxu0 }
  0xfd   : > { %v2773_v19 = vadd.f32 %v2772_v18, %v2771_v16  ;;  %v2866_v20 = vpop.f32.mrb[1].mxu1  ;;  %v2774_v21 = vpop.f32.mrb[2].mxu0 }
  0xfe   : > { %v2867_v22 = vadd.f32 %v2866_v20, %v2865_v17  ;;  %v2868_v23 = vpop.f32.mrb[2].mxu1  ;;  %v2775_v24 = vpop.f32.mrb[3].mxu0 }
  0xff   : > { %v2776_v25 = vadd.f32 %v2775_v24, %v2774_v21  ;;  %v2869_v26 = vpop.f32.mrb[3].mxu1 }
 0x100   : > { %v3588_v27 = vadd.f32 %v2867_v22, %v2773_v19  ;;  %v2870_v28 = vadd.f32 %v2869_v26, %v2868_v23 }
 0x102   : > { %v3590_v29 = vadd.f32 %v2870_v28, %v2776_v25 }
 0x103   : > { %v2777_v30 = vpop.f32.mrb[4].mxu0 }
 0x104   : > { %v2871_v31 = vpop.f32.mrb[4].mxu1  ;;  %v2778_v32 = vpop.f32.mrb[5].mxu0 }
 0x105   : > { %v2779_v33 = vadd.f32 %v2778_v32, %v2777_v30  ;;  %v2872_v34 = vpop.f32.mrb[5].mxu1  ;;  %v2780_v35 = vpop.f32.mrb[6].mxu0 }
 0x106   : > { %v2873_v36 = vadd.f32 %v2872_v34, %v2871_v31  ;;  %v2874_v37 = vpop.f32.mrb[6].mxu1  ;;  %v2781_v38 = vpop.f32.mrb[7].mxu0 }
 0x107   : > { %v2782_v39 = vadd.f32 %v2781_v38, %v2780_v35  ;;  %v2875_v40 = vpop.f32.mrb[7].mxu1 }
 0x108   : > { %v3592_v41 = vadd.f32 %v2873_v36, %v2779_v33  ;;  %v2876_v42 = vadd.f32 %v2875_v40, %v2874_v37 }
 0x10a   : > { %v3594_v43 = vadd.f32 %v2876_v42, %v2782_v39 }
 0x10b   : > { %v2783_v44 = vpop.f32.mrb[8].mxu0 }
 0x10c   : > { %v2877_v45 = vpop.f32.mrb[8].mxu1  ;;  %v2784_v46 = vpop.f32.mrb[9].mxu0 }
 0x10d   : > { %v2785_v47 = vadd.f32 %v2784_v46, %v2783_v44  ;;  %v2878_v48 = vpop.f32.mrb[9].mxu1  ;;  %v2786_v49 = vpop.f32.mrb[10].mxu0 }
 0x10e   : > { %v2879_v50 = vadd.f32 %v2878_v48, %v2877_v45  ;;  %v2880_v51 = vpop.f32.mrb[10].mxu1  ;;  %v2787_v52 = vpop.f32.mrb[11].mxu0 }
 0x10f   : > { %v2788_v53 = vadd.f32 %v2787_v52, %v2786_v49  ;;  %v2881_v54 = vpop.f32.mrb[11].mxu1 }
 0x110   : > { %v3596_v55 = vadd.f32 %v2879_v50, %v2785_v47  ;;  %v2882_v56 = vadd.f32 %v2881_v54, %v2880_v51 }
 0x112   : > { %v3598_v57 = vadd.f32 %v2882_v56, %v2788_v53 }
 0x113   : > { %v2789_v58 = vpop.f32.mrb[12].mxu0 }
 0x114   : > { %v2883_v59 = vpop.f32.mrb[12].mxu1  ;;  %v2790_v60 = vpop.f32.mrb[13].mxu0 }
 0x115   : > { %v2791_v61 = vadd.f32 %v2790_v60, %v2789_v58  ;;  %v2884_v62 = vpop.f32.mrb[13].mxu1  ;;  %v2792_v63 = vpop.f32.mrb[14].mxu0 }
 0x116   : > { %v2885_v0 = vadd.f32 %v2884_v62, %v2883_v59  ;;  %v2886_v1 = vpop.f32.mrb[14].mxu1  ;;  %v2793_v2 = vpop.f32.mrb[15].mxu0 }
 0x117   : > { %v2794_v3 = vadd.f32 %v2793_v2, %v2792_v63  ;;  %v2887_v4 = vpop.f32.mrb[15].mxu1 }
 0x118   : > { %v3600_v5 = vadd.f32 %v2885_v0, %v2791_v61  ;;  %v2888_v6 = vadd.f32 %v2887_v4, %v2886_v1 }
 0x11a   : > { %v3602_v7 = vadd.f32 %v2888_v6, %v2794_v3 }
 0x11b   : > { %v2795_v8 = vpop.f32.mrb[16].mxu0 }
 0x11c   : > { %v2889_v9 = vpop.f32.mrb[16].mxu1  ;;  %v2796_v10 = vpop.f32.mrb[17].mxu0 }
 0x11d   : > { %v2797_v11 = vadd.f32 %v2796_v10, %v2795_v8  ;;  %v2890_v12 = vpop.f32.mrb[17].mxu1  ;;  %v2798_v13 = vpop.f32.mrb[18].mxu0 }
 0x11e   : > { %v2891_v14 = vadd.f32 %v2890_v12, %v2889_v9  ;;  %v2892_v15 = vpop.f32.mrb[18].mxu1  ;;  %v2799_v16 = vpop.f32.mrb[19].mxu0 }
 0x11f   : > { %v2800_v17 = vadd.f32 %v2799_v16, %v2798_v13  ;;  %v2893_v18 = vpop.f32.mrb[19].mxu1 }
 0x120   : > { %v3604_v19 = vadd.f32 %v2891_v14, %v2797_v11  ;;  %v2894_v20 = vadd.f32 %v2893_v18, %v2892_v15 }
 0x122   : > { %v3606_v21 = vadd.f32 %v2894_v20, %v2800_v17 }
 0x123   : > { %v2801_v22 = vpop.f32.mrb[20].mxu0 }
 0x124   : > { %v2895_v23 = vpop.f32.mrb[20].mxu1  ;;  %v2802_v24 = vpop.f32.mrb[21].mxu0 }
 0x125   : > { %v2803_v25 = vadd.f32 %v2802_v24, %v2801_v22  ;;  %v2896_v26 = vpop.f32.mrb[21].mxu1  ;;  %v2804_v28 = vpop.f32.mrb[22].mxu0 }
 0x126   : > { %v2897_v30 = vadd.f32 %v2896_v26, %v2895_v23  ;;  %v2898_v31 = vpop.f32.mrb[22].mxu1  ;;  %v2805_v32 = vpop.f32.mrb[23].mxu0 }
 0x127   : > { %v2806_v33 = vadd.f32 %v2805_v32, %v2804_v28  ;;  %v2899_v34 = vpop.f32.mrb[23].mxu1 }
 0x128   : > { %v3608_v35 = vadd.f32 %v2897_v30, %v2803_v25  ;;  %v2900_v36 = vadd.f32 %v2899_v34, %v2898_v31 }
 0x12a   : > { %v3610_v37 = vadd.f32 %v2900_v36, %v2806_v33 }
 0x12b   : > { %v2807_v38 = vpop.f32.mrb[24].mxu0 }
 0x12c   : > { %v2901_v39 = vpop.f32.mrb[24].mxu1  ;;  %v2808_v40 = vpop.f32.mrb[25].mxu0 }
 0x12d   : > { %v2809_v42 = vadd.f32 %v2808_v40, %v2807_v38  ;;  %v2902_v44 = vpop.f32.mrb[25].mxu1  ;;  %v2810_v45 = vpop.f32.mrb[26].mxu0 }
 0x12e   : > { %v2903_v46 = vadd.f32 %v2902_v44, %v2901_v39  ;;  %v2904_v47 = vpop.f32.mrb[26].mxu1  ;;  %v2811_v48 = vpop.f32.mrb[27].mxu0 }
 0x12f   : > { %v2812_v49 = vadd.f32 %v2811_v48, %v2810_v45  ;;  %v2905_v50 = vpop.f32.mrb[27].mxu1 }
 0x130   : > { %v3612_v51 = vadd.f32 %v2903_v46, %v2809_v42  ;;  %v2906_v52 = vadd.f32 %v2905_v50, %v2904_v47 }
 0x132   : > { %v3614_v53 = vadd.f32 %v2906_v52, %v2812_v49 }
 0x133   : > { %v2813_v54 = vpop.f32.mrb[28].mxu0 }
 0x134   : > { %v2907_v56 = vpop.f32.mrb[28].mxu1  ;;  %v2814_v58 = vpop.f32.mrb[29].mxu0 }
 0x135   : > { %v2815_v59 = vadd.f32 %v2814_v58, %v2813_v54  ;;  %v2908_v60 = vpop.f32.mrb[29].mxu1  ;;  %v2816_v61 = vpop.f32.mrb[30].mxu0 }
 0x136   : > { %v2909_v62 = vadd.f32 %v2908_v60, %v2907_v56  ;;  %v2910_v63 = vpop.f32.mrb[30].mxu1  ;;  %v2817_v0 = vpop.f32.mrb[31].mxu0 }
 0x137   : > { %v2818_v1 = vadd.f32 %v2817_v0, %v2816_v61  ;;  %v2911_v2 = vpop.f32.mrb[31].mxu1 }
 0x138   : > { %v3616_v3 = vadd.f32 %v2909_v62, %v2815_v59  ;;  %v2912_v4 = vadd.f32 %v2911_v2, %v2910_v63 }
 0x13a   : > { %v3618_v6 = vadd.f32 %v2912_v4, %v2818_v1 }
 0x13b   : > { %v2819_v8 = vpop.f32.mrb[32].mxu0 }
 0x13c   : > { %v2913_v9 = vpop.f32.mrb[32].mxu1  ;;  %v2820_v10 = vpop.f32.mrb[33].mxu0 }
 0x13d   : > { %v2821_v11 = vadd.f32 %v2820_v10, %v2819_v8  ;;  %v2914_v12 = vpop.f32.mrb[33].mxu1  ;;  %v2822_v13 = vpop.f32.mrb[34].mxu0 }
 0x13e   : > { %v2915_v14 = vadd.f32 %v2914_v12, %v2913_v9  ;;  %v2916_v15 = vpop.f32.mrb[34].mxu1  ;;  %v2823_v16 = vpop.f32.mrb[35].mxu0 }
 0x13f   : > { %v2824_v17 = vadd.f32 %v2823_v16, %v2822_v13  ;;  %v2917_v18 = vpop.f32.mrb[35].mxu1 }
 0x140   : > { %v3620_v20 = vadd.f32 %v2915_v14, %v2821_v11  ;;  %v2918_v22 = vadd.f32 %v2917_v18, %v2916_v15 }
 0x142   : > { %v3622_v23 = vadd.f32 %v2918_v22, %v2824_v17 }
 0x143   : > { %v2825_v24 = vpop.f32.mrb[36].mxu0 }
 0x144   : > { %v2919_v25 = vpop.f32.mrb[36].mxu1  ;;  %v2826_v26 = vpop.f32.mrb[37].mxu0 }
 0x145   : > { %v2827_v28 = vadd.f32 %v2826_v26, %v2825_v24  ;;  %v2920_v30 = vpop.f32.mrb[37].mxu1  ;;  %v2828_v31 = vpop.f32.mrb[38].mxu0 }
 0x146   : > { %v2921_v32 = vadd.f32 %v2920_v30, %v2919_v25  ;;  %v2922_v33 = vpop.f32.mrb[38].mxu1  ;;  %v2829_v34 = vpop.f32.mrb[39].mxu0 }
 0x147   : > { %v2830_v36 = vadd.f32 %v2829_v34, %v2828_v31  ;;  %v2923_v38 = vpop.f32.mrb[39].mxu1 }
 0x148   : > { %v3624_v39 = vadd.f32 %v2921_v32, %v2827_v28  ;;  %v2924_v40 = vadd.f32 %v2923_v38, %v2922_v33 }
 0x14a   : > { %v3626_v42 = vadd.f32 %v2924_v40, %v2830_v36 }
 0x14b   : > { %v2831_v44 = vpop.f32.mrb[40].mxu0 }
 0x14c   : > { %v2925_v45 = vpop.f32.mrb[40].mxu1  ;;  %v2832_v46 = vpop.f32.mrb[41].mxu0 }
 0x14d   : > { %v2833_v47 = vadd.f32 %v2832_v46, %v2831_v44  ;;  %v2926_v48 = vpop.f32.mrb[41].mxu1  ;;  %v2834_v49 = vpop.f32.mrb[42].mxu0 }
 0x14e   : > { %v2927_v50 = vadd.f32 %v2926_v48, %v2925_v45  ;;  %v2928_v52 = vpop.f32.mrb[42].mxu1  ;;  %v2835_v54 = vpop.f32.mrb[43].mxu0 }
 0x14f   : > { %v2836_v56 = vadd.f32 %v2835_v54, %v2834_v49  ;;  %v2929_v58 = vpop.f32.mrb[43].mxu1 }
 0x150   : > { %v3628_v59 = vadd.f32 %v2927_v50, %v2833_v47  ;;  %v2930_v60 = vadd.f32 %v2929_v58, %v2928_v52  ;;  %v3644_v58 = vld [vmem:[%s3727_s2] ss:$0 sm:$0xff] }
 0x152   : > { %v3630_v61 = vadd.f32 %v2930_v60, %v2836_v56 }
 0x153   : > { %v2837_v62 = vpop.f32.mrb[44].mxu0 }
 0x154   : > { %v2931_v63 = vpop.f32.mrb[44].mxu1  ;;  %v2838_v0 = vpop.f32.mrb[45].mxu0 }
 0x155   : > { %v2839_v1 = vadd.f32 %v2838_v0, %v2837_v62  ;;  %v2932_v2 = vpop.f32.mrb[45].mxu1  ;;  %v2840_v4 = vpop.f32.mrb[46].mxu0 }
 0x156   : > { %v2933_v8 = vadd.f32 %v2932_v2, %v2931_v63  ;;  %v2934_v9 = vpop.f32.mrb[46].mxu1  ;;  %v2841_v10 = vpop.f32.mrb[47].mxu0 }
 0x157   : > { %v2842_v11 = vadd.f32 %v2841_v10, %v2840_v4  ;;  %v2935_v12 = vpop.f32.mrb[47].mxu1 }
 0x158   : > { %v3632_v13 = vadd.f32 %v2933_v8, %v2839_v1  ;;  %v2936_v14 = vadd.f32 %v2935_v12, %v2934_v9 }
 0x15a   : > { %v3634_v15 = vadd.f32 %v2936_v14, %v2842_v11 }
 0x15b   : > { %v2843_v16 = vpop.f32.mrb[48].mxu0 }
 0x15c   : > { %v2937_v17 = vpop.f32.mrb[48].mxu1  ;;  %v2844_v18 = vpop.f32.mrb[49].mxu0 }
 0x15d   : > { %v2845_v22 = vadd.f32 %v2844_v18, %v2843_v16  ;;  %v2938_v24 = vpop.f32.mrb[49].mxu1  ;;  %v2846_v25 = vpop.f32.mrb[50].mxu0 }
 0x15e   : > { %v2939_v26 = vadd.f32 %v2938_v24, %v2937_v17  ;;  %v2940_v28 = vpop.f32.mrb[50].mxu1  ;;  %v2847_v30 = vpop.f32.mrb[51].mxu0 }
 0x15f   : > { %v2848_v31 = vadd.f32 %v2847_v30, %v2846_v25  ;;  %v2941_v32 = vpop.f32.mrb[51].mxu1 }
 0x160   : > { %v3636_v33 = vadd.f32 %v2939_v26, %v2845_v22  ;;  %v2942_v34 = vadd.f32 %v2941_v32, %v2940_v28 }
 0x162   : > { %v3638_v36 = vadd.f32 %v2942_v34, %v2848_v31 }
 0x163   : > { %v2959_v38 = vpop.f32.mrb[52].mxu0 }
 0x164   : > { %v3053_v40 = vpop.f32.mrb[52].mxu1  ;;  %v2960_v44 = vpop.f32.mrb[53].mxu0 }
 0x165   : > { %v2961_v45 = vadd.f32 %v2960_v44, %v2959_v38  ;;  %v3054_v46 = vpop.f32.mrb[53].mxu1  ;;  %v2962_v47 = vpop.f32.mrb[54].mxu0 }
 0x166   : > { %v3055_v48 = vadd.f32 %v3054_v46, %v3053_v40  ;;  %v3056_v49 = vpop.f32.mrb[54].mxu1  ;;  %v2963_v50 = vpop.f32.mrb[55].mxu0 }
 0x167   : > { %v1769_v52 = vadd.f32 %v2961_v45, %v3588_v27  ;;  %v2964_v54 = vadd.f32 %v2963_v50, %v2962_v47  ;;  %v3057_v56 = vpop.f32.mrb[55].mxu1 }
 0x168   : > { %v3058_v60 = vadd.f32 %v3057_v56, %v3056_v49 }
 0x169   : > { %v1906_v62 = vadd.f32 %v3055_v48, %v1769_v52  ;;  %v1772_v63 = vadd.f32 %v2964_v54, %v3590_v29 }
 0x16b   : > { %v2096_v0 = vadd.f32 %v3644_v58, %v1906_v62  ;;  %v1909_v1 = vadd.f32 %v3058_v60, %v1772_v63  ;;  %v2965_v2 = vpop.f32.mrb[56].mxu0 }
 0x16c   : > { %v3059_v4 = vpop.f32.mrb[56].mxu1  ;;  %v2966_v8 = vpop.f32.mrb[57].mxu0 }
 0x16d   : > { %v2148_v9 = vmul.f32 0.2, %v2096_v0  ;;  %v2097_v27 = vadd.f32 %v3644_v58, %v1909_v1  ;;  %v2967_v10 = vadd.f32 %v2966_v8, %v2965_v2  ;;  %v3060_v11 = vpop.f32.mrb[57].mxu1  ;;  %v2968_v12 = vpop.f32.mrb[58].mxu0  ;;  %vm2122_vm0 = vcmp.ge.f32.partialorder %v2096_v0, 0.0 }
 0x16e   : > { %v3061_v14 = vadd.f32 %v3060_v11, %v3059_v4  ;;  %v3062_v16 = vpop.f32.mrb[58].mxu1  ;;  %v2969_v17 = vpop.f32.mrb[59].mxu0 }
 0x16f   : > { %vm2123_vm1 = vcmp.ge.f32.partialorder %v2097_v27, 0.0  ;;  %v2149_v18 = vmul.f32 0.2, %v2097_v27  ;;  %v1777_v29 = vadd.f32 %v2967_v10, %v3592_v41  ;;  %v3063_v22 = vpop.f32.mrb[59].mxu1  ;;  %v2970_v24 = vadd.f32 %v2969_v17, %v2968_v12 }
 0x170   : > { %v3064_v25 = vadd.f32 %v3063_v22, %v3062_v16  ;;  %v2174_v26 = vsel %vm2122_vm0, %v2096_v0, %v2148_v9 }
 0x171   : > { %v2175_v28 = vsel %vm2123_vm1, %v2097_v27, %v2149_v18  ;;  %v1914_v30 = vadd.f32 %v3061_v14, %v1777_v29  ;;  %v1780_v32 = vadd.f32 %v2970_v24, %v3594_v43 }
 0x172   : > { %v2681_v31 = vpack.c.bf16 %v2175_v28, %v2174_v26 }
 0x173   : > { %v2098_v34 = vadd.f32 %v3644_v58, %v1914_v30  ;;  %v2971_v38 = vpop.f32.mrb[60].mxu0  ;;  %v1917_v41 = vadd.f32 %v3064_v25, %v1780_v32 }
 0x174   : > { %2682 = vst [vmem:[%s3654_s17] sm:$0xff] %v2681_v31   ;;  %v3065_v40 = vpop.f32.mrb[60].mxu1  ;;  %v2972_v44 = vpop.f32.mrb[61].mxu0 }
 0x175   : > { %v2973_v45 = vadd.f32 %v2972_v44, %v2971_v38  ;;  %v3066_v46 = vpop.f32.mrb[61].mxu1  ;;  %v2974_v47 = vpop.f32.mrb[62].mxu0  ;;  %v2150_v48 = vmul.f32 0.2, %v2098_v34  ;;  %v2099_v49 = vadd.f32 %v3644_v58, %v1917_v41  ;;  %vm2124_vm2 = vcmp.ge.f32.partialorder %v2098_v34, 0.0 }
 0x176   : > { %v3067_v50 = vadd.f32 %v3066_v46, %v3065_v40  ;;  %v3068_v52 = vpop.f32.mrb[62].mxu1  ;;  %v2975_v54 = vpop.f32.mrb[63].mxu0 }
 0x177   : > { %v1785_v56 = vadd.f32 %v2973_v45, %v3596_v55  ;;  %v2976_v43 = vadd.f32 %v2975_v54, %v2974_v47  ;;  %v3069_v60 = vpop.f32.mrb[63].mxu1  ;;  %vm2125_vm3 = vcmp.ge.f32.partialorder %v2099_v49, 0.0  ;;  %v2151_v62 = vmul.f32 0.2, %v2099_v49 }
 0x178   : > { %v3070_v63 = vadd.f32 %v3069_v60, %v3068_v52  ;;  %v2176_v2 = vsel %vm2124_vm2, %v2098_v34, %v2150_v48 }
 0x179   : > { %v1922_v0 = vadd.f32 %v3067_v50, %v1785_v56  ;;  %v1788_v1 = vadd.f32 %v2976_v43, %v3598_v57  ;;  %v2177_v4 = vsel %vm2125_vm3, %v2099_v49, %v2151_v62 }
 0x17a   : > { %v2686_v8 = vpack.c.bf16 %v2177_v4, %v2176_v2 }
 0x17b   : > { %v2100_v9 = vadd.f32 %v3644_v58, %v1922_v0  ;;  %v1925_v27 = vadd.f32 %v3070_v63, %v1788_v1  ;;  %v2977_v10 = vpop.f32.mrb[64].mxu0 }
 0x17c   : > { %v3071_v11 = vpop.f32.mrb[64].mxu1  ;;  %v2978_v12 = vpop.f32.mrb[65].mxu0  ;;  %2743 = vst [vmem:[%s3654_s17 + $0x8] sm:$0xff] %v2686_v8  }
 0x17d   : > { %v2152_v55 = vmul.f32 0.2, %v2100_v9  ;;  %v2101_v14 = vadd.f32 %v3644_v58, %v1925_v27  ;;  %v2979_v16 = vadd.f32 %v2978_v12, %v2977_v10  ;;  %v3072_v17 = vpop.f32.mrb[65].mxu1  ;;  %v2980_v18 = vpop.f32.mrb[66].mxu0  ;;  %vm2126_vm4 = vcmp.ge.f32.partialorder %v2100_v9, 0.0 }
 0x17e   : > { %v3073_v29 = vadd.f32 %v3072_v17, %v3071_v11  ;;  %v3074_v57 = vpop.f32.mrb[66].mxu1  ;;  %v2981_v22 = vpop.f32.mrb[67].mxu0 }
 0x17f   : > { %vm2127_vm5 = vcmp.ge.f32.partialorder %v2101_v14, 0.0  ;;  %v2153_v24 = vmul.f32 0.2, %v2101_v14  ;;  %v1793_v25 = vadd.f32 %v2979_v16, %v3600_v5  ;;  %v3075_v26 = vpop.f32.mrb[67].mxu1  ;;  %v2982_v28 = vadd.f32 %v2981_v22, %v2980_v18 }
 0x180   : > { %v3076_v30 = vadd.f32 %v3075_v26, %v3074_v57  ;;  %v2178_v31 = vsel %vm2126_vm4, %v2100_v9, %v2152_v55 }
 0x181   : > { %v2179_v32 = vsel %vm2127_vm5, %v2101_v14, %v2153_v24  ;;  %v1930_v34 = vadd.f32 %v3073_v29, %v1793_v25  ;;  %v1796_v41 = vadd.f32 %v2982_v28, %v3602_v7 }
 0x182   : > { %v2691_v38 = vpack.c.bf16 %v2179_v32, %v2178_v31 }
 0x183   : > { %v2102_v40 = vadd.f32 %v3644_v58, %v1930_v34  ;;  %v2983_v44 = vpop.f32.mrb[68].mxu0  ;;  %v1933_v45 = vadd.f32 %v3076_v30, %v1796_v41 }
 0x184   : > { %2744 = vst [vmem:[%s3654_s17 + $0x10] sm:$0xff] %v2691_v38   ;;  %v3077_v46 = vpop.f32.mrb[68].mxu1  ;;  %v2984_v47 = vpop.f32.mrb[69].mxu0 }
 0x185   : > { %v2985_v48 = vadd.f32 %v2984_v47, %v2983_v44  ;;  %v3078_v49 = vpop.f32.mrb[69].mxu1  ;;  %v2986_v50 = vpop.f32.mrb[70].mxu0  ;;  %v2154_v5 = vmul.f32 0.2, %v2102_v40  ;;  %v2103_v52 = vadd.f32 %v3644_v58, %v1933_v45  ;;  %vm2128_vm6 = vcmp.ge.f32.partialorder %v2102_v40, 0.0 }
 0x186   : > { %v3079_v54 = vadd.f32 %v3078_v49, %v3077_v46  ;;  %v3080_v56 = vpop.f32.mrb[70].mxu1  ;;  %v2987_v43 = vpop.f32.mrb[71].mxu0 }
 0x187   : > { %v1801_v60 = vadd.f32 %v2985_v48, %v3604_v19  ;;  %v2988_v7 = vadd.f32 %v2987_v43, %v2986_v50  ;;  %v3081_v62 = vpop.f32.mrb[71].mxu1  ;;  %vm2129_vm7 = vcmp.ge.f32.partialorder %v2103_v52, 0.0  ;;  %v2155_v63 = vmul.f32 0.2, %v2103_v52 }
 0x188   : > { %v3082_v0 = vadd.f32 %v3081_v62, %v3080_v56  ;;  %v2180_v4 = vsel %vm2128_vm6, %v2102_v40, %v2154_v5 }
 0x189   : > { %v1938_v1 = vadd.f32 %v3079_v54, %v1801_v60  ;;  %v1804_v2 = vadd.f32 %v2988_v7, %v3606_v21  ;;  %v2181_v8 = vsel %vm2129_vm7, %v2103_v52, %v2155_v63 }
 0x18a   : > { %v2696_v9 = vpack.c.bf16 %v2181_v8, %v2180_v4 }
 0x18b   : > { %v2104_v27 = vadd.f32 %v3644_v58, %v1938_v1  ;;  %v1941_v10 = vadd.f32 %v3082_v0, %v1804_v2  ;;  %v2989_v11 = vpop.f32.mrb[72].mxu0 }
 0x18c   : > { %v3083_v12 = vpop.f32.mrb[72].mxu1  ;;  %v2990_v55 = vpop.f32.mrb[73].mxu0  ;;  %2745 = vst [vmem:[%s3654_s17 + $0x18] sm:$0xff] %v2696_v9  }
 0x18d   : > { %v2156_v19 = vmul.f32 0.2, %v2104_v27  ;;  %v2105_v14 = vadd.f32 %v3644_v58, %v1941_v10  ;;  %v2991_v16 = vadd.f32 %v2990_v55, %v2989_v11  ;;  %v3084_v17 = vpop.f32.mrb[73].mxu1  ;;  %v2992_v18 = vpop.f32.mrb[74].mxu0  ;;  %vm2130_vm8 = vcmp.ge.f32.partialorder %v2104_v27, 0.0 }
 0x18e   : > { %v3085_v29 = vadd.f32 %v3084_v17, %v3083_v12  ;;  %v3086_v21 = vpop.f32.mrb[74].mxu1  ;;  %v2993_v57 = vpop.f32.mrb[75].mxu0 }
 0x18f   : > { %vm2131_vm9 = vcmp.ge.f32.partialorder %v2105_v14, 0.0  ;;  %v2157_v22 = vmul.f32 0.2, %v2105_v14  ;;  %v1809_v24 = vadd.f32 %v2991_v16, %v3608_v35  ;;  %v3087_v25 = vpop.f32.mrb[75].mxu1  ;;  %v2994_v26 = vadd.f32 %v2993_v57, %v2992_v18 }
 0x190   : > { %v3088_v28 = vadd.f32 %v3087_v25, %v3086_v21  ;;  %v2182_v30 = vsel %vm2130_vm8, %v2104_v27, %v2156_v19 }
 0x191   : > { %v2183_v31 = vsel %vm2131_vm9, %v2105_v14, %v2157_v22  ;;  %v1946_v32 = vadd.f32 %v3085_v29, %v1809_v24  ;;  %v1812_v38 = vadd.f32 %v2994_v26, %v3610_v37 }
 0x192   : > { %v2701_v34 = vpack.c.bf16 %v2183_v31, %v2182_v30 }
 0x193   : > { %v2106_v41 = vadd.f32 %v3644_v58, %v1946_v32  ;;  %v2995_v40 = vpop.f32.mrb[76].mxu0  ;;  %v1949_v44 = vadd.f32 %v3088_v28, %v1812_v38 }
 0x194   : > { %2746 = vst [vmem:[%s3654_s17 + $0x20] sm:$0xff] %v2701_v34   ;;  %v3089_v45 = vpop.f32.mrb[76].mxu1  ;;  %v2996_v46 = vpop.f32.mrb[77].mxu0 }
 0x195   : > { %v2997_v47 = vadd.f32 %v2996_v46, %v2995_v40  ;;  %v3090_v48 = vpop.f32.mrb[77].mxu1  ;;  %v2998_v49 = vpop.f32.mrb[78].mxu0  ;;  %v2158_v35 = vmul.f32 0.2, %v2106_v41  ;;  %v2107_v50 = vadd.f32 %v3644_v58, %v1949_v44  ;;  %vm2132_vm10 = vcmp.ge.f32.partialorder %v2106_v41, 0.0 }
 0x196   : > { %v3091_v5 = vadd.f32 %v3090_v48, %v3089_v45  ;;  %v3092_v52 = vpop.f32.mrb[78].mxu1  ;;  %v2999_v54 = vpop.f32.mrb[79].mxu0 }
 0x197   : > { %v1817_v56 = vadd.f32 %v2997_v47, %v3612_v51  ;;  %v3000_v37 = vadd.f32 %v2999_v54, %v2998_v49  ;;  %v3093_v43 = vpop.f32.mrb[79].mxu1  ;;  %vm2133_vm11 = vcmp.ge.f32.partialorder %v2107_v50, 0.0  ;;  %v2159_v60 = vmul.f32 0.2, %v2107_v50 }
 0x198   : > { %v3094_v7 = vadd.f32 %v3093_v43, %v3092_v52  ;;  %v2184_v0 = vsel %vm2132_vm10, %v2106_v41, %v2158_v35 }
 0x199   : > { %v1954_v62 = vadd.f32 %v3091_v5, %v1817_v56  ;;  %v1820_v63 = vadd.f32 %v3000_v37, %v3614_v53  ;;  %v2185_v1 = vsel %vm2133_vm11, %v2107_v50, %v2159_v60 }
 0x19a   : > { %v2706_v2 = vpack.c.bf16 %v2185_v1, %v2184_v0 }
 0x19b   : > { %v2108_v4 = vadd.f32 %v3644_v58, %v1954_v62  ;;  %v1957_v8 = vadd.f32 %v3094_v7, %v1820_v63  ;;  %v3001_v9 = vpop.f32.mrb[80].mxu0 }
 0x19c   : > { %v3095_v27 = vpop.f32.mrb[80].mxu1  ;;  %v3002_v10 = vpop.f32.mrb[81].mxu0  ;;  %2747 = vst [vmem:[%s3654_s17 + $0x28] sm:$0xff] %v2706_v2  }
 0x19d   : > { %v2160_v51 = vmul.f32 0.2, %v2108_v4  ;;  %v2109_v11 = vadd.f32 %v3644_v58, %v1957_v8  ;;  %v3003_v12 = vadd.f32 %v3002_v10, %v3001_v9  ;;  %v3096_v55 = vpop.f32.mrb[81].mxu1  ;;  %v3004_v19 = vpop.f32.mrb[82].mxu0  ;;  %vm2134_vm12 = vcmp.ge.f32.partialorder %v2108_v4, 0.0 }
 0x19e   : > { %v3097_v14 = vadd.f32 %v3096_v55, %v3095_v27  ;;  %v3098_v53 = vpop.f32.mrb[82].mxu1  ;;  %v3005_v16 = vpop.f32.mrb[83].mxu0 }
 0x19f   : > { %vm2135_vm13 = vcmp.ge.f32.partialorder %v2109_v11, 0.0  ;;  %v2161_v17 = vmul.f32 0.2, %v2109_v11  ;;  %v1825_v18 = vadd.f32 %v3003_v12, %v3616_v3  ;;  %v3099_v29 = vpop.f32.mrb[83].mxu1  ;;  %v3006_v21 = vadd.f32 %v3005_v16, %v3004_v19 }
 0x1a0   : > { %v3100_v57 = vadd.f32 %v3099_v29, %v3098_v53  ;;  %v2186_v22 = vsel %vm2134_vm12, %v2108_v4, %v2160_v51 }
 0x1a1   : > { %v2187_v24 = vsel %vm2135_vm13, %v2109_v11, %v2161_v17  ;;  %v1962_v25 = vadd.f32 %v3097_v14, %v1825_v18  ;;  %v1828_v28 = vadd.f32 %v3006_v21, %v3618_v6 }
 0x1a2   : > { %v2711_v26 = vpack.c.bf16 %v2187_v24, %v2186_v22 }
 0x1a3   : > { %v2110_v30 = vadd.f32 %v3644_v58, %v1962_v25  ;;  %v3007_v31 = vpop.f32.mrb[84].mxu0  ;;  %v1965_v32 = vadd.f32 %v3100_v57, %v1828_v28 }
 0x1a4   : > { %2748 = vst [vmem:[%s3654_s17 + $0x30] sm:$0xff] %v2711_v26   ;;  %v3101_v34 = vpop.f32.mrb[84].mxu1  ;;  %v3008_v38 = vpop.f32.mrb[85].mxu0 }
 0x1a5   : > { %v3009_v41 = vadd.f32 %v3008_v38, %v3007_v31  ;;  %v3102_v40 = vpop.f32.mrb[85].mxu1  ;;  %v3010_v44 = vpop.f32.mrb[86].mxu0  ;;  %v2162_v3 = vmul.f32 0.2, %v2110_v30  ;;  %v2111_v45 = vadd.f32 %v3644_v58, %v1965_v32  ;;  %vm2136_vm14 = vcmp.ge.f32.partialorder %v2110_v30, 0.0 }
 0x1a6   : > { %v3103_v46 = vadd.f32 %v3102_v40, %v3101_v34  ;;  %v3104_v47 = vpop.f32.mrb[86].mxu1  ;;  %v3011_v48 = vpop.f32.mrb[87].mxu0 }
 0x1a7   : > { %v1833_v49 = vadd.f32 %v3009_v41, %v3620_v20  ;;  %v3012_v6 = vadd.f32 %v3011_v48, %v3010_v44  ;;  %v3105_v35 = vpop.f32.mrb[87].mxu1  ;;  %vm2137_vm15 = vcmp.ge.f32.partialorder %v2111_v45, 0.0  ;;  %v2163_v50 = vmul.f32 0.2, %v2111_v45 }
 0x1a8   : > { %v3106_v5 = vadd.f32 %v3105_v35, %v3104_v47  ;;  %v2188_v56 = vsel %vm2136_vm14, %v2110_v30, %v2162_v3 }
 0x1a9   : > { %v1970_v52 = vadd.f32 %v3103_v46, %v1833_v49  ;;  %v1836_v54 = vadd.f32 %v3012_v6, %v3622_v23  ;;  %v2189_v37 = vsel %vm2137_vm15, %v2111_v45, %v2163_v50 }
 0x1aa   : > { %v2716_v43 = vpack.c.bf16 %v2189_v37, %v2188_v56 }
 0x1ab   : > { %v2112_v60 = vadd.f32 %v3644_v58, %v1970_v52  ;;  %v1973_v7 = vadd.f32 %v3106_v5, %v1836_v54  ;;  %v3013_v62 = vpop.f32.mrb[88].mxu0 }
 0x1ac   : > { %v3107_v63 = vpop.f32.mrb[88].mxu1  ;;  %v3014_v0 = vpop.f32.mrb[89].mxu0  ;;  %2749 = vst [vmem:[%s3654_s17 + $0x38] sm:$0xff] %v2716_v43  }
 0x1ad   : > { %v2164_v20 = vmul.f32 0.2, %v2112_v60  ;;  %v2113_v1 = vadd.f32 %v3644_v58, %v1973_v7  ;;  %v3015_v2 = vadd.f32 %v3014_v0, %v3013_v62  ;;  %v3108_v4 = vpop.f32.mrb[89].mxu1  ;;  %v3016_v8 = vpop.f32.mrb[90].mxu0  ;;  %vm2138_vm0 = vcmp.ge.f32.partialorder %v2112_v60, 0.0 }
 0x1ae   : > { %v3109_v9 = vadd.f32 %v3108_v4, %v3107_v63  ;;  %v3110_v23 = vpop.f32.mrb[90].mxu1  ;;  %v3017_v27 = vpop.f32.mrb[91].mxu0 }
 0x1af   : > { %vm2139_vm1 = vcmp.ge.f32.partialorder %v2113_v1, 0.0  ;;  %v2165_v10 = vmul.f32 0.2, %v2113_v1  ;;  %v1841_v51 = vadd.f32 %v3015_v2, %v3624_v39  ;;  %v3111_v11 = vpop.f32.mrb[91].mxu1  ;;  %v3018_v12 = vadd.f32 %v3017_v27, %v3016_v8 }
 0x1b0   : > { %v3112_v55 = vadd.f32 %v3111_v11, %v3110_v23  ;;  %v2190_v19 = vsel %vm2138_vm0, %v2112_v60, %v2164_v20 }
 0x1b1   : > { %v2191_v14 = vsel %vm2139_vm1, %v2113_v1, %v2165_v10  ;;  %v1978_v53 = vadd.f32 %v3109_v9, %v1841_v51  ;;  %v1844_v17 = vadd.f32 %v3018_v12, %v3626_v42 }
 0x1b2   : > { %v2721_v16 = vpack.c.bf16 %v2191_v14, %v2190_v19 }
 0x1b3   : > { %v2114_v18 = vadd.f32 %v3644_v58, %v1978_v53  ;;  %v3019_v29 = vpop.f32.mrb[92].mxu0  ;;  %v1981_v21 = vadd.f32 %v3112_v55, %v1844_v17 }
 0x1b4   : > { %2750 = vst [vmem:[%s3654_s17 + $0x40] sm:$0xff] %v2721_v16   ;;  %v3113_v57 = vpop.f32.mrb[92].mxu1  ;;  %v3020_v22 = vpop.f32.mrb[93].mxu0 }
 0x1b5   : > { %v3021_v24 = vadd.f32 %v3020_v22, %v3019_v29  ;;  %v3114_v25 = vpop.f32.mrb[93].mxu1  ;;  %v3022_v26 = vpop.f32.mrb[94].mxu0  ;;  %v2166_v39 = vmul.f32 0.2, %v2114_v18  ;;  %v2115_v28 = vadd.f32 %v3644_v58, %v1981_v21  ;;  %vm2140_vm2 = vcmp.ge.f32.partialorder %v2114_v18, 0.0 }
 0x1b6   : > { %v3115_v30 = vadd.f32 %v3114_v25, %v3113_v57  ;;  %v3116_v31 = vpop.f32.mrb[94].mxu1  ;;  %v3023_v32 = vpop.f32.mrb[95].mxu0 }
 0x1b7   : > { %v1849_v34 = vadd.f32 %v3021_v24, %v3628_v59  ;;  %v3024_v42 = vadd.f32 %v3023_v32, %v3022_v26  ;;  %v3117_v38 = vpop.f32.mrb[95].mxu1  ;;  %vm2141_vm3 = vcmp.ge.f32.partialorder %v2115_v28, 0.0  ;;  %v2167_v41 = vmul.f32 0.2, %v2115_v28 }
 0x1b8   : > { %v3118_v40 = vadd.f32 %v3117_v38, %v3116_v31  ;;  %v2192_v45 = vsel %vm2140_vm2, %v2114_v18, %v2166_v39 }
 0x1b9   : > { %v1986_v44 = vadd.f32 %v3115_v30, %v1849_v34  ;;  %v1852_v3 = vadd.f32 %v3024_v42, %v3630_v61  ;;  %v2193_v46 = vsel %vm2141_vm3, %v2115_v28, %v2167_v41 }
 0x1ba   : > { %v2726_v47 = vpack.c.bf16 %v2193_v46, %v2192_v45 }
 0x1bb   : > { %v2116_v48 = vadd.f32 %v3644_v58, %v1986_v44  ;;  %v1989_v49 = vadd.f32 %v3118_v40, %v1852_v3  ;;  %v3025_v6 = vpop.f32.mrb[96].mxu0 }
 0x1bc   : > { %v3119_v35 = vpop.f32.mrb[96].mxu1  ;;  %v3026_v50 = vpop.f32.mrb[97].mxu0  ;;  %2751 = vst [vmem:[%s3654_s17 + $0x48] sm:$0xff] %v2726_v47  }
 0x1bd   : > { %v2168_v59 = vmul.f32 0.2, %v2116_v48  ;;  %v2117_v5 = vadd.f32 %v3644_v58, %v1989_v49  ;;  %v3027_v52 = vadd.f32 %v3026_v50, %v3025_v6  ;;  %v3120_v54 = vpop.f32.mrb[97].mxu1  ;;  %v3028_v56 = vpop.f32.mrb[98].mxu0  ;;  %vm2142_vm4 = vcmp.ge.f32.partialorder %v2116_v48, 0.0 }
 0x1be   : > { %v3121_v37 = vadd.f32 %v3120_v54, %v3119_v35  ;;  %v3122_v61 = vpop.f32.mrb[98].mxu1  ;;  %v3029_v43 = vpop.f32.mrb[99].mxu0 }
 0x1bf   : > { %vm2143_vm5 = vcmp.ge.f32.partialorder %v2117_v5, 0.0  ;;  %v2169_v60 = vmul.f32 0.2, %v2117_v5  ;;  %v1857_v7 = vadd.f32 %v3027_v52, %v3632_v13  ;;  %v3123_v62 = vpop.f32.mrb[99].mxu1  ;;  %v3030_v63 = vadd.f32 %v3029_v43, %v3028_v56 }
 0x1c0   : > { %v3124_v0 = vadd.f32 %v3123_v62, %v3122_v61  ;;  %v2194_v20 = vsel %vm2142_vm4, %v2116_v48, %v2168_v59 }
 0x1c1   : > { %v2195_v1 = vsel %vm2143_vm5, %v2117_v5, %v2169_v60  ;;  %v1994_v2 = vadd.f32 %v3121_v37, %v1857_v7  ;;  %v1860_v8 = vadd.f32 %v3030_v63, %v3634_v15 }
 0x1c2   : > { %v2731_v4 = vpack.c.bf16 %v2195_v1, %v2194_v20 }
 0x1c3   : > { %v2118_v9 = vadd.f32 %v3644_v58, %v1994_v2  ;;  %v3031_v23 = vpop.f32.mrb[100].mxu0  ;;  %v1997_v27 = vadd.f32 %v3124_v0, %v1860_v8 }
 0x1c4   : > { %2752 = vst [vmem:[%s3654_s17 + $0x50] sm:$0xff] %v2731_v4   ;;  %v3125_v10 = vpop.f32.mrb[100].mxu1  ;;  %v3032_v51 = vpop.f32.mrb[101].mxu0 }
 0x1c5   : > { %v3033_v11 = vadd.f32 %v3032_v51, %v3031_v23  ;;  %v3126_v12 = vpop.f32.mrb[101].mxu1  ;;  %v3034_v55 = vpop.f32.mrb[102].mxu0  ;;  %v2170_v13 = vmul.f32 0.2, %v2118_v9  ;;  %v2119_v19 = vadd.f32 %v3644_v58, %v1997_v27  ;;  %vm2144_vm6 = vcmp.ge.f32.partialorder %v2118_v9, 0.0 }
 0x1c6   : > { %v3127_v14 = vadd.f32 %v3126_v12, %v3125_v10  ;;  %v3128_v53 = vpop.f32.mrb[102].mxu1  ;;  %v3035_v16 = vpop.f32.mrb[103].mxu0 }
 0x1c7   : > { %v1865_v15 = vadd.f32 %v3033_v11, %v3636_v33  ;;  %v3036_v17 = vadd.f32 %v3035_v16, %v3034_v55  ;;  %v3129_v18 = vpop.f32.mrb[103].mxu1  ;;  %vm2145_vm7 = vcmp.ge.f32.partialorder %v2119_v19, 0.0  ;;  %v2171_v29 = vmul.f32 0.2, %v2119_v19 }
 0x1c8   : > { %v3130_v21 = vadd.f32 %v3129_v18, %v3128_v53  ;;  %v2196_v24 = vsel %vm2144_vm6, %v2118_v9, %v2170_v13 }
 0x1c9   : > { %v2002_v57 = vadd.f32 %v3127_v14, %v1865_v15  ;;  %v1868_v22 = vadd.f32 %v3036_v17, %v3638_v36  ;;  %v2197_v25 = vsel %vm2145_vm7, %v2119_v19, %v2171_v29 }
 0x1ca   : > { %v2736_v26 = vpack.c.bf16 %v2197_v25, %v2196_v24 }
 0x1cb   : > { %v2120_v39 = vadd.f32 %v3644_v58, %v2002_v57  ;;  %v2005_v28 = vadd.f32 %v3130_v21, %v1868_v22 }
 0x1cc   : > { %2753 = vst [vmem:[%s3654_s17 + $0x58] sm:$0xff] %v2736_v26  }
 0x1cd   : > { %v2172_v30 = vmul.f32 0.2, %v2120_v39  ;;  %v2121_v31 = vadd.f32 %v3644_v58, %v2005_v28  ;;  %vm2146_vm8 = vcmp.ge.f32.partialorder %v2120_v39, 0.0 }
 0x1cf   : > { %vm2147_vm9 = vcmp.ge.f32.partialorder %v2121_v31, 0.0  ;;  %v2173_v33 = vmul.f32 0.2, %v2121_v31  ;;  %v2198_v32 = vsel %vm2146_vm8, %v2120_v39, %v2172_v30 }
 0x1d1   : > { %v2199_v34 = vsel %vm2147_vm9, %v2121_v31, %v2173_v33 }
 0x1d2   : > { %v2741_v42 = vpack.c.bf16 %v2199_v34, %v2198_v32 }
 0x1d4   : > { %2754 = vst [vmem:[%s3654_s17 + $0x60] sm:$0xff] %v2741_v42  }
 0x1d5 PF: > { %s13_s14 = sadd.s32 1, %s3241_s14   ;;  %s3729_s12 = smov %s3237_s13 }
 0x1d6   : > { %p10_p5 = scmp.ge.s32.totalorder %s13_s14, 4   ;;  %s3730_s13 = smov %s3732_s15 }
 0x1d8   :  { %12 = sbr.rel (!%p10_p5) target bundleno = 2 (0x2), region = 76 }

// kernel: forward.6
= control target key start
LH: loop header
LB: loop body
LE: loop exit
PB: predicated region body
PF: predicated region fallthrough
CT: control target
= control target key end

     0   :  { %s3997_s0 = inlined_call_operand.vmem [shape: bf16[112,2048], index: 0, kind: input, shape index: {}]   ;;  %s3998_s1 = inlined_call_operand.vmem [shape: bf16[2048,256], index: 1, kind: input, shape index: {}]   ;;  %s3999_s2 = inlined_call_operand.vmem [shape: f32[1,256], index: 2, kind: input, shape index: {}]   ;;  %s4000_s3 = inlined_call_operand.vmem [shape: bf16[112,256], index: 3, kind: output, shape index: {}]  }
   0x1   :  { %4002 = sst [smem:[#allocation7_spill]] %s3997_s0 }
   0x2   :  { %4003 = sst [smem:[#allocation8_spill]] %s3998_s1 }
   0x3   :  { %s3243_s12 = smov 0   ;;  %s3245_s13 = smov 0  }
   0x4   :  { %s3247_s14 = smov 0   ;;  %s3249_s15 = smov 0  }
   0x5   :  { %s3251_s16 = smov 0   ;;  %s3253_s17 = smov 0  }
   0x6   :  { %s3255_s18 = smov 0   ;;  %s3257_s19 = smov 0  }
   0x7   :  { %s3259_s20 = smov 0   ;;  %s3261_s21 = smov 0  }
   0x8   :  { %s3263_s22 = smov 0  }
   0x9 LB: > { %s2537_s23 = sadd.s32 4294967295, %s3220_s22   ;;  %s25_s24 = sadd.s32 1, %s3212_s20  ;;  %s3220_s22 = sphi %s3263_s22, %s13_s22   ;;  %s3216_s21 = sphi %s3261_s21, %s4020_s21   ;;  %s3212_s20 = sphi %s3259_s20, %s4019_s20   ;;  %s3208_s19 = sphi %s3257_s19, %s4018_s19   ;;  %s3204_s18 = sphi %s3255_s18, %s4017_s18   ;;  %s3200_s17 = sphi %s3253_s17, %s4016_s17   ;;  %s3196_s16 = sphi %s3251_s16, %s4015_s16   ;;  %s3192_s15 = sphi %s3249_s15, %s4014_s15   ;;  %s3188_s14 = sphi %s3247_s14, %s4013_s14   ;;  %s3184_s13 = sphi %s3245_s13, %s4012_s13   ;;  %s3180_s12 = sphi %s3243_s12, %s4011_s12  }
   0xa   : > { %p26_p0 = scmp.ge.s32.totalorder %s25_s24, 2  ;;  %s28_s25 = sadd.s32 1, %s3216_s21 }
   0xb   : > { %s41_s26 = sadd.s32 1, %s3200_s17  ;;  %p48_p1 = scmp.ne.s32.totalorder %s3200_s17, %s3196_s16 }
   0xc   : > { %s4022_s24 = smov (%p26_p0, %s25_s24), 0  ;;  %s4024_s25 = smov (!%p26_p0, %s28_s25), %s3216_s21 }
   0xd   : > { %s37_s27 = ssub.s32 %s3212_s20, %s4022_s24  ;;  %p49_p2 = scmp.eq.s32.totalorder %s3220_s22, 0 }
   0xe   : > { %p30_p3 = scmp.ge.s32.totalorder %s4024_s25, 2  ;;  %p39_p4 = scmp.eq.s32.totalorder %s37_s27, 0 }
   0xf   : > { %p3310_p5 = por %p49_p2, %p48_p1  ;;  %s69_s29 = sadd.s32 1, %s3192_s15 }
  0x10   : > { %s4026_s25 = smov (%p30_p3, %s4024_s25), 0  ;;  %p76_p6 = scmp.ne.s32.totalorder %s3192_s15, %s3188_s14 }
  0x11   : > { %4005 = sst [smem:[#allocation6_spill]] %s4026_s25  ;;  %s65_s4 = ssub.s32 %s3216_s21, %s4026_s25 }
  0x12   : > { %s3318_s30 = scalar_select %p39_p4, %s3200_s17, %s41_s26  }
  0x13   : > { %s66_s5 = sor.u32 %s65_s4, %s37_s27  ;;  %p121_p7 = scmp.eq.s32.totalorder %s65_s4, 0 }
  0x14   : > { %p67_p8 = scmp.eq.s32.totalorder %s66_s5, 0  ;;  %p3324_p9 = por %p76_p6, %p49_p2 }
  0x15   : > { %s123_s7 = sadd.s32 1, %s3184_s13  ;;  %p133_p10 = scmp.ne.s32.totalorder %s3184_s13, %s3180_s12 }
  0x16   : > { %s3332_s8 = scalar_select %p67_p8, %s3192_s15, %s69_s29  }
  0x17   : > { %s3335_s9 = scalar_select %p121_p7, %s3184_s13, %s123_s7  }
  0x18   : > { %p134_p11 = scmp.eq.s32.totalorder %s2537_s23, 3  ;;  %p2540_p13 = scmp.ge.s32.totalorder %s3220_s22, 4 }
  0x1a   : > { %p3337_p12 = por %p134_p11, %p133_p10  ;;  %156 = sbr.rel (%p2540_p13) target bundleno = 167 (0xa7), region = 16 }
  0x21   : > { %159 = sbr.rel (!%p3310_p5) target bundleno = 72 (0x48), region = 20  ;;  %s161_s11 = sand.u32 (%p3310_p5), 1, %s3200_s17  }
  0x22   : > { %s2689_s26 = sshll.u32 (%p3310_p5), %s3212_s20, 5  ;;  %s2978_s27 = smul.u32 (%p3310_p5), 448, %s161_s11 }
  0x23   : > { %s4008_s0 = sld [smem:[#allocation7_spill]] (%p3310_p5) }
  0x24   : > { %s3357_s23 = scalar_lea.vmem (%p3310_p5), [#allocation3], %s2978_s27 }
  0x29   : > { %s3349_s5 = scalar_lea.vmem %s4008_s0, %s2689_s26 }
  0x2a   : > { %v182_v0 = vld [vmem:[%s3349_s5] sm:$0xff]  ;;  %v184_v1 = vld [vmem:[%s3349_s5 + $0x8] sm:$0xff]  ;;  %v186_v2 = vld [vmem:[%s3349_s5 + $0x10] sm:$0xff] }
  0x2b   : > { %v188_v3 = vld [vmem:[%s3349_s5 + $0x18] sm:$0xff]  ;;  %v190_v4 = vld [vmem:[%s3349_s5 + $0x40] sm:$0xff]  ;;  %v192_v5 = vld [vmem:[%s3349_s5 + $0x48] sm:$0xff]  ;;  %183 = vst [vmem:[%s3357_s23] sm:$0xff] %v182_v0 }
  0x2c   : > { %185 = vst [vmem:[%s3357_s23 + $0x8] sm:$0xff] %v184_v1  ;;  %187 = vst [vmem:[%s3357_s23 + $0x10] sm:$0xff] %v186_v2  ;;  %v194_v6 = vld [vmem:[%s3349_s5 + $0x50] sm:$0xff]  ;;  %v196_v7 = vld [vmem:[%s3349_s5 + $0x58] sm:$0xff] }
  0x2d   : > { %189 = vst [vmem:[%s3357_s23 + $0x18] sm:$0xff] %v188_v3  ;;  %191 = vst [vmem:[%s3357_s23 + $0x20] sm:$0xff] %v190_v4  ;;  %v198_v8 = vld [vmem:[%s3349_s5 + $0x80] sm:$0xff]  ;;  %v200_v9 = vld [vmem:[%s3349_s5 + $0x88] sm:$0xff] }
  0x2e   : > { %193 = vst [vmem:[%s3357_s23 + $0x28] sm:$0xff] %v192_v5  ;;  %195 = vst [vmem:[%s3357_s23 + $0x30] sm:$0xff] %v194_v6  ;;  %v202_v10 = vld [vmem:[%s3349_s5 + $0x90] sm:$0xff]  ;;  %v204_v11 = vld [vmem:[%s3349_s5 + $0x98] sm:$0xff] }
  0x2f   : > { %197 = vst [vmem:[%s3357_s23 + $0x38] sm:$0xff] %v196_v7  ;;  %199 = vst [vmem:[%s3357_s23 + $0x40] sm:$0xff] %v198_v8  ;;  %v206_v12 = vld [vmem:[%s3349_s5 + $0xc0] sm:$0xff]  ;;  %v208_v13 = vld [vmem:[%s3349_s5 + $0xc8] sm:$0xff] }
  0x30   : > { %201 = vst [vmem:[%s3357_s23 + $0x48] sm:$0xff] %v200_v9  ;;  %203 = vst [vmem:[%s3357_s23 + $0x50] sm:$0xff] %v202_v10  ;;  %v210_v14 = vld [vmem:[%s3349_s5 + $0xd0] sm:$0xff]  ;;  %v212_v15 = vld [vmem:[%s3349_s5 + $0xd8] sm:$0xff] }
  0x31   : > { %205 = vst [vmem:[%s3357_s23 + $0x58] sm:$0xff] %v204_v11  ;;  %207 = vst [vmem:[%s3357_s23 + $0x60] sm:$0xff] %v206_v12  ;;  %v214_v16 = vld [vmem:[%s3349_s5 + $0x100] sm:$0xff]  ;;  %v216_v17 = vld [vmem:[%s3349_s5 + $0x108] sm:$0xff] }
  0x32   : > { %209 = vst [vmem:[%s3357_s23 + $0x68] sm:$0xff] %v208_v13  ;;  %211 = vst [vmem:[%s3357_s23 + $0x70] sm:$0xff] %v210_v14  ;;  %v218_v18 = vld [vmem:[%s3349_s5 + $0x110] sm:$0xff]  ;;  %v220_v19 = vld [vmem:[%s3349_s5 + $0x118] sm:$0xff] }
  0x33   : > { %213 = vst [vmem:[%s3357_s23 + $0x78] sm:$0xff] %v212_v15  ;;  %215 = vst [vmem:[%s3357_s23 + $0x80] sm:$0xff] %v214_v16  ;;  %v222_v20 = vld [vmem:[%s3349_s5 + $0x140] sm:$0xff]  ;;  %v224_v21 = vld [vmem:[%s3349_s5 + $0x148] sm:$0xff] }
  0x34   : > { %217 = vst [vmem:[%s3357_s23 + $0x88] sm:$0xff] %v216_v17  ;;  %219 = vst [vmem:[%s3357_s23 + $0x90] sm:$0xff] %v218_v18  ;;  %v226_v22 = vld [vmem:[%s3349_s5 + $0x150] sm:$0xff]  ;;  %v228_v23 = vld [vmem:[%s3349_s5 + $0x158] sm:$0xff] }
  0x35   : > { %221 = vst [vmem:[%s3357_s23 + $0x98] sm:$0xff] %v220_v19  ;;  %223 = vst [vmem:[%s3357_s23 + $0xa0] sm:$0xff] %v222_v20  ;;  %v230_v24 = vld [vmem:[%s3349_s5 + $0x180] sm:$0xff]  ;;  %v232_v25 = vld [vmem:[%s3349_s5 + $0x188] sm:$0xff] }
  0x36   : > { %225 = vst [vmem:[%s3357_s23 + $0xa8] sm:$0xff] %v224_v21  ;;  %227 = vst [vmem:[%s3357_s23 + $0xb0] sm:$0xff] %v226_v22  ;;  %v234_v26 = vld [vmem:[%s3349_s5 + $0x190] sm:$0xff]  ;;  %v236_v27 = vld [vmem:[%s3349_s5 + $0x198] sm:$0xff] }
  0x37   : > { %229 = vst [vmem:[%s3357_s23 + $0xb8] sm:$0xff] %v228_v23  ;;  %231 = vst [vmem:[%s3357_s23 + $0xc0] sm:$0xff] %v230_v24  ;;  %v238_v28 = vld [vmem:[%s3349_s5 + $0x1c0] sm:$0xff]  ;;  %v240_v29 = vld [vmem:[%s3349_s5 + $0x1c8] sm:$0xff] }
  0x38   : > { %233 = vst [vmem:[%s3357_s23 + $0xc8] sm:$0xff] %v232_v25  ;;  %235 = vst [vmem:[%s3357_s23 + $0xd0] sm:$0xff] %v234_v26  ;;  %v242_v30 = vld [vmem:[%s3349_s5 + $0x1d0] sm:$0xff]  ;;  %v244_v31 = vld [vmem:[%s3349_s5 + $0x1d8] sm:$0xff] }
  0x39   : > { %237 = vst [vmem:[%s3357_s23 + $0xd8] sm:$0xff] %v236_v27  ;;  %239 = vst [vmem:[%s3357_s23 + $0xe0] sm:$0xff] %v238_v28  ;;  %v246_v32 = vld [vmem:[%s3349_s5 + $0x200] sm:$0xff]  ;;  %v248_v33 = vld [vmem:[%s3349_s5 + $0x208] sm:$0xff] }
  0x3a   : > { %241 = vst [vmem:[%s3357_s23 + $0xe8] sm:$0xff] %v240_v29  ;;  %243 = vst [vmem:[%s3357_s23 + $0xf0] sm:$0xff] %v242_v30  ;;  %v250_v34 = vld [vmem:[%s3349_s5 + $0x210] sm:$0xff]  ;;  %v252_v35 = vld [vmem:[%s3349_s5 + $0x218] sm:$0xff] }
  0x3b   : > { %245 = vst [vmem:[%s3357_s23 + $0xf8] sm:$0xff] %v244_v31  ;;  %247 = vst [vmem:[%s3357_s23 + $0x100] sm:$0xff] %v246_v32  ;;  %v254_v36 = vld [vmem:[%s3349_s5 + $0x240] sm:$0xff]  ;;  %v256_v37 = vld [vmem:[%s3349_s5 + $0x248] sm:$0xff] }
  0x3c   : > { %249 = vst [vmem:[%s3357_s23 + $0x108] sm:$0xff] %v248_v33  ;;  %251 = vst [vmem:[%s3357_s23 + $0x110] sm:$0xff] %v250_v34  ;;  %v258_v38 = vld [vmem:[%s3349_s5 + $0x250] sm:$0xff]  ;;  %v260_v39 = vld [vmem:[%s3349_s5 + $0x258] sm:$0xff] }
  0x3d   : > { %253 = vst [vmem:[%s3357_s23 + $0x118] sm:$0xff] %v252_v35  ;;  %255 = vst [vmem:[%s3357_s23 + $0x120] sm:$0xff] %v254_v36  ;;  %v262_v40 = vld [vmem:[%s3349_s5 + $0x280] sm:$0xff]  ;;  %v264_v41 = vld [vmem:[%s3349_s5 + $0x288] sm:$0xff] }
  0x3e   : > { %257 = vst [vmem:[%s3357_s23 + $0x128] sm:$0xff] %v256_v37  ;;  %259 = vst [vmem:[%s3357_s23 + $0x130] sm:$0xff] %v258_v38  ;;  %v266_v42 = vld [vmem:[%s3349_s5 + $0x290] sm:$0xff]  ;;  %v268_v43 = vld [vmem:[%s3349_s5 + $0x298] sm:$0xff] }
  0x3f   : > { %261 = vst [vmem:[%s3357_s23 + $0x138] sm:$0xff] %v260_v39  ;;  %263 = vst [vmem:[%s3357_s23 + $0x140] sm:$0xff] %v262_v40  ;;  %v270_v44 = vld [vmem:[%s3349_s5 + $0x2c0] sm:$0xff]  ;;  %v272_v45 = vld [vmem:[%s3349_s5 + $0x2c8] sm:$0xff] }
  0x40   : > { %265 = vst [vmem:[%s3357_s23 + $0x148] sm:$0xff] %v264_v41  ;;  %267 = vst [vmem:[%s3357_s23 + $0x150] sm:$0xff] %v266_v42  ;;  %v274_v46 = vld [vmem:[%s3349_s5 + $0x2d0] sm:$0xff]  ;;  %v276_v47 = vld [vmem:[%s3349_s5 + $0x2d8] sm:$0xff] }
  0x41   : > { %269 = vst [vmem:[%s3357_s23 + $0x158] sm:$0xff] %v268_v43  ;;  %271 = vst [vmem:[%s3357_s23 + $0x160] sm:$0xff] %v270_v44  ;;  %v278_v48 = vld [vmem:[%s3349_s5 + $0x300] sm:$0xff]  ;;  %v280_v49 = vld [vmem:[%s3349_s5 + $0x308] sm:$0xff] }
  0x42   : > { %273 = vst [vmem:[%s3357_s23 + $0x168] sm:$0xff] %v272_v45  ;;  %275 = vst [vmem:[%s3357_s23 + $0x170] sm:$0xff] %v274_v46  ;;  %v282_v50 = vld [vmem:[%s3349_s5 + $0x310] sm:$0xff]  ;;  %v284_v51 = vld [vmem:[%s3349_s5 + $0x318] sm:$0xff] }
  0x43   : > { %277 = vst [vmem:[%s3357_s23 + $0x178] sm:$0xff] %v276_v47  ;;  %279 = vst [vmem:[%s3357_s23 + $0x180] sm:$0xff] %v278_v48  ;;  %v286_v52 = vld [vmem:[%s3349_s5 + $0x340] sm:$0xff]  ;;  %v288_v53 = vld [vmem:[%s3349_s5 + $0x348] sm:$0xff] }
  0x44   : > { %281 = vst [vmem:[%s3357_s23 + $0x188] sm:$0xff] %v280_v49  ;;  %283 = vst [vmem:[%s3357_s23 + $0x190] sm:$0xff] %v282_v50  ;;  %v290_v54 = vld [vmem:[%s3349_s5 + $0x350] sm:$0xff]  ;;  %v292_v55 = vld [vmem:[%s3349_s5 + $0x358] sm:$0xff] }
  0x45   : > { %285 = vst [vmem:[%s3357_s23 + $0x198] sm:$0xff] %v284_v51  ;;  %287 = vst [vmem:[%s3357_s23 + $0x1a0] sm:$0xff] %v286_v52 }
  0x46   : > { %289 = vst [vmem:[%s3357_s23 + $0x1a8] sm:$0xff] %v288_v53  ;;  %291 = vst [vmem:[%s3357_s23 + $0x1b0] sm:$0xff] %v290_v54 }
  0x47   : > { %293 = vst [vmem:[%s3357_s23 + $0x1b8] sm:$0xff] %v292_v55 }
  0x48 PF: > { %299 = sbr.rel (!%p3324_p9) target bundleno = 167 (0xa7), region = 43  ;;  %s301_s28 = sand.u32 (%p3324_p9), 1, %s3192_s15  }
  0x49   : > { %s2690_s7 = sshll.u32 (%p3324_p9), %s3212_s20, 8  ;;  %s2543_s11 = sshll.u32 (%p3324_p9), %s301_s28, 9 }
  0x4a   : > { %s306_s26 = sadd.s32 (%p3324_p9), %s3216_s21, %s2690_s7  ;;  %s4009_s1 = sld [smem:[#allocation8_spill]] (%p3324_p9) }
  0x4b   : > { %s2546_s27 = sshll.u32 (%p3324_p9), %s306_s26, 2  ;;  %s3478_s6 = scalar_lea.vmem (%p3324_p9), [#allocation4], %s2543_s11 }
  0x50   : > { %s3473_s0 = scalar_lea.vmem %s4009_s1, %s2546_s27 }
  0x51   : > { %v324_v56 = vld [vmem:[%s3473_s0] sm:$0xf]  ;;  %v326_v57 = vld [vmem:[%s3473_s0 + $0x8] sm:$0xf]  ;;  %v328_v58 = vld [vmem:[%s3473_s0 + $0x10] sm:$0xf] }
  0x52   : > { %325 = vst [vmem:[%s3478_s6] sm:$0xf] %v324_v56  ;;  %327 = vst [vmem:[%s3478_s6 + $0x4] sm:$0xf] %v326_v57  ;;  %v330_v59 = vld [vmem:[%s3473_s0 + $0x18] sm:$0xf] }
  0x53   : > { %329 = vst [vmem:[%s3478_s6 + $0x8] sm:$0xf] %v328_v58  ;;  %v332_v60 = vld [vmem:[%s3473_s0 + $0x20] sm:$0xf]  ;;  %v334_v61 = vld [vmem:[%s3473_s0 + $0x28] sm:$0xf] }
  0x54   : > { %331 = vst [vmem:[%s3478_s6 + $0xc] sm:$0xf] %v330_v59  ;;  %333 = vst [vmem:[%s3478_s6 + $0x10] sm:$0xf] %v332_v60  ;;  %v336_v62 = vld [vmem:[%s3473_s0 + $0x30] sm:$0xf] }
  0x55   : > { %335 = vst [vmem:[%s3478_s6 + $0x14] sm:$0xf] %v334_v61  ;;  %v338_v63 = vld [vmem:[%s3473_s0 + $0x38] sm:$0xf]  ;;  %v340_v0 = vld [vmem:[%s3473_s0 + $0x40] sm:$0xf] }
  0x56   : > { %337 = vst [vmem:[%s3478_s6 + $0x18] sm:$0xf] %v336_v62  ;;  %339 = vst [vmem:[%s3478_s6 + $0x1c] sm:$0xf] %v338_v63  ;;  %v342_v1 = vld [vmem:[%s3473_s0 + $0x48] sm:$0xf] }
  0x57   : > { %341 = vst [vmem:[%s3478_s6 + $0x20] sm:$0xf] %v340_v0  ;;  %v344_v2 = vld [vmem:[%s3473_s0 + $0x50] sm:$0xf]  ;;  %v346_v3 = vld [vmem:[%s3473_s0 + $0x58] sm:$0xf] }
  0x58   : > { %343 = vst [vmem:[%s3478_s6 + $0x24] sm:$0xf] %v342_v1  ;;  %345 = vst [vmem:[%s3478_s6 + $0x28] sm:$0xf] %v344_v2  ;;  %v348_v4 = vld [vmem:[%s3473_s0 + $0x60] sm:$0xf] }
  0x59   : > { %347 = vst [vmem:[%s3478_s6 + $0x2c] sm:$0xf] %v346_v3  ;;  %v350_v5 = vld [vmem:[%s3473_s0 + $0x68] sm:$0xf]  ;;  %v352_v6 = vld [vmem:[%s3473_s0 + $0x70] sm:$0xf] }
  0x5a   : > { %349 = vst [vmem:[%s3478_s6 + $0x30] sm:$0xf] %v348_v4  ;;  %351 = vst [vmem:[%s3478_s6 + $0x34] sm:$0xf] %v350_v5  ;;  %v354_v7 = vld [vmem:[%s3473_s0 + $0x78] sm:$0xf] }
  0x5b   : > { %353 = vst [vmem:[%s3478_s6 + $0x38] sm:$0xf] %v352_v6  ;;  %v356_v8 = vld [vmem:[%s3473_s0 + $0x80] sm:$0xf]  ;;  %v358_v9 = vld [vmem:[%s3473_s0 + $0x88] sm:$0xf] }
  0x5c   : > { %355 = vst [vmem:[%s3478_s6 + $0x3c] sm:$0xf] %v354_v7  ;;  %357 = vst [vmem:[%s3478_s6 + $0x40] sm:$0xf] %v356_v8  ;;  %v360_v10 = vld [vmem:[%s3473_s0 + $0x90] sm:$0xf] }
  0x5d   : > { %359 = vst [vmem:[%s3478_s6 + $0x44] sm:$0xf] %v358_v9  ;;  %v362_v11 = vld [vmem:[%s3473_s0 + $0x98] sm:$0xf]  ;;  %v364_v12 = vld [vmem:[%s3473_s0 + $0xa0] sm:$0xf] }
  0x5e   : > { %361 = vst [vmem:[%s3478_s6 + $0x48] sm:$0xf] %v360_v10  ;;  %363 = vst [vmem:[%s3478_s6 + $0x4c] sm:$0xf] %v362_v11  ;;  %v366_v13 = vld [vmem:[%s3473_s0 + $0xa8] sm:$0xf] }
  0x5f   : > { %365 = vst [vmem:[%s3478_s6 + $0x50] sm:$0xf] %v364_v12  ;;  %v368_v14 = vld [vmem:[%s3473_s0 + $0xb0] sm:$0xf]  ;;  %v370_v15 = vld [vmem:[%s3473_s0 + $0xb8] sm:$0xf] }
  0x60   : > { %367 = vst [vmem:[%s3478_s6 + $0x54] sm:$0xf] %v366_v13  ;;  %369 = vst [vmem:[%s3478_s6 + $0x58] sm:$0xf] %v368_v14  ;;  %v372_v16 = vld [vmem:[%s3473_s0 + $0xc0] sm:$0xf] }
  0x61   : > { %371 = vst [vmem:[%s3478_s6 + $0x5c] sm:$0xf] %v370_v15  ;;  %v374_v17 = vld [vmem:[%s3473_s0 + $0xc8] sm:$0xf]  ;;  %v376_v18 = vld [vmem:[%s3473_s0 + $0xd0] sm:$0xf] }
  0x62   : > { %373 = vst [vmem:[%s3478_s6 + $0x60] sm:$0xf] %v372_v16  ;;  %375 = vst [vmem:[%s3478_s6 + $0x64] sm:$0xf] %v374_v17  ;;  %v378_v19 = vld [vmem:[%s3473_s0 + $0xd8] sm:$0xf] }
  0x63   : > { %377 = vst [vmem:[%s3478_s6 + $0x68] sm:$0xf] %v376_v18  ;;  %v380_v20 = vld [vmem:[%s3473_s0 + $0xe0] sm:$0xf]  ;;  %v382_v21 = vld [vmem:[%s3473_s0 + $0xe8] sm:$0xf] }
  0x64   : > { %379 = vst [vmem:[%s3478_s6 + $0x6c] sm:$0xf] %v378_v19  ;;  %381 = vst [vmem:[%s3478_s6 + $0x70] sm:$0xf] %v380_v20  ;;  %v384_v22 = vld [vmem:[%s3473_s0 + $0xf0] sm:$0xf] }
  0x65   : > { %383 = vst [vmem:[%s3478_s6 + $0x74] sm:$0xf] %v382_v21  ;;  %v386_v23 = vld [vmem:[%s3473_s0 + $0xf8] sm:$0xf]  ;;  %v388_v24 = vld [vmem:[%s3473_s0 + $0x100] sm:$0xf] }
  0x66   : > { %385 = vst [vmem:[%s3478_s6 + $0x78] sm:$0xf] %v384_v22  ;;  %387 = vst [vmem:[%s3478_s6 + $0x7c] sm:$0xf] %v386_v23  ;;  %v390_v25 = vld [vmem:[%s3473_s0 + $0x108] sm:$0xf] }
  0x67   : > { %389 = vst [vmem:[%s3478_s6 + $0x80] sm:$0xf] %v388_v24  ;;  %v392_v26 = vld [vmem:[%s3473_s0 + $0x110] sm:$0xf]  ;;  %v394_v27 = vld [vmem:[%s3473_s0 + $0x118] sm:$0xf] }
  0x68   : > { %391 = vst [vmem:[%s3478_s6 + $0x84] sm:$0xf] %v390_v25  ;;  %393 = vst [vmem:[%s3478_s6 + $0x88] sm:$0xf] %v392_v26  ;;  %v396_v28 = vld [vmem:[%s3473_s0 + $0x120] sm:$0xf] }
  0x69   : > { %395 = vst [vmem:[%s3478_s6 + $0x8c] sm:$0xf] %v394_v27  ;;  %v398_v29 = vld [vmem:[%s3473_s0 + $0x128] sm:$0xf]  ;;  %v400_v30 = vld [vmem:[%s3473_s0 + $0x130] sm:$0xf] }
  0x6a   : > { %397 = vst [vmem:[%s3478_s6 + $0x90] sm:$0xf] %v396_v28  ;;  %399 = vst [vmem:[%s3478_s6 + $0x94] sm:$0xf] %v398_v29  ;;  %v402_v31 = vld [vmem:[%s3473_s0 + $0x138] sm:$0xf] }
  0x6b   : > { %401 = vst [vmem:[%s3478_s6 + $0x98] sm:$0xf] %v400_v30  ;;  %v404_v32 = vld [vmem:[%s3473_s0 + $0x140] sm:$0xf]  ;;  %v406_v33 = vld [vmem:[%s3473_s0 + $0x148] sm:$0xf] }
  0x6c   : > { %403 = vst [vmem:[%s3478_s6 + $0x9c] sm:$0xf] %v402_v31  ;;  %405 = vst [vmem:[%s3478_s6 + $0xa0] sm:$0xf] %v404_v32  ;;  %v408_v34 = vld [vmem:[%s3473_s0 + $0x150] sm:$0xf] }
  0x6d   : > { %407 = vst [vmem:[%s3478_s6 + $0xa4] sm:$0xf] %v406_v33  ;;  %v410_v35 = vld [vmem:[%s3473_s0 + $0x158] sm:$0xf]  ;;  %v412_v36 = vld [vmem:[%s3473_s0 + $0x160] sm:$0xf] }
  0x6e   : > { %409 = vst [vmem:[%s3478_s6 + $0xa8] sm:$0xf] %v408_v34  ;;  %411 = vst [vmem:[%s3478_s6 + $0xac] sm:$0xf] %v410_v35  ;;  %v414_v37 = vld [vmem:[%s3473_s0 + $0x168] sm:$0xf] }
  0x6f   : > { %413 = vst [vmem:[%s3478_s6 + $0xb0] sm:$0xf] %v412_v36  ;;  %v416_v38 = vld [vmem:[%s3473_s0 + $0x170] sm:$0xf]  ;;  %v418_v39 = vld [vmem:[%s3473_s0 + $0x178] sm:$0xf] }
  0x70   : > { %415 = vst [vmem:[%s3478_s6 + $0xb4] sm:$0xf] %v414_v37  ;;  %417 = vst [vmem:[%s3478_s6 + $0xb8] sm:$0xf] %v416_v38  ;;  %v420_v40 = vld [vmem:[%s3473_s0 + $0x180] sm:$0xf] }
  0x71   : > { %419 = vst [vmem:[%s3478_s6 + $0xbc] sm:$0xf] %v418_v39  ;;  %v422_v41 = vld [vmem:[%s3473_s0 + $0x188] sm:$0xf]  ;;  %v424_v42 = vld [vmem:[%s3473_s0 + $0x190] sm:$0xf] }
  0x72   : > { %421 = vst [vmem:[%s3478_s6 + $0xc0] sm:$0xf] %v420_v40  ;;  %423 = vst [vmem:[%s3478_s6 + $0xc4] sm:$0xf] %v422_v41  ;;  %v426_v43 = vld [vmem:[%s3473_s0 + $0x198] sm:$0xf] }
  0x73   : > { %425 = vst [vmem:[%s3478_s6 + $0xc8] sm:$0xf] %v424_v42  ;;  %v428_v44 = vld [vmem:[%s3473_s0 + $0x1a0] sm:$0xf]  ;;  %v430_v45 = vld [vmem:[%s3473_s0 + $0x1a8] sm:$0xf] }
  0x74   : > { %427 = vst [vmem:[%s3478_s6 + $0xcc] sm:$0xf] %v426_v43  ;;  %429 = vst [vmem:[%s3478_s6 + $0xd0] sm:$0xf] %v428_v44  ;;  %v432_v46 = vld [vmem:[%s3473_s0 + $0x1b0] sm:$0xf] }
  0x75   : > { %431 = vst [vmem:[%s3478_s6 + $0xd4] sm:$0xf] %v430_v45  ;;  %v434_v47 = vld [vmem:[%s3473_s0 + $0x1b8] sm:$0xf]  ;;  %v436_v48 = vld [vmem:[%s3473_s0 + $0x1c0] sm:$0xf] }
  0x76   : > { %433 = vst [vmem:[%s3478_s6 + $0xd8] sm:$0xf] %v432_v46  ;;  %435 = vst [vmem:[%s3478_s6 + $0xdc] sm:$0xf] %v434_v47  ;;  %v438_v49 = vld [vmem:[%s3473_s0 + $0x1c8] sm:$0xf] }
  0x77   : > { %437 = vst [vmem:[%s3478_s6 + $0xe0] sm:$0xf] %v436_v48  ;;  %v440_v50 = vld [vmem:[%s3473_s0 + $0x1d0] sm:$0xf]  ;;  %v442_v51 = vld [vmem:[%s3473_s0 + $0x1d8] sm:$0xf] }
  0x78   : > { %439 = vst [vmem:[%s3478_s6 + $0xe4] sm:$0xf] %v438_v49  ;;  %441 = vst [vmem:[%s3478_s6 + $0xe8] sm:$0xf] %v440_v50  ;;  %v444_v52 = vld [vmem:[%s3473_s0 + $0x1e0] sm:$0xf] }
  0x79   : > { %443 = vst [vmem:[%s3478_s6 + $0xec] sm:$0xf] %v442_v51  ;;  %v446_v53 = vld [vmem:[%s3473_s0 + $0x1e8] sm:$0xf]  ;;  %v448_v54 = vld [vmem:[%s3473_s0 + $0x1f0] sm:$0xf] }
  0x7a   : > { %445 = vst [vmem:[%s3478_s6 + $0xf0] sm:$0xf] %v444_v52  ;;  %447 = vst [vmem:[%s3478_s6 + $0xf4] sm:$0xf] %v446_v53  ;;  %v450_v55 = vld [vmem:[%s3473_s0 + $0x1f8] sm:$0xf] }
  0x7b   : > { %449 = vst [vmem:[%s3478_s6 + $0xf8] sm:$0xf] %v448_v54  ;;  %v452_v56 = vld [vmem:[%s3473_s0 + $0x200] sm:$0xf]  ;;  %v454_v57 = vld [vmem:[%s3473_s0 + $0x208] sm:$0xf] }
  0x7c   : > { %451 = vst [vmem:[%s3478_s6 + $0xfc] sm:$0xf] %v450_v55  ;;  %453 = vst [vmem:[%s3478_s6 + $0x100] sm:$0xf] %v452_v56  ;;  %v456_v58 = vld [vmem:[%s3473_s0 + $0x210] sm:$0xf] }
  0x7d   : > { %455 = vst [vmem:[%s3478_s6 + $0x104] sm:$0xf] %v454_v57  ;;  %v458_v59 = vld [vmem:[%s3473_s0 + $0x218] sm:$0xf]  ;;  %v460_v60 = vld [vmem:[%s3473_s0 + $0x220] sm:$0xf] }
  0x7e   : > { %457 = vst [vmem:[%s3478_s6 + $0x108] sm:$0xf] %v456_v58  ;;  %459 = vst [vmem:[%s3478_s6 + $0x10c] sm:$0xf] %v458_v59  ;;  %v462_v61 = vld [vmem:[%s3473_s0 + $0x228] sm:$0xf] }
  0x7f   : > { %461 = vst [vmem:[%s3478_s6 + $0x110] sm:$0xf] %v460_v60  ;;  %v464_v62 = vld [vmem:[%s3473_s0 + $0x230] sm:$0xf]  ;;  %v466_v63 = vld [vmem:[%s3473_s0 + $0x238] sm:$0xf] }
  0x80   : > { %463 = vst [vmem:[%s3478_s6 + $0x114] sm:$0xf] %v462_v61  ;;  %465 = vst [vmem:[%s3478_s6 + $0x118] sm:$0xf] %v464_v62  ;;  %v468_v0 = vld [vmem:[%s3473_s0 + $0x240] sm:$0xf] }
  0x81   : > { %467 = vst [vmem:[%s3478_s6 + $0x11c] sm:$0xf] %v466_v63  ;;  %v470_v1 = vld [vmem:[%s3473_s0 + $0x248] sm:$0xf]  ;;  %v472_v2 = vld [vmem:[%s3473_s0 + $0x250] sm:$0xf] }
  0x82   : > { %469 = vst [vmem:[%s3478_s6 + $0x120] sm:$0xf] %v468_v0  ;;  %471 = vst [vmem:[%s3478_s6 + $0x124] sm:$0xf] %v470_v1  ;;  %v474_v3 = vld [vmem:[%s3473_s0 + $0x258] sm:$0xf] }
  0x83   : > { %473 = vst [vmem:[%s3478_s6 + $0x128] sm:$0xf] %v472_v2  ;;  %v476_v4 = vld [vmem:[%s3473_s0 + $0x260] sm:$0xf]  ;;  %v478_v5 = vld [vmem:[%s3473_s0 + $0x268] sm:$0xf] }
  0x84   : > { %475 = vst [vmem:[%s3478_s6 + $0x12c] sm:$0xf] %v474_v3  ;;  %477 = vst [vmem:[%s3478_s6 + $0x130] sm:$0xf] %v476_v4  ;;  %v480_v6 = vld [vmem:[%s3473_s0 + $0x270] sm:$0xf] }
  0x85   : > { %479 = vst [vmem:[%s3478_s6 + $0x134] sm:$0xf] %v478_v5  ;;  %v482_v7 = vld [vmem:[%s3473_s0 + $0x278] sm:$0xf]  ;;  %v484_v8 = vld [vmem:[%s3473_s0 + $0x280] sm:$0xf] }
  0x86   : > { %481 = vst [vmem:[%s3478_s6 + $0x138] sm:$0xf] %v480_v6  ;;  %483 = vst [vmem:[%s3478_s6 + $0x13c] sm:$0xf] %v482_v7  ;;  %v486_v9 = vld [vmem:[%s3473_s0 + $0x288] sm:$0xf] }
  0x87   : > { %485 = vst [vmem:[%s3478_s6 + $0x140] sm:$0xf] %v484_v8  ;;  %v488_v10 = vld [vmem:[%s3473_s0 + $0x290] sm:$0xf]  ;;  %v490_v11 = vld [vmem:[%s3473_s0 + $0x298] sm:$0xf] }
  0x88   : > { %487 = vst [vmem:[%s3478_s6 + $0x144] sm:$0xf] %v486_v9  ;;  %489 = vst [vmem:[%s3478_s6 + $0x148] sm:$0xf] %v488_v10  ;;  %v492_v12 = vld [vmem:[%s3473_s0 + $0x2a0] sm:$0xf] }
  0x89   : > { %491 = vst [vmem:[%s3478_s6 + $0x14c] sm:$0xf] %v490_v11  ;;  %v494_v13 = vld [vmem:[%s3473_s0 + $0x2a8] sm:$0xf]  ;;  %v496_v14 = vld [vmem:[%s3473_s0 + $0x2b0] sm:$0xf] }
  0x8a   : > { %493 = vst [vmem:[%s3478_s6 + $0x150] sm:$0xf] %v492_v12  ;;  %495 = vst [vmem:[%s3478_s6 + $0x154] sm:$0xf] %v494_v13  ;;  %v498_v15 = vld [vmem:[%s3473_s0 + $0x2b8] sm:$0xf] }
  0x8b   : > { %497 = vst [vmem:[%s3478_s6 + $0x158] sm:$0xf] %v496_v14  ;;  %v500_v16 = vld [vmem:[%s3473_s0 + $0x2c0] sm:$0xf]  ;;  %v502_v17 = vld [vmem:[%s3473_s0 + $0x2c8] sm:$0xf] }
  0x8c   : > { %499 = vst [vmem:[%s3478_s6 + $0x15c] sm:$0xf] %v498_v15  ;;  %501 = vst [vmem:[%s3478_s6 + $0x160] sm:$0xf] %v500_v16  ;;  %v504_v18 = vld [vmem:[%s3473_s0 + $0x2d0] sm:$0xf] }
  0x8d   : > { %503 = vst [vmem:[%s3478_s6 + $0x164] sm:$0xf] %v502_v17  ;;  %v506_v19 = vld [vmem:[%s3473_s0 + $0x2d8] sm:$0xf]  ;;  %v508_v20 = vld [vmem:[%s3473_s0 + $0x2e0] sm:$0xf] }
  0x8e   : > { %505 = vst [vmem:[%s3478_s6 + $0x168] sm:$0xf] %v504_v18  ;;  %507 = vst [vmem:[%s3478_s6 + $0x16c] sm:$0xf] %v506_v19  ;;  %v510_v21 = vld [vmem:[%s3473_s0 + $0x2e8] sm:$0xf] }
  0x8f   : > { %509 = vst [vmem:[%s3478_s6 + $0x170] sm:$0xf] %v508_v20  ;;  %v512_v22 = vld [vmem:[%s3473_s0 + $0x2f0] sm:$0xf]  ;;  %v514_v23 = vld [vmem:[%s3473_s0 + $0x2f8] sm:$0xf] }
  0x90   : > { %511 = vst [vmem:[%s3478_s6 + $0x174] sm:$0xf] %v510_v21  ;;  %513 = vst [vmem:[%s3478_s6 + $0x178] sm:$0xf] %v512_v22  ;;  %v516_v24 = vld [vmem:[%s3473_s0 + $0x300] sm:$0xf] }
  0x91   : > { %515 = vst [vmem:[%s3478_s6 + $0x17c] sm:$0xf] %v514_v23  ;;  %v518_v25 = vld [vmem:[%s3473_s0 + $0x308] sm:$0xf]  ;;  %v520_v26 = vld [vmem:[%s3473_s0 + $0x310] sm:$0xf] }
  0x92   : > { %517 = vst [vmem:[%s3478_s6 + $0x180] sm:$0xf] %v516_v24  ;;  %519 = vst [vmem:[%s3478_s6 + $0x184] sm:$0xf] %v518_v25  ;;  %v522_v27 = vld [vmem:[%s3473_s0 + $0x318] sm:$0xf] }
  0x93   : > { %521 = vst [vmem:[%s3478_s6 + $0x188] sm:$0xf] %v520_v26  ;;  %v524_v28 = vld [vmem:[%s3473_s0 + $0x320] sm:$0xf]  ;;  %v526_v29 = vld [vmem:[%s3473_s0 + $0x328] sm:$0xf] }
  0x94   : > { %523 = vst [vmem:[%s3478_s6 + $0x18c] sm:$0xf] %v522_v27  ;;  %525 = vst [vmem:[%s3478_s6 + $0x190] sm:$0xf] %v524_v28  ;;  %v528_v30 = vld [vmem:[%s3473_s0 + $0x330] sm:$0xf] }
  0x95   : > { %527 = vst [vmem:[%s3478_s6 + $0x194] sm:$0xf] %v526_v29  ;;  %v530_v31 = vld [vmem:[%s3473_s0 + $0x338] sm:$0xf]  ;;  %v532_v32 = vld [vmem:[%s3473_s0 + $0x340] sm:$0xf] }
  0x96   : > { %529 = vst [vmem:[%s3478_s6 + $0x198] sm:$0xf] %v528_v30  ;;  %531 = vst [vmem:[%s3478_s6 + $0x19c] sm:$0xf] %v530_v31  ;;  %v534_v33 = vld [vmem:[%s3473_s0 + $0x348] sm:$0xf] }
  0x97   : > { %533 = vst [vmem:[%s3478_s6 + $0x1a0] sm:$0xf] %v532_v32  ;;  %v536_v34 = vld [vmem:[%s3473_s0 + $0x350] sm:$0xf]  ;;  %v538_v35 = vld [vmem:[%s3473_s0 + $0x358] sm:$0xf] }
  0x98   : > { %535 = vst [vmem:[%s3478_s6 + $0x1a4] sm:$0xf] %v534_v33  ;;  %537 = vst [vmem:[%s3478_s6 + $0x1a8] sm:$0xf] %v536_v34  ;;  %v540_v36 = vld [vmem:[%s3473_s0 + $0x360] sm:$0xf] }
  0x99   : > { %539 = vst [vmem:[%s3478_s6 + $0x1ac] sm:$0xf] %v538_v35  ;;  %v542_v37 = vld [vmem:[%s3473_s0 + $0x368] sm:$0xf]  ;;  %v544_v38 = vld [vmem:[%s3473_s0 + $0x370] sm:$0xf] }
  0x9a   : > { %541 = vst [vmem:[%s3478_s6 + $0x1b0] sm:$0xf] %v540_v36  ;;  %543 = vst [vmem:[%s3478_s6 + $0x1b4] sm:$0xf] %v542_v37  ;;  %v546_v39 = vld [vmem:[%s3473_s0 + $0x378] sm:$0xf] }
  0x9b   : > { %545 = vst [vmem:[%s3478_s6 + $0x1b8] sm:$0xf] %v544_v38  ;;  %v548_v40 = vld [vmem:[%s3473_s0 + $0x380] sm:$0xf]  ;;  %v550_v41 = vld [vmem:[%s3473_s0 + $0x388] sm:$0xf] }
  0x9c   : > { %547 = vst [vmem:[%s3478_s6 + $0x1bc] sm:$0xf] %v546_v39  ;;  %549 = vst [vmem:[%s3478_s6 + $0x1c0] sm:$0xf] %v548_v40  ;;  %v552_v42 = vld [vmem:[%s3473_s0 + $0x390] sm:$0xf] }
  0x9d   : > { %551 = vst [vmem:[%s3478_s6 + $0x1c4] sm:$0xf] %v550_v41  ;;  %v554_v43 = vld [vmem:[%s3473_s0 + $0x398] sm:$0xf]  ;;  %v556_v44 = vld [vmem:[%s3473_s0 + $0x3a0] sm:$0xf] }
  0x9e   : > { %553 = vst [vmem:[%s3478_s6 + $0x1c8] sm:$0xf] %v552_v42  ;;  %555 = vst [vmem:[%s3478_s6 + $0x1cc] sm:$0xf] %v554_v43  ;;  %v558_v45 = vld [vmem:[%s3473_s0 + $0x3a8] sm:$0xf] }
  0x9f   : > { %557 = vst [vmem:[%s3478_s6 + $0x1d0] sm:$0xf] %v556_v44  ;;  %v560_v46 = vld [vmem:[%s3473_s0 + $0x3b0] sm:$0xf]  ;;  %v562_v47 = vld [vmem:[%s3473_s0 + $0x3b8] sm:$0xf] }
  0xa0   : > { %559 = vst [vmem:[%s3478_s6 + $0x1d4] sm:$0xf] %v558_v45  ;;  %561 = vst [vmem:[%s3478_s6 + $0x1d8] sm:$0xf] %v560_v46  ;;  %v564_v48 = vld [vmem:[%s3473_s0 + $0x3c0] sm:$0xf] }
  0xa1   : > { %563 = vst [vmem:[%s3478_s6 + $0x1dc] sm:$0xf] %v562_v47  ;;  %v566_v49 = vld [vmem:[%s3473_s0 + $0x3c8] sm:$0xf]  ;;  %v568_v50 = vld [vmem:[%s3473_s0 + $0x3d0] sm:$0xf] }
  0xa2   : > { %565 = vst [vmem:[%s3478_s6 + $0x1e0] sm:$0xf] %v564_v48  ;;  %567 = vst [vmem:[%s3478_s6 + $0x1e4] sm:$0xf] %v566_v49  ;;  %v570_v51 = vld [vmem:[%s3473_s0 + $0x3d8] sm:$0xf] }
  0xa3   : > { %569 = vst [vmem:[%s3478_s6 + $0x1e8] sm:$0xf] %v568_v50  ;;  %v572_v52 = vld [vmem:[%s3473_s0 + $0x3e0] sm:$0xf]  ;;  %v574_v53 = vld [vmem:[%s3473_s0 + $0x3e8] sm:$0xf] }
  0xa4   : > { %571 = vst [vmem:[%s3478_s6 + $0x1ec] sm:$0xf] %v570_v51  ;;  %573 = vst [vmem:[%s3478_s6 + $0x1f0] sm:$0xf] %v572_v52  ;;  %v576_v54 = vld [vmem:[%s3473_s0 + $0x3f0] sm:$0xf] }
  0xa5   : > { %575 = vst [vmem:[%s3478_s6 + $0x1f4] sm:$0xf] %v574_v53  ;;  %v578_v55 = vld [vmem:[%s3473_s0 + $0x3f8] sm:$0xf]  ;;  %577 = vst [vmem:[%s3478_s6 + $0x1f8] sm:$0xf] %v576_v54 }
  0xa6   : > { %579 = vst [vmem:[%s3478_s6 + $0x1fc] sm:$0xf] %v578_v55 }
  0xa7 PF: > { %p2547_p0 = scmp.ge.s32.totalorder %s3220_s22, 1  ;;  %p863_p1 = scmp.lt.s32.totalorder %s3220_s22, 5 }
  0xa9   : > { %p864_p2 = pnand %p2547_p0, %p863_p1 }
  0xaa   : > { %s870_s5 = sand.u32 (!%p864_p2), 1, %s3196_s16   ;;  %s877_s23 = sand.u32 (!%p864_p2), 1, %s3188_s14  }
  0xab   : > { %867 = sbr.rel (%p864_p2) target bundleno = 575 (0x23f), region = 88  ;;  %s2548_s7 = sshll.u32 (!%p864_p2), %s877_s23, 9 }
  0xac   : > { %s2979_s28 = smul.u32 (!%p864_p2), 448, %s870_s5  ;;  %s903_s0 = sand.u32 (!%p864_p2), 1, %s3180_s12  }
  0xad   : > { %s2980_s11 = smul.u32 (!%p864_p2), 56, %s903_s0  ;;  %p909_p3 = scmp.lt.s32.totalorder (!%p864_p2), %s3208_s19, 1 }
  0xae   : > { %s3746_s6 = scalar_lea.vmem (!%p864_p2), [#allocation3], %s2979_s28  ;;  %s3748_s1 = scalar_lea.vmem (!%p864_p2), [#allocation4], %s2548_s7 }
  0xaf   : > { %s3750_s25 = scalar_lea.vmem (!%p864_p2), [#allocation5], %s2980_s11  ;;  %p2549_p4 = scmp.ne.s32.totalorder (!%p864_p2), %s3204_s18, 0 }
  0xb2   : > { %s3740_s26 = scalar_select %p909_p3, %s3208_s19, 1 }
  0xb3   : > { %917 = sbr.rel (%p2549_p4) target bundleno = 187 (0xbb), region = 100  ;;  %v3222_v56 = vmov (!%p2549_p4), 0.0  }
  0xb4   : > { %s911_s4 = scalar_lea.vmem %s3999_s2, %s3740_s26  ;;  %918 = vst [vmem:[#allocation2] sm:$0xff] (!%p2549_p4), %v3222_v56  ;;  %919 = vst [vmem:[#allocation2 + $0x8] sm:$0xff] (!%p2549_p4), %v3222_v56 }
  0xb5   : > { %920 = vst [vmem:[#allocation2 + $0x10] sm:$0xff] (!%p2549_p4), %v3222_v56  ;;  %921 = vst [vmem:[#allocation2 + $0x18] sm:$0xff] (!%p2549_p4), %v3222_v56 }
  0xb6   : > { %922 = vst [vmem:[#allocation2 + $0x20] sm:$0xff] (!%p2549_p4), %v3222_v56  ;;  %923 = vst [vmem:[#allocation2 + $0x28] sm:$0xff] (!%p2549_p4), %v3222_v56 }
  0xb7   : > { %924 = vst [vmem:[#allocation2 + $0x30] sm:$0xff] (!%p2549_p4), %v3222_v56  ;;  %925 = vst [vmem:[#allocation2 + $0x38] sm:$0xff] (!%p2549_p4), %v3222_v56 }
  0xb8   : > { %926 = vst [vmem:[#allocation2 + $0x40] sm:$0xff] (!%p2549_p4), %v3222_v56  ;;  %927 = vst [vmem:[#allocation2 + $0x48] sm:$0xff] (!%p2549_p4), %v3222_v56 }
  0xb9   : > { %928 = vst [vmem:[#allocation2 + $0x50] sm:$0xff] (!%p2549_p4), %v3222_v56  ;;  %929 = vst [vmem:[#allocation2 + $0x58] sm:$0xff] (!%p2549_p4), %v3222_v56 }
  0xba   : > { %930 = vst [vmem:[#allocation2 + $0x60] sm:$0xff] %v3222_v56  ;;  %931 = vst [vmem:[#allocation2 + $0x68] sm:$0xff] %v3222_v56 }
  0xbb PF: > { %v3070_v57 = vld [vmem:[%s3748_s1 + $0x40] sm:$0xff]   ;;  %v3074_v61 = vld [vmem:[%s3748_s1 + $0x48] sm:$0xff]   ;;  %v3078_v1 = vld [vmem:[%s3748_s1 + $0x50] sm:$0xff]   ;;  %p2670_p5 = scmp.ne.s32.totalorder %s3204_s18, 1 }
  0xbc   : > { %v3071_v58 = vld [vmem:[%s3748_s1 + $0xc0] sm:$0xff]   ;;  %2746 = vmatprep.subr.bf16.mxu0 %v3070_v57  ;;  %v3075_v62 = vld [vmem:[%s3748_s1 + $0xc8] sm:$0xff]   ;;  %v3079_v2 = vld [vmem:[%s3748_s1 + $0xd0] sm:$0xff]  }
  0xbd   : > { %v3072_v59 = vld [vmem:[%s3748_s1] sm:$0xff]   ;;  %2804 = vmatprep.subr.bf16.mxu1 %v3071_v58  ;;  %v3076_v63 = vld [vmem:[%s3748_s1 + $0x8] sm:$0xff]   ;;  %v3080_v3 = vld [vmem:[%s3748_s1 + $0x10] sm:$0xff]  }
  0xbe   : > { %v3073_v60 = vld [vmem:[%s3748_s1 + $0x80] sm:$0xff]   ;;  %2747 = vmatpush3.bf16.msra.mxu0 %v3072_v59  ;;  %v3077_v0 = vld [vmem:[%s3748_s1 + $0x88] sm:$0xff]   ;;  %v3081_v4 = vld [vmem:[%s3748_s1 + $0x90] sm:$0xff]  }
  0xbf   : > { %2805 = vmatpush3.bf16.msra.mxu1 %v3073_v60  ;;  %2748 = vmatprep.subr.bf16.mxu0 %v3074_v61  ;;  %v3082_v5 = vld [vmem:[%s3748_s1 + $0x58] sm:$0xff]   ;;  %v3086_v9 = vld [vmem:[%s3748_s1 + $0x60] sm:$0xff]   ;;  %v3090_v13 = vld [vmem:[%s3748_s1 + $0x68] sm:$0xff]  }
  0xc0   : > { %2806 = vmatprep.subr.bf16.mxu1 %v3075_v62  ;;  %v3083_v6 = vld [vmem:[%s3748_s1 + $0xd8] sm:$0xff]   ;;  %v3087_v10 = vld [vmem:[%s3748_s1 + $0xe0] sm:$0xff]   ;;  %v3091_v14 = vld [vmem:[%s3748_s1 + $0xe8] sm:$0xff]  }
  0xc1   : > { %v3084_v7 = vld [vmem:[%s3748_s1 + $0x18] sm:$0xff]   ;;  %v3088_v11 = vld [vmem:[%s3748_s1 + $0x20] sm:$0xff]   ;;  %v3092_v15 = vld [vmem:[%s3748_s1 + $0x28] sm:$0xff]  }
  0xc2   : > { %2749 = vmatpush3.bf16.msra.mxu0 %v3076_v63  ;;  %v3085_v8 = vld [vmem:[%s3748_s1 + $0x98] sm:$0xff]   ;;  %v3089_v12 = vld [vmem:[%s3748_s1 + $0xa0] sm:$0xff]   ;;  %v3093_v16 = vld [vmem:[%s3748_s1 + $0xa8] sm:$0xff]  }
  0xc3   : > { %2807 = vmatpush3.bf16.msra.mxu1 %v3077_v0  ;;  %2750 = vmatprep.subr.bf16.mxu0 %v3078_v1  ;;  %v3094_v17 = vld [vmem:[%s3748_s1 + $0x70] sm:$0xff]   ;;  %v3098_v21 = vld [vmem:[%s3748_s1 + $0x78] sm:$0xff]   ;;  %v946_v25 = vld [vmem:[%s3746_s6] sm:$0xff] }
  0xc4   : > { %2808 = vmatprep.subr.bf16.mxu1 %v3079_v2  ;;  %v3095_v18 = vld [vmem:[%s3748_s1 + $0xf0] sm:$0xff]   ;;  %v3099_v22 = vld [vmem:[%s3748_s1 + $0xf8] sm:$0xff]   ;;  %v950_v26 = vld [vmem:[%s3746_s6 + $0x20] sm:$0xff] }
  0xc5   : > { %v3096_v19 = vld [vmem:[%s3748_s1 + $0x30] sm:$0xff]   ;;  %v3100_v23 = vld [vmem:[%s3748_s1 + $0x38] sm:$0xff]   ;;  %v947_v27 = vld [vmem:[%s3746_s6 + $0x8] sm:$0xff]  ;;  %v2550_v28 = vcombine.low %v946_v25, %v950_v26  ;;  %v2551_v29 = vcombine.high %v946_v25, %v950_v26 }
  0xc6   : > { %2751 = vmatpush3.bf16.msra.mxu0 %v3080_v3  ;;  %v3097_v20 = vld [vmem:[%s3748_s1 + $0xb0] sm:$0xff]   ;;  %v3101_v24 = vld [vmem:[%s3748_s1 + $0xb8] sm:$0xff]   ;;  %v951_v30 = vld [vmem:[%s3746_s6 + $0x28] sm:$0xff] }
  0xc7   : > { %2809 = vmatpush3.bf16.msra.mxu1 %v3081_v4  ;;  %2752 = vmatprep.subr.bf16.mxu0 %v3082_v5  ;;  %v2552_v31 = vcombine.low %v947_v27, %v951_v30  ;;  %v2553_v32 = vcombine.high %v947_v27, %v951_v30  ;;  %v3102_v33 = vld [vmem:[%s3748_s1 + $0x140] sm:$0xff]   ;;  %v955_v40 = vld [vmem:[%s3746_s6 + $0x48] sm:$0xff]  ;;  %v3110_v49 = vld [vmem:[%s3748_s1 + $0x150] sm:$0xff]  }
  0xc8   : > { %2810 = vmatprep.subr.bf16.mxu1 %v3083_v6  ;;  %1826 = vmatprep.mubr.bf16.mxu0 %v2551_v29  ;;  %v3103_v34 = vld [vmem:[%s3748_s1 + $0x100] sm:$0xff]   ;;  %v959_v41 = vld [vmem:[%s3746_s6 + $0x68] sm:$0xff]  ;;  %v3111_v56 = vld [vmem:[%s3748_s1 + $0x110] sm:$0xff]  }
  0xc9   : > { %1915 = vmatprep.mubr.bf16.mxu1 %v2553_v32  ;;  %v3104_v35 = vld [vmem:[%s3748_s1 + $0x1c0] sm:$0xff]   ;;  %v2561_v42 = vcombine.high %v955_v40, %v959_v41  ;;  %v3106_v43 = vld [vmem:[%s3748_s1 + $0x148] sm:$0xff]   ;;  %v2560_v46 = vcombine.low %v955_v40, %v959_v41  ;;  %v3112_v57 = vld [vmem:[%s3748_s1 + $0x1d0] sm:$0xff]  }
  0xca   : > { %2753 = vmatpush3.bf16.msra.mxu0 %v3084_v7  ;;  %v3105_v36 = vld [vmem:[%s3748_s1 + $0x180] sm:$0xff]   ;;  %v3107_v45 = vld [vmem:[%s3748_s1 + $0x108] sm:$0xff]   ;;  %v3113_v58 = vld [vmem:[%s3748_s1 + $0x190] sm:$0xff]  }
  0xcb   : > { %2811 = vmatpush3.bf16.msra.mxu1 %v3085_v8  ;;  %2754 = vmatprep.subr.bf16.mxu0 %v3086_v9  ;;  %v954_v37 = vld [vmem:[%s3746_s6 + $0x40] sm:$0xff]  ;;  %v3108_v47 = vld [vmem:[%s3748_s1 + $0x1c8] sm:$0xff]   ;;  %v3114_v60 = vld [vmem:[%s3748_s1 + $0x158] sm:$0xff]  }
  0xcc   : > { %2812 = vmatprep.subr.bf16.mxu1 %v3087_v10  ;;  %v958_v38 = vld [vmem:[%s3746_s6 + $0x60] sm:$0xff]  ;;  %v3109_v48 = vld [vmem:[%s3748_s1 + $0x188] sm:$0xff]   ;;  %v3115_v62 = vld [vmem:[%s3748_s1 + $0x118] sm:$0xff]  }
  0xcd   : > { %v2559_v39 = vcombine.high %v954_v37, %v958_v38  ;;  %v2558_v44 = vcombine.low %v954_v37, %v958_v38  ;;  %v962_v50 = vld [vmem:[%s3746_s6 + $0x80] sm:$0xff]  ;;  %v963_v52 = vld [vmem:[%s3746_s6 + $0x88] sm:$0xff]  ;;  %v3116_v5 = vld [vmem:[%s3748_s1 + $0x1d8] sm:$0xff]  }
  0xce   : > { %2755 = vmatpush3.bf16.msra.mxu0 %v3088_v11  ;;  %v966_v51 = vld [vmem:[%s3746_s6 + $0xa0] sm:$0xff]  ;;  %v967_v53 = vld [vmem:[%s3746_s6 + $0xa8] sm:$0xff]  ;;  %v3117_v6 = vld [vmem:[%s3748_s1 + $0x198] sm:$0xff]  }
  0xcf   : > { %2813 = vmatpush3.bf16.msra.mxu1 %v3089_v12  ;;  %2756 = vmatprep.subr.bf16.mxu0 %v3090_v13  ;;  %v2567_v54 = vcombine.high %v962_v50, %v966_v51  ;;  %v2569_v55 = vcombine.high %v963_v52, %v967_v53  ;;  %v2566_v59 = vcombine.low %v962_v50, %v966_v51  ;;  %v970_v63 = vld [vmem:[%s3746_s6 + $0xc0] sm:$0xff]  ;;  %v971_v1 = vld [vmem:[%s3746_s6 + $0xc8] sm:$0xff]  ;;  %v3131_v40 = vld [vmem:[%s3748_s1 + $0x138] sm:$0xff]  }
  0xd0   : > { %2814 = vmatprep.subr.bf16.mxu1 %v3091_v14  ;;  %v2568_v61 = vcombine.low %v963_v52, %v967_v53  ;;  %v974_v0 = vld [vmem:[%s3746_s6 + $0xe0] sm:$0xff]  ;;  %v975_v3 = vld [vmem:[%s3746_s6 + $0xe8] sm:$0xff]  ;;  %v953_v50 = vld [vmem:[%s3746_s6 + $0x38] sm:$0xff] }
  0xd1   : > { %v2575_v2 = vcombine.high %v970_v63, %v974_v0  ;;  %v2577_v4 = vcombine.high %v971_v1, %v975_v3  ;;  %v3118_v7 = vld [vmem:[%s3748_s1 + $0x160] sm:$0xff]   ;;  %v2574_v9 = vcombine.low %v970_v63, %v974_v0  ;;  %v2576_v13 = vcombine.low %v971_v1, %v975_v3  ;;  %v987_v25 = vld [vmem:[%s3746_s6 + $0x148] sm:$0xff]  ;;  %v964_v63 = vld [vmem:[%s3746_s6 + $0x90] sm:$0xff] }
  0xd2   : > { %2757 = vmatpush3.bf16.msra.mxu0 %v3092_v15  ;;  %v3119_v8 = vld [vmem:[%s3748_s1 + $0x120] sm:$0xff]   ;;  %v979_v15 = vld [vmem:[%s3746_s6 + $0x108] sm:$0xff]  ;;  %v968_v0 = vld [vmem:[%s3746_s6 + $0xb0] sm:$0xff] }
  0xd3   : > { %2815 = vmatpush3.bf16.msra.mxu1 %v3093_v16  ;;  %2758 = vmatprep.subr.bf16.mxu0 %v3094_v17  ;;  %v3120_v10 = vld [vmem:[%s3748_s1 + $0x1e0] sm:$0xff]   ;;  %v983_v16 = vld [vmem:[%s3746_s6 + $0x128] sm:$0xff]  ;;  %v965_v1 = vld [vmem:[%s3746_s6 + $0x98] sm:$0xff] }
  0xd4   : > { %2816 = vmatprep.subr.bf16.mxu1 %v3095_v18  ;;  %v978_v11 = vld [vmem:[%s3746_s6 + $0x100] sm:$0xff]  ;;  %v2585_v17 = vcombine.high %v979_v15, %v983_v16  ;;  %v991_v26 = vld [vmem:[%s3746_s6 + $0x168] sm:$0xff]  ;;  %v2584_v29 = vcombine.low %v979_v15, %v983_v16  ;;  %v980_v15 = vld [vmem:[%s3746_s6 + $0x110] sm:$0xff] }
  0xd5   : > { %v982_v12 = vld [vmem:[%s3746_s6 + $0x120] sm:$0xff]  ;;  %v2593_v32 = vcombine.high %v987_v25, %v991_v26  ;;  %v995_v37 = vld [vmem:[%s3746_s6 + $0x188] sm:$0xff]  ;;  %v984_v16 = vld [vmem:[%s3746_s6 + $0x130] sm:$0xff] }
  0xd6   : > { %2759 = vmatpush3.bf16.msra.mxu0 %v3096_v19  ;;  %v2583_v14 = vcombine.high %v978_v11, %v982_v12  ;;  %v3121_v18 = vld [vmem:[%s3748_s1 + $0x1a0] sm:$0xff]   ;;  %v3122_v19 = vld [vmem:[%s3748_s1 + $0x168] sm:$0xff]   ;;  %v2582_v27 = vcombine.low %v978_v11, %v982_v12  ;;  %v2570_v11 = vcombine.low %v964_v63, %v968_v0 }
  0xd7   : > { %2817 = vmatpush3.bf16.msra.mxu1 %v3097_v20  ;;  %2760 = vmatprep.subr.bf16.mxu0 %v3098_v21  ;;  %v3123_v20 = vld [vmem:[%s3748_s1 + $0x128] sm:$0xff]  }
  0xd8   : > { %2818 = vmatprep.subr.bf16.mxu1 %v3099_v22  ;;  %v3124_v21 = vld [vmem:[%s3748_s1 + $0x1e8] sm:$0xff]  }
  0xd9   : > { %v3125_v22 = vld [vmem:[%s3748_s1 + $0x1a8] sm:$0xff]  }
  0xda   : > { %2761 = vmatpush3.bf16.msra.mxu0 %v3100_v23  ;;  %v986_v23 = vld [vmem:[%s3746_s6 + $0x140] sm:$0xff]  ;;  %v999_v38 = vld [vmem:[%s3746_s6 + $0x1a8] sm:$0xff] }
  0xdb   : > { %2819 = vmatpush3.bf16.msra.mxu1 %v3101_v24  ;;  %2862 = vmatprep.subr.bf16.mxu0 %v3102_v33  ;;  %v990_v24 = vld [vmem:[%s3746_s6 + $0x160] sm:$0xff]  ;;  %v3128_v33 = vld [vmem:[%s3748_s1 + $0x1f0] sm:$0xff]   ;;  %v2600_v52 = vcombine.low %v995_v37, %v999_v38 }
  0xdc   : > { %2920 = vmatprep.subr.bf16.mxu1 %v3104_v35  ;;  %v2591_v30 = vcombine.high %v986_v23, %v990_v24  ;;  %v994_v35 = vld [vmem:[%s3746_s6 + $0x180] sm:$0xff]  ;;  %v2590_v41 = vcombine.low %v986_v23, %v990_v24  ;;  %v988_v23 = vld [vmem:[%s3746_s6 + $0x150] sm:$0xff] }
  0xdd   : > { %1827 = vmatmul.mubr.bf16.vlgmr.msra.gmra.mrb[0].mxu0 %v2550_v28  ;;  %v3126_v28 = vld [vmem:[%s3748_s1 + $0x170] sm:$0xff]  }
  0xde   : > { %1916 = vmatmul.mubr.bf16.vlgmr.msra.gmra.mrb[0].mxu1 %v2552_v31  ;;  %2863 = vmatpush3.bf16.msra.mxu0 %v3103_v34  ;;  %v3127_v31 = vld [vmem:[%s3748_s1 + $0x130] sm:$0xff]  }
  0xdf   : > { %2921 = vmatpush3.bf16.msra.mxu1 %v3105_v36  ;;  %1834 = vmatprep.mubr.bf16.mxu0 %v2559_v39  ;;  %v3129_v34 = vld [vmem:[%s3748_s1 + $0x1b0] sm:$0xff]   ;;  %v998_v36 = vld [vmem:[%s3746_s6 + $0x1a0] sm:$0xff]  ;;  %v3130_v39 = vld [vmem:[%s3748_s1 + $0x178] sm:$0xff]  }
  0xe0   : > { %1923 = vmatprep.mubr.bf16.mxu1 %v2561_v42  ;;  %2864 = vmatprep.subr.bf16.mxu0 %v3106_v43  ;;  %v3132_v42 = vld [vmem:[%s3748_s1 + $0x1f8] sm:$0xff]   ;;  %v2592_v43 = vcombine.low %v987_v25, %v991_v26  ;;  %v2598_v51 = vcombine.low %v994_v35, %v998_v36  ;;  %v992_v24 = vld [vmem:[%s3746_s6 + $0x170] sm:$0xff] }
  0xe1   : > { %2922 = vmatprep.subr.bf16.mxu1 %v3108_v47  ;;  %v948_v47 = vld [vmem:[%s3746_s6 + $0x10] sm:$0xff]  ;;  %v989_v25 = vld [vmem:[%s3746_s6 + $0x158] sm:$0xff] }
  0xe2   : > { %2865 = vmatpush3.bf16.msra.mxu0 %v3107_v45  ;;  %v3133_v45 = vld [vmem:[%s3748_s1 + $0x1b8] sm:$0xff]  }
  0xe3   : > { %2923 = vmatpush3.bf16.msra.mxu1 %v3109_v48  ;;  %2866 = vmatprep.subr.bf16.mxu0 %v3110_v49  ;;  %v952_v48 = vld [vmem:[%s3746_s6 + $0x30] sm:$0xff]  ;;  %v949_v49 = vld [vmem:[%s3746_s6 + $0x18] sm:$0xff] }
  0xe4   : > { %2924 = vmatprep.subr.bf16.mxu1 %v3112_v57  ;;  %v2555_v53 = vcombine.high %v948_v47, %v952_v48  ;;  %v957_v57 = vld [vmem:[%s3746_s6 + $0x58] sm:$0xff] }
  0xe5   : > { %1835 = vmatmul.mubr.bf16.gmra.mrb[4].mxu0 %v2558_v44  ;;  %v2599_v44 = vcombine.high %v994_v35, %v998_v36  ;;  %v993_v26 = vld [vmem:[%s3746_s6 + $0x178] sm:$0xff]  ;;  %v2594_v35 = vcombine.low %v988_v23, %v992_v24 }
  0xe6   : > { %1924 = vmatmul.mubr.bf16.gmra.mrb[4].mxu1 %v2560_v46  ;;  %1842 = vmatprep.mubr.bf16.mxu0 %v2567_v54  ;;  %v2601_v46 = vcombine.high %v995_v37, %v999_v38  ;;  %v2557_v54 = vcombine.high %v949_v49, %v953_v50  ;;  %v2596_v36 = vcombine.low %v989_v25, %v993_v26 }
  0xe7   : > { %1931 = vmatprep.mubr.bf16.mxu1 %v2569_v55  ;;  %2867 = vmatpush3.bf16.msra.mxu0 %v3111_v56  ;;  %v956_v55 = vld [vmem:[%s3746_s6 + $0x50] sm:$0xff] }
  0xe8   : > { %2925 = vmatpush3.bf16.msra.mxu1 %v3113_v58  ;;  %2868 = vmatprep.subr.bf16.mxu0 %v3114_v60  ;;  %v960_v56 = vld [vmem:[%s3746_s6 + $0x70] sm:$0xff]  ;;  %v961_v58 = vld [vmem:[%s3746_s6 + $0x78] sm:$0xff]  ;;  %v2556_v60 = vcombine.low %v949_v49, %v953_v50 }
  0xe9   : > { %2926 = vmatprep.subr.bf16.mxu1 %v3116_v5  ;;  %v2562_v3 = vcombine.low %v956_v55, %v960_v56  ;;  %v2571_v5 = vcombine.high %v964_v63, %v968_v0 }
  0xeb   : > { %2869 = vmatpush3.bf16.msra.mxu0 %v3115_v62  ;;  %v2565_v62 = vcombine.high %v957_v57, %v961_v58 }
  0xec   : > { %2927 = vmatpush3.bf16.msra.mxu1 %v3117_v6  ;;  %2870 = vmatprep.subr.bf16.mxu0 %v3118_v7  ;;  %v972_v7 = vld [vmem:[%s3746_s6 + $0xd0] sm:$0xff] }
  0xed   : > { %1843 = vmatmul.mubr.bf16.gmra.mrb[8].mxu0 %v2566_v59  ;;  %2928 = vmatprep.subr.bf16.mxu1 %v3120_v10  ;;  %v2554_v59 = vcombine.low %v948_v47, %v952_v48  ;;  %v977_v10 = vld [vmem:[%s3746_s6 + $0xf8] sm:$0xff] }
  0xee   : > { %1932 = vmatmul.mubr.bf16.gmra.mrb[8].mxu1 %v2568_v61  ;;  %1850 = vmatprep.mubr.bf16.mxu0 %v2575_v2  ;;  %v2563_v61 = vcombine.high %v956_v55, %v960_v56  ;;  %v969_v2 = vld [vmem:[%s3746_s6 + $0xb8] sm:$0xff] }
  0xef   : > { %1939 = vmatprep.mubr.bf16.mxu1 %v2577_v4  ;;  %2871 = vmatpush3.bf16.msra.mxu0 %v3119_v8  ;;  %v2564_v4 = vcombine.low %v957_v57, %v961_v58  ;;  %v2573_v6 = vcombine.high %v965_v1, %v969_v2  ;;  %v976_v8 = vld [vmem:[%s3746_s6 + $0xf0] sm:$0xff]  ;;  %v2572_v12 = vcombine.low %v965_v1, %v969_v2 }
  0xf0   : > { %2929 = vmatpush3.bf16.msra.mxu1 %v3121_v18  ;;  %2872 = vmatprep.subr.bf16.mxu0 %v3122_v19  ;;  %v985_v18 = vld [vmem:[%s3746_s6 + $0x138] sm:$0xff]  ;;  %v2578_v19 = vcombine.low %v972_v7, %v976_v8 }
  0xf1   : > { %2930 = vmatprep.subr.bf16.mxu1 %v3124_v21  ;;  %v2587_v21 = vcombine.high %v980_v15, %v984_v16 }
  0xf3   : > { %2873 = vmatpush3.bf16.msra.mxu0 %v3123_v20 }
  0xf4   : > { %2931 = vmatpush3.bf16.msra.mxu1 %v3125_v22  ;;  %2874 = vmatprep.subr.bf16.mxu0 %v3126_v28 }
  0xf5   : > { %1851 = vmatmul.mubr.bf16.gmra.mrb[12].mxu0 %v2574_v9  ;;  %2932 = vmatprep.subr.bf16.mxu1 %v3128_v33  ;;  %v973_v9 = vld [vmem:[%s3746_s6 + $0xd8] sm:$0xff] }
  0xf6   : > { %1940 = vmatmul.mubr.bf16.gmra.mrb[12].mxu1 %v2576_v13  ;;  %1858 = vmatprep.mubr.bf16.mxu0 %v2583_v14  ;;  %v2579_v13 = vcombine.high %v972_v7, %v976_v8  ;;  %v2581_v14 = vcombine.high %v973_v9, %v977_v10  ;;  %v2580_v20 = vcombine.low %v973_v9, %v977_v10  ;;  %v997_v33 = vld [vmem:[%s3746_s6 + $0x198] sm:$0xff] }
  0xf7   : > { %1947 = vmatprep.mubr.bf16.mxu1 %v2585_v17  ;;  %2875 = vmatpush3.bf16.msra.mxu0 %v3127_v31  ;;  %v981_v17 = vld [vmem:[%s3746_s6 + $0x118] sm:$0xff]  ;;  %v996_v31 = vld [vmem:[%s3746_s6 + $0x190] sm:$0xff] }
  0xf8   : > { %2933 = vmatpush3.bf16.msra.mxu1 %v3129_v34  ;;  %2876 = vmatprep.subr.bf16.mxu0 %v3130_v39  ;;  %v2589_v22 = vcombine.high %v981_v17, %v985_v18  ;;  %v2588_v28 = vcombine.low %v981_v17, %v985_v18  ;;  %v1001_v34 = vld [vmem:[%s3746_s6 + $0x1b8] sm:$0xff] }
  0xf9   : > { %2934 = vmatprep.subr.bf16.mxu1 %v3132_v42  ;;  %v2605_v38 = vcombine.high %v997_v33, %v1001_v34 }
  0xfb   : > { %2877 = vmatpush3.bf16.msra.mxu0 %v3131_v40  ;;  %v2604_v40 = vcombine.low %v997_v33, %v1001_v34 }
  0xfc   : > { %2935 = vmatpush3.bf16.msra.mxu1 %v3133_v45 }
  0xfd   : > { %1859 = vmatmul.mubr.bf16.gmra.mrb[16].mxu0 %v2582_v27  ;;  %v2586_v27 = vcombine.low %v980_v15, %v984_v16 }
  0xfe   : > { %1948 = vmatmul.mubr.bf16.gmra.mrb[16].mxu1 %v2584_v29  ;;  %1866 = vmatprep.mubr.bf16.mxu0 %v2591_v30  ;;  %v2595_v29 = vcombine.high %v988_v23, %v992_v24  ;;  %v2597_v30 = vcombine.high %v989_v25, %v993_v26 }
  0xff   : > { %1955 = vmatprep.mubr.bf16.mxu1 %v2593_v32  ;;  %v1000_v32 = vld [vmem:[%s3746_s6 + $0x1b0] sm:$0xff] }
 0x100   : > { %v2603_v37 = vcombine.high %v996_v31, %v1000_v32  ;;  %v2602_v39 = vcombine.low %v996_v31, %v1000_v32 }
 0x105   : > { %1867 = vmatmul.mubr.bf16.gmra.mrb[20].mxu0 %v2590_v41 }
 0x106   : > { %1956 = vmatmul.mubr.bf16.gmra.mrb[20].mxu1 %v2592_v43  ;;  %1874 = vmatprep.mubr.bf16.mxu0 %v2599_v44 }
 0x107   : > { %1963 = vmatprep.mubr.bf16.mxu1 %v2601_v46 }
 0x10d   : > { %1875 = vmatmul.mubr.bf16.gmra.mrb[24].mxu0 %v2598_v51 }
 0x10e   : > { %1964 = vmatmul.mubr.bf16.gmra.mrb[24].mxu1 %v2600_v52  ;;  %2004 = vmatprep.mubr.bf16.mxu0 %v2555_v53 }
 0x10f   : > { %2093 = vmatprep.mubr.bf16.mxu1 %v2557_v54 }
 0x115   : > { %2005 = vmatmul.mubr.bf16.vlgmr.msra.gmra.mrb[28].mxu0 %v2554_v59 }
 0x116   : > { %2094 = vmatmul.mubr.bf16.vlgmr.msra.gmra.mrb[28].mxu1 %v2556_v60  ;;  %2012 = vmatprep.mubr.bf16.mxu0 %v2563_v61 }
 0x117   : > { %2101 = vmatprep.mubr.bf16.mxu1 %v2565_v62 }
 0x11d   : > { %2013 = vmatmul.mubr.bf16.gmra.mrb[32].mxu0 %v2562_v3 }
 0x11e   : > { %2102 = vmatmul.mubr.bf16.gmra.mrb[32].mxu1 %v2564_v4  ;;  %2020 = vmatprep.mubr.bf16.mxu0 %v2571_v5 }
 0x11f   : > { %2109 = vmatprep.mubr.bf16.mxu1 %v2573_v6 }
 0x125   : > { %2021 = vmatmul.mubr.bf16.gmra.mrb[36].mxu0 %v2570_v11 }
 0x126   : > { %2110 = vmatmul.mubr.bf16.gmra.mrb[36].mxu1 %v2572_v12  ;;  %2028 = vmatprep.mubr.bf16.mxu0 %v2579_v13 }
 0x127   : > { %2117 = vmatprep.mubr.bf16.mxu1 %v2581_v14 }
 0x12d   : > { %2029 = vmatmul.mubr.bf16.gmra.mrb[40].mxu0 %v2578_v19 }
 0x12e   : > { %2118 = vmatmul.mubr.bf16.gmra.mrb[40].mxu1 %v2580_v20  ;;  %2036 = vmatprep.mubr.bf16.mxu0 %v2587_v21 }
 0x12f   : > { %2125 = vmatprep.mubr.bf16.mxu1 %v2589_v22 }
 0x135   : > { %2037 = vmatmul.mubr.bf16.gmra.mrb[44].mxu0 %v2586_v27 }
 0x136   : > { %2126 = vmatmul.mubr.bf16.gmra.mrb[44].mxu1 %v2588_v28  ;;  %2044 = vmatprep.mubr.bf16.mxu0 %v2595_v29 }
 0x137   : > { %2133 = vmatprep.mubr.bf16.mxu1 %v2597_v30 }
 0x13d   : > { %2045 = vmatmul.mubr.bf16.gmra.mrb[48].mxu0 %v2594_v35 }
 0x13e   : > { %2134 = vmatmul.mubr.bf16.gmra.mrb[48].mxu1 %v2596_v36  ;;  %2052 = vmatprep.mubr.bf16.mxu0 %v2603_v37 }
 0x13f   : > { %2141 = vmatprep.mubr.bf16.mxu1 %v2605_v38 }
 0x145   : > { %2053 = vmatmul.mubr.bf16.gmra.mrb[52].mxu0 %v2602_v39 }
 0x146   : > { %2142 = vmatmul.mubr.bf16.gmra.mrb[52].mxu1 %v2604_v40 }
 0x1b0   : > { %v2762_v41 = vpop.f32.mrb[0].mxu0 }
 0x1b1   : > { %v2820_v42 = vpop.f32.mrb[0].mxu1  ;;  %v2763_v43 = vpop.f32.mrb[1].mxu0 }
 0x1b2   : > { %v2764_v44 = vadd.f32 %v2763_v43, %v2762_v41  ;;  %v2821_v45 = vpop.f32.mrb[1].mxu1  ;;  %v2765_v46 = vpop.f32.mrb[2].mxu0 }
 0x1b3   : > { %v2822_v47 = vadd.f32 %v2821_v45, %v2820_v42  ;;  %v2823_v48 = vpop.f32.mrb[2].mxu1  ;;  %v2766_v49 = vpop.f32.mrb[3].mxu0 }
 0x1b4   : > { %v2767_v50 = vadd.f32 %v2766_v49, %v2765_v46  ;;  %v2824_v51 = vpop.f32.mrb[3].mxu1 }
 0x1b5   : > { %v3873_v52 = vadd.f32 %v2822_v47, %v2764_v44  ;;  %v2825_v53 = vadd.f32 %v2824_v51, %v2823_v48 }
 0x1b7   : > { %v3875_v54 = vadd.f32 %v2825_v53, %v2767_v50 }
 0x1b8   : > { %v2768_v55 = vpop.f32.mrb[4].mxu0 }
 0x1b9   : > { %v2826_v56 = vpop.f32.mrb[4].mxu1  ;;  %v2769_v57 = vpop.f32.mrb[5].mxu0 }
 0x1ba   : > { %v2770_v58 = vadd.f32 %v2769_v57, %v2768_v55  ;;  %v2827_v59 = vpop.f32.mrb[5].mxu1  ;;  %v2771_v60 = vpop.f32.mrb[6].mxu0 }
 0x1bb   : > { %v2828_v61 = vadd.f32 %v2827_v59, %v2826_v56  ;;  %v2829_v62 = vpop.f32.mrb[6].mxu1  ;;  %v2772_v63 = vpop.f32.mrb[7].mxu0 }
 0x1bc   : > { %v2773_v0 = vadd.f32 %v2772_v63, %v2771_v60  ;;  %v2830_v1 = vpop.f32.mrb[7].mxu1 }
 0x1bd   : > { %v3877_v2 = vadd.f32 %v2828_v61, %v2770_v58  ;;  %v2831_v3 = vadd.f32 %v2830_v1, %v2829_v62 }
 0x1bf   : > { %v3879_v4 = vadd.f32 %v2831_v3, %v2773_v0 }
 0x1c0   : > { %v2774_v5 = vpop.f32.mrb[8].mxu0 }
 0x1c1   : > { %v2832_v6 = vpop.f32.mrb[8].mxu1  ;;  %v2775_v7 = vpop.f32.mrb[9].mxu0 }
 0x1c2   : > { %v2776_v8 = vadd.f32 %v2775_v7, %v2774_v5  ;;  %v2833_v9 = vpop.f32.mrb[9].mxu1  ;;  %v2777_v10 = vpop.f32.mrb[10].mxu0 }
 0x1c3   : > { %v2834_v11 = vadd.f32 %v2833_v9, %v2832_v6  ;;  %v2835_v12 = vpop.f32.mrb[10].mxu1  ;;  %v2778_v13 = vpop.f32.mrb[11].mxu0 }
 0x1c4   : > { %v2779_v14 = vadd.f32 %v2778_v13, %v2777_v10  ;;  %v2836_v15 = vpop.f32.mrb[11].mxu1 }
 0x1c5   : > { %v3881_v16 = vadd.f32 %v2834_v11, %v2776_v8  ;;  %v2837_v17 = vadd.f32 %v2836_v15, %v2835_v12 }
 0x1c7   : > { %v3883_v18 = vadd.f32 %v2837_v17, %v2779_v14 }
 0x1c8   : > { %v2780_v19 = vpop.f32.mrb[12].mxu0 }
 0x1c9   : > { %v2838_v20 = vpop.f32.mrb[12].mxu1  ;;  %v2781_v21 = vpop.f32.mrb[13].mxu0 }
 0x1ca   : > { %v2782_v22 = vadd.f32 %v2781_v21, %v2780_v19  ;;  %v2839_v23 = vpop.f32.mrb[13].mxu1  ;;  %v2783_v24 = vpop.f32.mrb[14].mxu0 }
 0x1cb   : > { %v2840_v25 = vadd.f32 %v2839_v23, %v2838_v20  ;;  %v2841_v26 = vpop.f32.mrb[14].mxu1  ;;  %v2784_v27 = vpop.f32.mrb[15].mxu0 }
 0x1cc   : > { %v2785_v28 = vadd.f32 %v2784_v27, %v2783_v24  ;;  %v2842_v29 = vpop.f32.mrb[15].mxu1 }
 0x1cd   : > { %v3885_v30 = vadd.f32 %v2840_v25, %v2782_v22  ;;  %v2843_v31 = vadd.f32 %v2842_v29, %v2841_v26  ;;  %v932_v29 = vld [vmem:[#allocation2] sm:$0xff] }
 0x1cf   : > { %v3887_v32 = vadd.f32 %v2843_v31, %v2785_v28 }
 0x1d0   : > { %v2786_v33 = vpop.f32.mrb[16].mxu0 }
 0x1d1   : > { %v2844_v34 = vpop.f32.mrb[16].mxu1  ;;  %v2787_v35 = vpop.f32.mrb[17].mxu0 }
 0x1d2   : > { %v2788_v36 = vadd.f32 %v2787_v35, %v2786_v33  ;;  %v2845_v37 = vpop.f32.mrb[17].mxu1  ;;  %v2789_v38 = vpop.f32.mrb[18].mxu0  ;;  %v933_v35 = vld [vmem:[#allocation2 + $0x8] sm:$0xff] }
 0x1d3   : > { %v2846_v39 = vadd.f32 %v2845_v37, %v2844_v34  ;;  %v2847_v40 = vpop.f32.mrb[18].mxu1  ;;  %v2790_v41 = vpop.f32.mrb[19].mxu0 }
 0x1d4   : > { %v2791_v42 = vadd.f32 %v2790_v41, %v2789_v38  ;;  %v2848_v43 = vpop.f32.mrb[19].mxu1 }
 0x1d5   : > { %v3889_v44 = vadd.f32 %v2846_v39, %v2788_v36  ;;  %v2849_v45 = vadd.f32 %v2848_v43, %v2847_v40 }
 0x1d7   : > { %v3891_v46 = vadd.f32 %v2849_v45, %v2791_v42 }
 0x1d8   : > { %v2792_v47 = vpop.f32.mrb[20].mxu0 }
 0x1d9   : > { %v2850_v48 = vpop.f32.mrb[20].mxu1  ;;  %v2793_v49 = vpop.f32.mrb[21].mxu0 }
 0x1da   : > { %v2794_v50 = vadd.f32 %v2793_v49, %v2792_v47  ;;  %v2851_v51 = vpop.f32.mrb[21].mxu1  ;;  %v2795_v53 = vpop.f32.mrb[22].mxu0 }
 0x1db   : > { %v2852_v55 = vadd.f32 %v2851_v51, %v2850_v48  ;;  %v2853_v56 = vpop.f32.mrb[22].mxu1  ;;  %v2796_v57 = vpop.f32.mrb[23].mxu0 }
 0x1dc   : > { %v2797_v58 = vadd.f32 %v2796_v57, %v2795_v53  ;;  %v2854_v59 = vpop.f32.mrb[23].mxu1  ;;  %v935_v57 = vld [vmem:[#allocation2 + $0x18] sm:$0xff] }
 0x1dd   : > { %v3893_v60 = vadd.f32 %v2852_v55, %v2794_v50  ;;  %v2855_v61 = vadd.f32 %v2854_v59, %v2853_v56 }
 0x1df   : > { %v3895_v62 = vadd.f32 %v2855_v61, %v2797_v58 }
 0x1e0   : > { %v2798_v63 = vpop.f32.mrb[24].mxu0 }
 0x1e1   : > { %v2856_v0 = vpop.f32.mrb[24].mxu1  ;;  %v2799_v1 = vpop.f32.mrb[25].mxu0 }
 0x1e2   : > { %v2800_v3 = vadd.f32 %v2799_v1, %v2798_v63  ;;  %v2857_v5 = vpop.f32.mrb[25].mxu1  ;;  %v2801_v6 = vpop.f32.mrb[26].mxu0 }
 0x1e3   : > { %v2858_v7 = vadd.f32 %v2857_v5, %v2856_v0  ;;  %v2859_v8 = vpop.f32.mrb[26].mxu1  ;;  %v2802_v9 = vpop.f32.mrb[27].mxu0 }
 0x1e4   : > { %v2803_v10 = vadd.f32 %v2802_v9, %v2801_v6  ;;  %v2860_v11 = vpop.f32.mrb[27].mxu1 }
 0x1e5   : > { %v3897_v12 = vadd.f32 %v2858_v7, %v2800_v3  ;;  %v2861_v13 = vadd.f32 %v2860_v11, %v2859_v8 }
 0x1e7   : > { %v3899_v14 = vadd.f32 %v2861_v13, %v2803_v10 }
 0x1e8   : > { %v2878_v15 = vpop.f32.mrb[28].mxu0 }
 0x1e9   : > { %v2936_v17 = vpop.f32.mrb[28].mxu1  ;;  %v2879_v19 = vpop.f32.mrb[29].mxu0 }
 0x1ea   : > { %v2880_v20 = vadd.f32 %v2879_v19, %v2878_v15  ;;  %v2937_v21 = vpop.f32.mrb[29].mxu1  ;;  %v2881_v22 = vpop.f32.mrb[30].mxu0  ;;  %v937_v19 = vld [vmem:[#allocation2 + $0x28] sm:$0xff] }
 0x1eb   : > { %v2938_v23 = vadd.f32 %v2937_v21, %v2936_v17  ;;  %v2939_v24 = vpop.f32.mrb[30].mxu1  ;;  %v2882_v25 = vpop.f32.mrb[31].mxu0 }
 0x1ec   : > { %v2007_v26 = vadd.f32 %v2880_v20, %v3873_v52  ;;  %v2883_v27 = vadd.f32 %v2882_v25, %v2881_v22  ;;  %v2940_v28 = vpop.f32.mrb[31].mxu1 }
 0x1ed   : > { %v2941_v31 = vadd.f32 %v2940_v28, %v2939_v24 }
 0x1ee   : > { %v2096_v33 = vadd.f32 %v2938_v23, %v2007_v26  ;;  %v2010_v34 = vadd.f32 %v2883_v27, %v3875_v54  ;;  %v934_v54 = vld [vmem:[#allocation2 + $0x10] sm:$0xff] }
 0x1f0   : > { %v2150_v36 = vadd.f32 %v2096_v33, %v932_v29  ;;  %v2099_v37 = vadd.f32 %v2941_v31, %v2010_v34  ;;  %v2884_v38 = vpop.f32.mrb[32].mxu0 }
 0x1f1   : > { %v2942_v39 = vpop.f32.mrb[32].mxu1  ;;  %v2885_v40 = vpop.f32.mrb[33].mxu0 }
 0x1f2   : > { %2164 = vst [vmem:[#allocation2] sm:$0xff] %v2150_v36  ;;  %v2151_v41 = vadd.f32 %v2099_v37, %v933_v35  ;;  %v2886_v42 = vadd.f32 %v2885_v40, %v2884_v38  ;;  %v2943_v43 = vpop.f32.mrb[33].mxu1  ;;  %v2887_v45 = vpop.f32.mrb[34].mxu0 }
 0x1f3   : > { %v2944_v47 = vadd.f32 %v2943_v43, %v2942_v39  ;;  %v2945_v52 = vpop.f32.mrb[34].mxu1  ;;  %v2888_v48 = vpop.f32.mrb[35].mxu0  ;;  %v939_v39 = vld [vmem:[#allocation2 + $0x38] sm:$0xff] }
 0x1f4   : > { %2165 = vst [vmem:[#allocation2 + $0x8] sm:$0xff] %v2151_v41  ;;  %v2015_v49 = vadd.f32 %v2886_v42, %v3877_v2  ;;  %v2889_v50 = vadd.f32 %v2888_v48, %v2887_v45  ;;  %v2946_v51 = vpop.f32.mrb[35].mxu1 }
 0x1f5   : > { %v2947_v53 = vadd.f32 %v2946_v51, %v2945_v52 }
 0x1f6   : > { %v2104_v55 = vadd.f32 %v2944_v47, %v2015_v49  ;;  %v2018_v56 = vadd.f32 %v2889_v50, %v3879_v4  ;;  %v936_v4 = vld [vmem:[#allocation2 + $0x20] sm:$0xff] }
 0x1f8   : > { %v2152_v58 = vadd.f32 %v2104_v55, %v934_v54  ;;  %v2107_v59 = vadd.f32 %v2947_v53, %v2018_v56  ;;  %v2890_v61 = vpop.f32.mrb[36].mxu0 }
 0x1f9   : > { %v2948_v63 = vpop.f32.mrb[36].mxu1  ;;  %v2891_v0 = vpop.f32.mrb[37].mxu0 }
 0x1fa   : > { %2166 = vst [vmem:[#allocation2 + $0x10] sm:$0xff] %v2152_v58  ;;  %v2153_v1 = vadd.f32 %v2107_v59, %v935_v57  ;;  %v2892_v3 = vadd.f32 %v2891_v0, %v2890_v61  ;;  %v2949_v5 = vpop.f32.mrb[37].mxu1  ;;  %v2893_v6 = vpop.f32.mrb[38].mxu0  ;;  %v941_v59 = vld [vmem:[#allocation2 + $0x48] sm:$0xff] }
 0x1fb   : > { %v2950_v7 = vadd.f32 %v2949_v5, %v2948_v63  ;;  %v2951_v2 = vpop.f32.mrb[38].mxu1  ;;  %v2894_v8 = vpop.f32.mrb[39].mxu0 }
 0x1fc   : > { %2167 = vst [vmem:[#allocation2 + $0x18] sm:$0xff] %v2153_v1  ;;  %v2023_v9 = vadd.f32 %v2892_v3, %v3881_v16  ;;  %v2895_v10 = vadd.f32 %v2894_v8, %v2893_v6  ;;  %v2952_v11 = vpop.f32.mrb[39].mxu1 }
 0x1fd   : > { %v2953_v13 = vadd.f32 %v2952_v11, %v2951_v2 }
 0x1fe   : > { %v2112_v15 = vadd.f32 %v2950_v7, %v2023_v9  ;;  %v2026_v17 = vadd.f32 %v2895_v10, %v3883_v18  ;;  %v938_v18 = vld [vmem:[#allocation2 + $0x30] sm:$0xff] }
 0x200   : > { %v2154_v20 = vadd.f32 %v2112_v15, %v936_v4  ;;  %v2115_v21 = vadd.f32 %v2953_v13, %v2026_v17  ;;  %v2896_v22 = vpop.f32.mrb[40].mxu0 }
 0x201   : > { %v2954_v23 = vpop.f32.mrb[40].mxu1  ;;  %v2897_v24 = vpop.f32.mrb[41].mxu0 }
 0x202   : > { %2168 = vst [vmem:[#allocation2 + $0x20] sm:$0xff] %v2154_v20  ;;  %v2155_v25 = vadd.f32 %v2115_v21, %v937_v19  ;;  %v2898_v26 = vadd.f32 %v2897_v24, %v2896_v22  ;;  %v2955_v27 = vpop.f32.mrb[41].mxu1  ;;  %v2899_v28 = vpop.f32.mrb[42].mxu0  ;;  %v943_v19 = vld [vmem:[#allocation2 + $0x58] sm:$0xff] }
 0x203   : > { %v2956_v29 = vadd.f32 %v2955_v27, %v2954_v23  ;;  %v2957_v16 = vpop.f32.mrb[42].mxu1  ;;  %v2900_v31 = vpop.f32.mrb[43].mxu0 }
 0x204   : > { %2169 = vst [vmem:[#allocation2 + $0x28] sm:$0xff] %v2155_v25  ;;  %v2031_v33 = vadd.f32 %v2898_v26, %v3885_v30  ;;  %v2901_v34 = vadd.f32 %v2900_v31, %v2899_v28  ;;  %v2958_v35 = vpop.f32.mrb[43].mxu1 }
 0x205   : > { %v2959_v36 = vadd.f32 %v2958_v35, %v2957_v16 }
 0x206   : > { %v2120_v37 = vadd.f32 %v2956_v29, %v2031_v33  ;;  %v2034_v38 = vadd.f32 %v2901_v34, %v3887_v32  ;;  %v940_v32 = vld [vmem:[#allocation2 + $0x40] sm:$0xff] }
 0x208   : > { %v2156_v40 = vadd.f32 %v2120_v37, %v938_v18  ;;  %v2123_v41 = vadd.f32 %v2959_v36, %v2034_v38  ;;  %v2902_v42 = vpop.f32.mrb[44].mxu0  ;;  %v945_v37 = vld [vmem:[#allocation2 + $0x68] sm:$0xff] }
 0x209   : > { %v2960_v43 = vpop.f32.mrb[44].mxu1  ;;  %v2903_v45 = vpop.f32.mrb[45].mxu0 }
 0x20a   : > { %2170 = vst [vmem:[#allocation2 + $0x30] sm:$0xff] %v2156_v40  ;;  %v2157_v47 = vadd.f32 %v2123_v41, %v939_v39  ;;  %v2904_v52 = vadd.f32 %v2903_v45, %v2902_v42  ;;  %v2961_v48 = vpop.f32.mrb[45].mxu1  ;;  %v2905_v49 = vpop.f32.mrb[46].mxu0  ;;  %v2182_v41 = vld [vmem:[#allocation2] sm:$0xff] (!%p2670_p5)  ;;  %v2183_v42 = vld [vmem:[#allocation2 + $0x8] sm:$0xff] (!%p2670_p5)  ;;  %v2184_v45 = vld [vmem:[#allocation2 + $0x10] sm:$0xff] (!%p2670_p5) }
 0x20b   : > { %v2962_v50 = vadd.f32 %v2961_v48, %v2960_v43  ;;  %v2963_v30 = vpop.f32.mrb[46].mxu1  ;;  %v2906_v51 = vpop.f32.mrb[47].mxu0 }
 0x20c   : > { %2171 = vst [vmem:[#allocation2 + $0x38] sm:$0xff] %v2157_v47  ;;  %v2039_v54 = vadd.f32 %v2904_v52, %v3889_v44  ;;  %v2907_v53 = vadd.f32 %v2906_v51, %v2905_v49  ;;  %v2964_v55 = vpop.f32.mrb[47].mxu1  ;;  %v2185_v47 = vld [vmem:[#allocation2 + $0x18] sm:$0xff] (!%p2670_p5)  ;;  %v2186_v52 = vld [vmem:[#allocation2 + $0x20] sm:$0xff] (!%p2670_p5) }
 0x20d   : > { %v2965_v56 = vadd.f32 %v2964_v55, %v2963_v30 }
 0x20e   : > { %v2128_v57 = vadd.f32 %v2962_v50, %v2039_v54  ;;  %v2042_v58 = vadd.f32 %v2907_v53, %v3891_v46  ;;  %v942_v46 = vld [vmem:[#allocation2 + $0x50] sm:$0xff]  ;;  %v2187_v50 = vld [vmem:[#allocation2 + $0x28] sm:$0xff] (!%p2670_p5) }
 0x210   : > { %v2158_v61 = vadd.f32 %v2128_v57, %v940_v32  ;;  %v2131_v63 = vadd.f32 %v2965_v56, %v2042_v58  ;;  %v2908_v0 = vpop.f32.mrb[48].mxu0 }
 0x211   : > { %v2966_v1 = vpop.f32.mrb[48].mxu1  ;;  %v2909_v3 = vpop.f32.mrb[49].mxu0  ;;  %v2188_v51 = vld [vmem:[#allocation2 + $0x30] sm:$0xff] (!%p2670_p5) }
 0x212   : > { %2172 = vst [vmem:[#allocation2 + $0x40] sm:$0xff] %v2158_v61  ;;  %v2159_v5 = vadd.f32 %v2131_v63, %v941_v59  ;;  %v2910_v6 = vadd.f32 %v2909_v3, %v2908_v0  ;;  %v2967_v7 = vpop.f32.mrb[49].mxu1  ;;  %v2911_v2 = vpop.f32.mrb[50].mxu0 }
 0x213   : > { %v2968_v8 = vadd.f32 %v2967_v7, %v2966_v1  ;;  %v2969_v44 = vpop.f32.mrb[50].mxu1  ;;  %v2912_v9 = vpop.f32.mrb[51].mxu0  ;;  %v2189_v59 = vld [vmem:[#allocation2 + $0x38] sm:$0xff] (!%p2670_p5) }
 0x214   : > { %2173 = vst [vmem:[#allocation2 + $0x48] sm:$0xff] %v2159_v5  ;;  %v2047_v10 = vadd.f32 %v2910_v6, %v3893_v60  ;;  %v2913_v11 = vadd.f32 %v2912_v9, %v2911_v2  ;;  %v2970_v4 = vpop.f32.mrb[51].mxu1 }
 0x215   : > { %v2971_v13 = vadd.f32 %v2970_v4, %v2969_v44 }
 0x216   : > { %v2136_v15 = vadd.f32 %v2968_v8, %v2047_v10  ;;  %v2050_v17 = vadd.f32 %v2913_v11, %v3895_v62  ;;  %v944_v62 = vld [vmem:[#allocation2 + $0x60] sm:$0xff] }
 0x218   : > { %v2160_v20 = vadd.f32 %v2136_v15, %v942_v46  ;;  %v2139_v21 = vadd.f32 %v2971_v13, %v2050_v17  ;;  %v2914_v22 = vpop.f32.mrb[52].mxu0 }
 0x219   : > { %v2972_v23 = vpop.f32.mrb[52].mxu1  ;;  %v2915_v24 = vpop.f32.mrb[53].mxu0  ;;  %v2190_v61 = vld [vmem:[#allocation2 + $0x40] sm:$0xff] (!%p2670_p5) }
 0x21a   : > { %2174 = vst [vmem:[#allocation2 + $0x50] sm:$0xff] %v2160_v20  ;;  %v2161_v25 = vadd.f32 %v2139_v21, %v943_v19  ;;  %v2916_v26 = vadd.f32 %v2915_v24, %v2914_v22  ;;  %v2973_v27 = vpop.f32.mrb[53].mxu1  ;;  %v2917_v28 = vpop.f32.mrb[54].mxu0 }
 0x21b   : > { %v2974_v29 = vadd.f32 %v2973_v27, %v2972_v23  ;;  %v2975_v60 = vpop.f32.mrb[54].mxu1  ;;  %v2918_v16 = vpop.f32.mrb[55].mxu0  ;;  %v2191_v63 = vld [vmem:[#allocation2 + $0x48] sm:$0xff] (!%p2670_p5) }
 0x21c   : > { %2175 = vst [vmem:[#allocation2 + $0x58] sm:$0xff] %v2161_v25  ;;  %v2055_v31 = vadd.f32 %v2916_v26, %v3897_v12  ;;  %v2919_v33 = vadd.f32 %v2918_v16, %v2917_v28  ;;  %v2976_v34 = vpop.f32.mrb[55].mxu1  ;;  %v3921_v12 = vld [vmem:[%s911_s4] ss:$0 sm:$0xff] (!%p2670_p5) }
 0x21d   : > { %v2977_v35 = vadd.f32 %v2976_v34, %v2975_v60  ;;  %v2204_v43 = vadd.f32 (!%p2670_p5), %v3921_v12, %v2183_v42  ;;  %v2205_v48 = vadd.f32 (!%p2670_p5), %v3921_v12, %v2184_v45  ;;  %v2206_v49 = vadd.f32 (!%p2670_p5), %v3921_v12, %v2185_v47 }
 0x21e   : > { %v2144_v18 = vadd.f32 %v2974_v29, %v2055_v31  ;;  %v2058_v36 = vadd.f32 %v2919_v33, %v3899_v14  ;;  %2181 = sbr.rel (%p2670_p5) target bundleno = 564 (0x234), region = 104  ;;  %v2203_v14 = vadd.f32 (!%p2670_p5), %v3921_v12, %v2182_v41  ;;  %v2207_v30 = vadd.f32 (!%p2670_p5), %v3921_v12, %v2186_v52 }
 0x21f   : > { %vm2218_vm1 = vcmp.ge.f32.partialorder (!%p2670_p5), %v2204_v43, 0.0  ;;  %v2232_v53 = vmul.f32 (!%p2670_p5), 0.2, %v2204_v43  ;;  %vm2219_vm2 = vcmp.ge.f32.partialorder (!%p2670_p5), %v2205_v48, 0.0  ;;  %vm2220_vm3 = vcmp.ge.f32.partialorder (!%p2670_p5), %v2206_v49, 0.0 }
 0x220   : > { %v2162_v38 = vadd.f32 %v2144_v18, %v944_v62  ;;  %v2147_v39 = vadd.f32 %v2977_v35, %v2058_v36  ;;  %vm2217_vm0 = vcmp.ge.f32.partialorder (!%p2670_p5), %v2203_v14, 0.0  ;;  %v2231_v54 = vmul.f32 (!%p2670_p5), 0.2, %v2203_v14 }
 0x221   : > { %v2233_v55 = vmul.f32 (!%p2670_p5), 0.2, %v2205_v48  ;;  %v2234_v32 = vmul.f32 (!%p2670_p5), 0.2, %v2206_v49  ;;  %v2246_v57 = vsel (!%p2670_p5), %vm2218_vm1, %v2204_v43, %v2232_v53  ;;  %v2208_v58 = vadd.f32 (!%p2670_p5), %v3921_v12, %v2187_v50  ;;  %v2192_v6 = vld [vmem:[#allocation2 + $0x50] sm:$0xff] (!%p2670_p5) }
 0x222   : > { %2176 = vst [vmem:[#allocation2 + $0x60] sm:$0xff] %v2162_v38  ;;  %v2163_v40 = vadd.f32 %v2147_v39, %v945_v37  ;;  %v2245_v56 = vsel (!%p2670_p5), %vm2217_vm0, %v2203_v14, %v2231_v54  ;;  %vm2221_vm4 = vcmp.ge.f32.partialorder (!%p2670_p5), %v2207_v30, 0.0  ;;  %v2235_v5 = vmul.f32 (!%p2670_p5), 0.2, %v2207_v30 }
 0x223   : > { %v2708_v0 = vpack.c.bf16 (!%p2670_p5), %v2246_v57, %v2245_v56  ;;  %v2247_v1 = vsel (!%p2670_p5), %vm2219_vm2, %v2205_v48, %v2233_v55  ;;  %v2248_v3 = vsel (!%p2670_p5), %vm2220_vm3, %v2206_v49, %v2234_v32  ;;  %vm2222_vm5 = vcmp.ge.f32.partialorder (!%p2670_p5), %v2208_v58, 0.0  ;;  %v2193_v13 = vld [vmem:[#allocation2 + $0x58] sm:$0xff] (!%p2670_p5) }
 0x224   : > { %2177 = vst [vmem:[#allocation2 + $0x68] sm:$0xff] %v2163_v40  ;;  %v2713_v7 = vpack.c.bf16 (!%p2670_p5), %v2248_v3, %v2247_v1  ;;  %v2236_v2 = vmul.f32 (!%p2670_p5), 0.2, %v2208_v58  ;;  %v2209_v8 = vadd.f32 (!%p2670_p5), %v3921_v12, %v2188_v51  ;;  %v2249_v44 = vsel (!%p2670_p5), %vm2221_vm4, %v2207_v30, %v2235_v5 }
 0x225   : > { %2709 = vst [vmem:[%s3750_s25] sm:$0xff] %v2708_v0   ;;  %v2210_v9 = vadd.f32 %v3921_v12, %v2189_v59  ;;  %v2211_v10 = vadd.f32 %v3921_v12, %v2190_v61  ;;  %v2212_v11 = vadd.f32 %v3921_v12, %v2191_v63  ;;  %v2213_v15 = vadd.f32 %v3921_v12, %v2192_v6 }
 0x226   : > { %2740 = vst [vmem:[%s3750_s25 + $0x8] sm:$0xff] %v2713_v7   ;;  %v2250_v4 = vsel %vm2222_vm5, %v2208_v58, %v2236_v2  ;;  %vm2223_vm6 = vcmp.ge.f32.partialorder %v2209_v8, 0.0  ;;  %v2237_v46 = vmul.f32 0.2, %v2209_v8  ;;  %v2214_v25 = vadd.f32 %v3921_v12, %v2193_v13 }
 0x227   : > { %v2718_v17 = vpack.c.bf16 %v2250_v4, %v2249_v44  ;;  %vm2224_vm7 = vcmp.ge.f32.partialorder %v2210_v9, 0.0  ;;  %v2238_v19 = vmul.f32 0.2, %v2210_v9  ;;  %vm2225_vm8 = vcmp.ge.f32.partialorder %v2211_v10, 0.0 }
 0x228   : > { %v2251_v21 = vsel %vm2223_vm6, %v2209_v8, %v2237_v46  ;;  %vm2226_vm9 = vcmp.ge.f32.partialorder %v2212_v11, 0.0  ;;  %v2239_v22 = vmul.f32 0.2, %v2211_v10  ;;  %v2240_v23 = vmul.f32 0.2, %v2212_v11 }
 0x229   : > { %v2194_v20 = vld [vmem:[#allocation2 + $0x60] sm:$0xff]  ;;  %2741 = vst [vmem:[%s3750_s25 + $0x10] sm:$0xff] %v2718_v17   ;;  %v2252_v24 = vsel %vm2224_vm7, %v2210_v9, %v2238_v19  ;;  %vm2227_vm10 = vcmp.ge.f32.partialorder %v2213_v15, 0.0  ;;  %v2241_v26 = vmul.f32 0.2, %v2213_v15  ;;  %vm2228_vm11 = vcmp.ge.f32.partialorder %v2214_v25, 0.0 }
 0x22a   : > { %v2723_v28 = vpack.c.bf16 %v2252_v24, %v2251_v21  ;;  %v2253_v29 = vsel %vm2225_vm8, %v2211_v10, %v2239_v22  ;;  %v2254_v60 = vsel %vm2226_vm9, %v2212_v11, %v2240_v23  ;;  %v2215_v16 = vadd.f32 %v3921_v12, %v2194_v20 }
 0x22b   : > { %v2195_v27 = vld [vmem:[#allocation2 + $0x68] sm:$0xff]  ;;  %v2728_v31 = vpack.c.bf16 %v2254_v60, %v2253_v29  ;;  %v2242_v33 = vmul.f32 0.2, %v2214_v25  ;;  %v2255_v34 = vsel %vm2227_vm10, %v2213_v15, %v2241_v26 }
 0x22c   : > { %2742 = vst [vmem:[%s3750_s25 + $0x18] sm:$0xff] %v2723_v28   ;;  %v2216_v62 = vadd.f32 %v3921_v12, %v2195_v27  ;;  %vm2229_vm12 = vcmp.ge.f32.partialorder %v2215_v16, 0.0  ;;  %v2243_v35 = vmul.f32 0.2, %v2215_v16 }
 0x22d   : > { %2743 = vst [vmem:[%s3750_s25 + $0x20] sm:$0xff] %v2728_v31   ;;  %v2256_v18 = vsel %vm2228_vm11, %v2214_v25, %v2242_v33 }
 0x22e   : > { %v2733_v36 = vpack.c.bf16 %v2256_v18, %v2255_v34  ;;  %vm2230_vm13 = vcmp.ge.f32.partialorder %v2216_v62, 0.0  ;;  %v2244_v37 = vmul.f32 0.2, %v2216_v62  ;;  %v2257_v38 = vsel %vm2229_vm12, %v2215_v16, %v2243_v35 }
 0x230   : > { %2744 = vst [vmem:[%s3750_s25 + $0x28] sm:$0xff] %v2733_v36   ;;  %v2258_v39 = vsel %vm2230_vm13, %v2216_v62, %v2244_v37 }
 0x231   : > { %v2738_v40 = vpack.c.bf16 %v2258_v39, %v2257_v38 }
 0x233   : > { %2745 = vst [vmem:[%s3750_s25 + $0x30] sm:$0xff] %v2738_v40  }
 0x234 PF: > { %2335 = sbr.rel (!%p3337_p12) target bundleno = 575 (0x23f), region = 108  ;;  %s2686_s14 = sshll.u32 (%p3337_p12), %s3208_s19, 2  ;;  %v2360_v12 = vld [vmem:[%s3750_s25 + $0x8] sm:$0xf] (%p3337_p12)  ;;  %v2362_v14 = vld [vmem:[%s3750_s25 + $0xc] sm:$0xf] (%p3337_p12) }
 0x235   : > { %s2340_s5 = scalar_lea.vmem (%p3337_p12), %s4000_s3, %s2686_s14  ;;  %v2364_v43 = vld [vmem:[%s3750_s25 + $0x10] sm:$0xf] (%p3337_p12)  ;;  %v2366_v45 = vld [vmem:[%s3750_s25 + $0x14] sm:$0xf] (%p3337_p12)  ;;  %v2368_v47 = vld [vmem:[%s3750_s25 + $0x18] sm:$0xf] (%p3337_p12) }
 0x236   : > { %2361 = vst [vmem:[%s2340_s5 + $0x10] sm:$0xf] (%p3337_p12), %v2360_v12  ;;  %2363 = vst [vmem:[%s2340_s5 + $0x18] sm:$0xf] (%p3337_p12), %v2362_v14  ;;  %v2370_v52 = vld [vmem:[%s3750_s25 + $0x1c] sm:$0xf] (%p3337_p12) }
 0x237   : > { %2365 = vst [vmem:[%s2340_s5 + $0x20] sm:$0xf] (%p3337_p12), %v2364_v43  ;;  %2367 = vst [vmem:[%s2340_s5 + $0x28] sm:$0xf] (%p3337_p12), %v2366_v45  ;;  %v2372_v48 = vld [vmem:[%s3750_s25 + $0x20] sm:$0xf] (%p3337_p12) }
 0x238   : > { %2369 = vst [vmem:[%s2340_s5 + $0x30] sm:$0xf] (%p3337_p12), %v2368_v47  ;;  %2371 = vst [vmem:[%s2340_s5 + $0x38] sm:$0xf] (%p3337_p12), %v2370_v52  ;;  %v2374_v49 = vld [vmem:[%s3750_s25 + $0x24] sm:$0xf] (%p3337_p12) }
 0x239   : > { %v2376_v50 = vld [vmem:[%s3750_s25 + $0x28] sm:$0xf] (%p3337_p12)  ;;  %2373 = vst [vmem:[%s2340_s5 + $0x40] sm:$0xf] (%p3337_p12), %v2372_v48  ;;  %2375 = vst [vmem:[%s2340_s5 + $0x48] sm:$0xf] (%p3337_p12), %v2374_v49 }
 0x23a   : > { %2377 = vst [vmem:[%s2340_s5 + $0x50] sm:$0xf] (%p3337_p12), %v2376_v50  ;;  %v2378_v30 = vld [vmem:[%s3750_s25 + $0x2c] sm:$0xf] (%p3337_p12)  ;;  %v2380_v51 = vld [vmem:[%s3750_s25 + $0x30] sm:$0xf] (%p3337_p12) }
 0x23b   : > { %v2356_v41 = vld [vmem:[%s3750_s25] sm:$0xf]  ;;  %v2358_v42 = vld [vmem:[%s3750_s25 + $0x4] sm:$0xf]  ;;  %v2382_v54 = vld [vmem:[%s3750_s25 + $0x34] sm:$0xf] }
 0x23c   : > { %2357 = vst [vmem:[%s2340_s5] sm:$0xf] %v2356_v41  ;;  %2359 = vst [vmem:[%s2340_s5 + $0x8] sm:$0xf] %v2358_v42 }
 0x23d   : > { %2379 = vst [vmem:[%s2340_s5 + $0x58] sm:$0xf] %v2378_v30  ;;  %2381 = vst [vmem:[%s2340_s5 + $0x60] sm:$0xf] %v2380_v51 }
 0x23e   : > { %2383 = vst [vmem:[%s2340_s5 + $0x68] sm:$0xf] %v2382_v54 }
 0x23f PF: > { %s13_s22 = sadd.s32 1, %s3220_s22   ;;  %s4010_s10 = sld [smem:[#allocation6_spill]] }
 0x240   : > { %p10_p6 = scmp.ge.s32.totalorder %s13_s22, 6   ;;  %s4011_s12 = smov %s3184_s13 }
 0x241   : > { %s4012_s13 = smov %s3335_s9  ;;  %s4013_s14 = smov %s3192_s15 }
 0x242   : > { %s4014_s15 = smov %s3332_s8  ;;  %s4015_s16 = smov %s3200_s17 }
 0x243   : > { %s4016_s17 = smov %s3318_s30  ;;  %s4017_s18 = smov %s3212_s20 }
 0x244   : > { %s4018_s19 = smov %s3216_s21  ;;  %s4019_s20 = smov %s4022_s24 }
 0x245   : > { %s4020_s21 = smov %s4010_s10  ;;  %12 = sbr.rel (!%p10_p6) target bundleno = 9 (0x9), region = 191 }

// kernel: forward.7
= control target key start
LH: loop header
LB: loop body
LE: loop exit
PB: predicated region body
PF: predicated region fallthrough
CT: control target
= control target key end

     0   :  { %s611_s0 = inlined_call_operand.vmem [shape: bf16[16,12544], index: 0, kind: input, shape index: {}]   ;;  %s612_s1 = inlined_call_operand.vmem [shape: bf16[1,12544], index: 1, kind: input, shape index: {}]   ;;  %s613_s2 = inlined_call_operand.<no memory space> [shape: f32[1,1], index: 2, kind: input, shape index: {}]   ;;  %s614_s3 = inlined_call_operand.vmem [shape: f32[16,1], index: 3, kind: output, shape index: {}]  }
   0x1   :  { %v8_v0 = vstv %s613_s2 }
   0x2   :  { %9 = vst [vmem:[#allocation3] sm:$0x1] %v8_v0 }
   0x3   :  { %s537_s14 = smov 0   ;;  %s539_s15 = smov 0  }
   0x4   :  { %s541_s16 = smov 0  }
   0x5 LB: > { %s553_s2 = sadd.s32 4294967295, %s511_s16   ;;  %s556_s17 = sadd.s32 1, %s511_s16   ;;  %s511_s16 = sphi %s541_s16, %s617_s16   ;;  %s507_s15 = sphi %s539_s15, %s616_s15   ;;  %s503_s14 = sphi %s537_s14, %s615_s14  }
   0x6   : > { %s19_s18 = ssub.s32 %s511_s16, %s556_s17  ;;  %s22_s19 = sadd.s32 1, %s507_s15 }
   0x7   : > { %p20_p0 = scmp.eq.s32.totalorder %s19_s18, 0  ;;  %p29_p1 = scmp.ne.s32.totalorder %s507_s15, %s503_s14 }
   0x8   : > { %p30_p2 = scmp.eq.s32.totalorder %s511_s16, 0  ;;  %p441_p4 = scmp.ge.s32.totalorder %s511_s16, 14 }
   0x9   : > { %s565_s20 = scalar_select %p20_p0, %s507_s15, %s22_s19  }
   0xa   : > { %p31_p3 = por %p30_p2, %p29_p1  ;;  %126 = sbr.rel (%p441_p4) target bundleno = 26 (0x1a), region = 20 }
  0x11   : > { %129 = sbr.rel (!%p31_p3) target bundleno = 26 (0x1a), region = 24  ;;  %s131_s21 = sand.u32 (%p31_p3), 1, %s507_s15  }
  0x12   : > { %s453_s22 = smul.u32 (%p31_p3), 28, %s511_s16 }
  0x13   : > { %s454_s23 = smul.u32 (%p31_p3), 56, %s131_s21 }
  0x14   : > { %s136_s26 = scalar_lea.vmem (%p31_p3), %s611_s0, %s453_s22 }
  0x15   : > { %v151_v1 = vld [vmem:[%s136_s26] sm:$0xff] (%p31_p3)  ;;  %v153_v2 = vld [vmem:[%s136_s26 + $0x8] sm:$0xff] (%p31_p3)  ;;  %v155_v3 = vld [vmem:[%s136_s26 + $0x10] sm:$0xff] (%p31_p3)  ;;  %s133_s27 = scalar_lea.vmem (%p31_p3), [#allocation4], %s454_s23 }
  0x16   : > { %152 = vst [vmem:[%s133_s27] sm:$0xff] (%p31_p3), %v151_v1  ;;  %154 = vst [vmem:[%s133_s27 + $0x8] sm:$0xff] (%p31_p3), %v153_v2  ;;  %v157_v4 = vld [vmem:[%s136_s26 + $0x188] sm:$0xff] (%p31_p3)  ;;  %v159_v5 = vld [vmem:[%s136_s26 + $0x190] sm:$0xff] (%p31_p3) }
  0x17   : > { %156 = vst [vmem:[%s133_s27 + $0x10] sm:$0xff] (%p31_p3), %v155_v3  ;;  %v161_v6 = vld [vmem:[%s136_s26 + $0x198] sm:$0xff] (%p31_p3)  ;;  %158 = vst [vmem:[%s133_s27 + $0x1c] sm:$0xff] (%p31_p3), %v157_v4  ;;  %v445_v8 = vld [vmem:[%s136_s26 + $0x1a0] sm:$0xf] (%p31_p3) }
  0x18   : > { %160 = vst [vmem:[%s133_s27 + $0x24] sm:$0xff] %v159_v5  ;;  %162 = vst [vmem:[%s133_s27 + $0x2c] sm:$0xff] %v161_v6  ;;  %v443_v7 = vld [vmem:[%s136_s26 + $0x18] sm:$0xf] }
  0x19   : > { %444 = vst [vmem:[%s133_s27 + $0x18] sm:$0xf] %v443_v7  ;;  %446 = vst [vmem:[%s133_s27 + $0x34] sm:$0xf] %v445_v8 }
  0x1a PF: > { %p447_p5 = scmp.ge.s32.totalorder %s511_s16, 1  ;;  %p186_p6 = scmp.lt.s32.totalorder %s511_s16, 15 }
  0x1c   : > { %p187_p7 = pnand %p447_p5, %p186_p6 }
  0x1d   : > { %s193_s28 = sand.u32 (!%p187_p7), 1, %s503_s14   ;;  %s216_s29 = smul.u32 (!%p187_p7), 7, %s553_s2 }
  0x1e   : > { %190 = sbr.rel (%p187_p7) target bundleno = 260 (0x104), region = 54  ;;  %p448_p9 = scmp.ne.s32.totalorder (!%p187_p7), %s553_s2, 0 }
  0x1f   : > { %s455_s30 = smul.u32 (!%p187_p7), 56, %s193_s28  ;;  %p217_p8 = scmp.lt.s32.totalorder (!%p187_p7), %s216_s29, 97 }
  0x21   : > { %s580_s7 = scalar_lea.vmem (!%p187_p7), [#allocation4], %s455_s30 }
  0x25   : > { %s619_s29 = smov (!%p217_p8, %s216_s29), 97  ;;  %224 = sbr.rel (%p448_p9) target bundleno = 44 (0x2c), region = 62 }
  0x26   : > { %s219_s6 = scalar_lea.vmem %s612_s1, %s619_s29  ;;  %vm225_vm0 = vcmask (!%p448_p9), 7168   ;;  %v513_v9 = vmov (!%p448_p9), 0.0  }
  0x27   : > { %226 = vst.msk [vmem:[#allocation2] sm:$0xff] (!%p448_p9), %vm225_vm0, %v513_v9  ;;  %227 = vst.msk [vmem:[#allocation2 + $0x8] sm:$0xff] (!%p448_p9), %vm225_vm0, %v513_v9 }
  0x2c PF: > { %v255_v10 = vlaneseq  ;;  %v228_v11 = vld [vmem:[%s580_s7] sm:$0xff]  ;;  %v250_v12 = vld [vmem:[%s219_s6] sm:$0x7f]  ;;  %vm352_vm1 = vcmask 7168   ;;  %p449_p10 = scmp.ne.s32.totalorder %s553_s2, 13 }
  0x2d   : > { %v229_v13 = vld [vmem:[%s580_s7 + $0x8] sm:$0xff]  ;;  %v251_v14 = vunpack.c.l.bf16 %v250_v12  ;;  %v232_v16 = vld [vmem:[%s580_s7 + $0x1c] sm:$0xff]  ;;  %v236_v17 = vunpack.c.l.bf16 %v228_v11  ;;  %v252_v18 = vunpack.c.h.bf16 %v250_v12  ;;  %v237_v24 = vunpack.c.h.bf16 %v228_v11  ;;  %v230_v28 = vld [vmem:[%s580_s7 + $0x10] sm:$0xff] }
  0x2e   : > { %v256_v15 = vshrl.u32 %v255_v10, 7  ;;  %v233_v23 = vld [vmem:[%s580_s7 + $0x24] sm:$0xff]  ;;  %v238_v25 = vunpack.c.l.bf16 %v229_v13  ;;  %v239_v26 = vunpack.c.h.bf16 %v229_v13  ;;  %v243_v27 = vunpack.c.l.bf16 %v232_v16  ;;  %v234_v41 = vld [vmem:[%s580_s7 + $0x2c] sm:$0xff]  ;;  %v231_v45 = vld [vmem:[%s580_s7 + $0x18] ss:$28 sps:$4 sm:$0xff]  }
  0x2f   : > { %v244_v35 = vunpack.c.h.bf16 %v232_v16  ;;  %v245_v36 = vunpack.c.l.bf16 %v233_v23  ;;  %v240_v42 = vunpack.c.l.bf16 %v230_v28  ;;  %v246_v44 = vunpack.c.h.bf16 %v233_v23  ;;  %v332_v16 = vld [vmem:[#allocation2] sm:$0xff]  ;;  %v450_v23 = vld [vmem:[#allocation3] ss:$0 sm:$0xff] (!%p449_p10) }
  0x30   : > { %v257_v19 = vsub.s32 0, %v256_v15  ;;  %v261_v20 = vsub.s32 2, %v256_v15  ;;  %v265_v21 = vsub.s32 4, %v256_v15  ;;  %v269_v22 = vsub.s32 6, %v256_v15 }
  0x31   : > { %v241_v50 = vunpack.c.h.bf16 %v230_v28  ;;  %v247_v52 = vunpack.c.l.bf16 %v234_v41  ;;  %v242_v58 = vunpack.c.l.bf16 %v231_v45  ;;  %v248_v60 = vunpack.c.h.bf16 %v234_v41 }
  0x32   : > { %v258_v29 = vrot.slane %v251_v14, %v257_v19  ;;  %v262_v30 = vrot.slane %v251_v14, %v261_v20  ;;  %v266_v31 = vrot.slane %v251_v14, %v265_v21  ;;  %v270_v32 = vrot.slane %v251_v14, %v269_v22 }
  0x33   : > { %v274_v33 = vrot.slane %v252_v18, %v257_v19  ;;  %v278_v34 = vrot.slane %v252_v18, %v261_v20  ;;  %v282_v43 = vrot.slane %v252_v18, %v265_v21  ;;  %v249_v1 = vunpack.c.h.bf16 %v231_v45 }
  0x34   : > { %v293_v37 = vrot.slane %v258_v29, %v257_v19  ;;  %v297_v38 = vrot.slane %v262_v30, %v257_v19  ;;  %v301_v39 = vrot.slane %v266_v31, %v257_v19  ;;  %v305_v40 = vrot.slane %v270_v32, %v257_v19 }
  0x35   : > { %v309_v46 = vrot.slane %v274_v33, %v257_v19  ;;  %v313_v51 = vrot.slane %v278_v34, %v257_v19  ;;  %v317_v59 = vrot.slane %v282_v43, %v257_v19  ;;  %v333_v19 = vld [vmem:[#allocation2 + $0x8] sm:$0xff] }
  0x36   : > { %v318_v47 = vmul.f32 %v293_v37, %v236_v17  ;;  %v319_v48 = vmul.f32 %v297_v38, %v237_v24  ;;  %v320_v49 = vmul.f32 %v301_v39, %v238_v25  ;;  %v325_v53 = vmul.f32 %v293_v37, %v243_v27 }
  0x37   : > { %v321_v54 = vmul.f32 %v305_v40, %v239_v26  ;;  %v326_v56 = vmul.f32 %v297_v38, %v244_v35  ;;  %v327_v57 = vmul.f32 %v301_v39, %v245_v36  ;;  %v322_v61 = vmul.f32 %v309_v46, %v240_v42 }
  0x38   : > { %v334_v55 = vadd.f32 %v319_v48, %v318_v47  ;;  %v328_v63 = vmul.f32 %v305_v40, %v246_v44  ;;  %v323_v2 = vmul.f32 %v313_v51, %v241_v50  ;;  %v329_v4 = vmul.f32 %v309_v46, %v247_v52 }
  0x39   : > { %v342_v0 = vadd.f32 %v326_v56, %v325_v53  ;;  %v324_v6 = vmul.f32 %v317_v59, %v242_v58  ;;  %v330_v8 = vmul.f32 %v313_v51, %v248_v60  ;;  %v331_v11 = vmul.f32 %v317_v59, %v249_v1 }
  0x3a   : > { %v335_v62 = vadd.f32 %v334_v55, %v320_v49 }
  0x3b   : > { %v343_v5 = vadd.f32 %v342_v0, %v327_v57 }
  0x3c   : > { %v336_v3 = vadd.f32 %v335_v62, %v321_v54 }
  0x3d   : > { %v344_v9 = vadd.f32 %v343_v5, %v328_v63 }
  0x3e   : > { %v337_v7 = vadd.f32 %v336_v3, %v322_v61 }
  0x3f   : > { %v345_v12 = vadd.f32 %v344_v9, %v329_v4 }
  0x40   : > { %v338_v10 = vadd.f32 %v337_v7, %v323_v2 }
  0x41   : > { %v346_v14 = vadd.f32 %v345_v12, %v330_v8 }
  0x42   : > { %v339_v13 = vadd.f32 %v338_v10, %v324_v6 }
  0x43   : > { %v347_v15 = vadd.f32 %v346_v14, %v331_v11 }
  0x44   : > { %340 = vadd.xlane.f32.xlu0 %v339_v13 }
  0x48   : > { %348 = vadd.xlane.f32.xlu0 %v347_v15 }
  0xd1   : > { %v341_v17 = vpop.xlane.xlu0 %340 }
  0xd2   : > { %v350_v18 = vadd.f32 %v341_v17, %v332_v16  ;;  %358 = sbr.rel (%p449_p10) target bundleno = 260 (0x104), region = 66 }
  0xd4   : > { %353 = vst.msk [vmem:[#allocation2] sm:$0xff] %vm352_vm1, %v350_v18 }
  0xd5   : > { %v349_v20 = vpop.xlane.xlu0 %348 }
  0xd6   : > { %v351_v21 = vadd.f32 %v349_v20, %v333_v19 }
  0xd8   : > { %354 = vst.msk [vmem:[#allocation2 + $0x8] sm:$0xff] %vm352_vm1, %v351_v21 }
  0xdb   : > { %v359_v22 = vld [vmem:[#allocation2] sm:$0xff] }
  0xdc   : > { %v368_v25 = vadd.f32 %v450_v23, %v359_v22 }
  0xde   : > { %v370_v27 = vand.u32 2147483647, %v368_v25  ;;  %vm378_vm2 = vcmp.ge.f32.partialorder %v368_v25, 0.0 }
  0xdf   : > { %v360_v24 = vld [vmem:[#allocation2 + $0x8] sm:$0xff] }
  0xe0   : > { %v369_v26 = vadd.f32 %v450_v23, %v360_v24  ;;  %v372_v29 = vsub.f32 0.0, %v370_v27 }
  0xe2   : > { %v371_v28 = vand.u32 2147483647, %v369_v26  ;;  %v374_v31 = vmul.f32 1.442695, %v372_v29  ;;  %vm379_vm3 = vcmp.ge.f32.partialorder %v369_v26, 0.0 }
  0xe4   : > { %v373_v30 = vsub.f32 0.0, %v371_v28  ;;  %481 = vpow2.f32 %v374_v31 }
  0xe6   : > { %v376_v32 = vmul.f32 1.442695, %v373_v30 }
  0xe8   : > { %483 = vpow2.f32 %v376_v32 }
  0xee   : > { %v482_v33 = vpop.eup %481 }
  0xef   : > { %v380_v35 = vadd.f32 1.0, %v482_v33 }
  0xf1   : > { %485 = vrcp.f32 %v380_v35 }
  0xf2   : > { %v484_v34 = vpop.eup %483 }
  0xf3   : > { %v381_v36 = vadd.f32 1.0, %v484_v34 }
  0xf5   : > { %487 = vrcp.f32 %v381_v36 }
  0xfb   : > { %v486_v37 = vpop.eup %485 }
  0xfc   : > { %v386_v39 = vmul.f32 %v486_v37, %v482_v33 }
  0xfe   : > { %v388_v41 = vsel %vm378_vm2, %v486_v37, %v386_v39 }
  0xff   : > { %v488_v38 = vpop.eup %487  ;;  %390 = vst.msk [vmem:[%s614_s3] sm:$0xff] %vm352_vm1, %v388_v41 }
 0x100   : > { %v387_v40 = vmul.f32 %v488_v38, %v484_v34 }
 0x102   : > { %v389_v42 = vsel %vm379_vm3, %v488_v38, %v387_v40 }
 0x103   : > { %391 = vst.msk [vmem:[%s614_s3 + $0x8] sm:$0xff] %vm352_vm1, %v389_v42 }
 0x104 PF: > { %p12_p11 = scmp.ge.s32.totalorder %s556_s17, 16   ;;  %s615_s14 = smov %s507_s15 }
 0x105   : > { %s616_s15 = smov %s565_s20  ;;  %s617_s16 = smov %s556_s17 }
 0x106   :  { %14 = sbr.rel (!%p12_p11) target bundleno = 5 (0x5), region = 106 }

</bundles_post_ra>
